<compile_context>
chip_gen: v7x
topology: tpu7x:2x2x1
jax: 0.10.0
libtpu: 0.0.40
codegen_flags: <defaults>
</compile_context>

<pallas_src>
import jax
import jax.numpy as jnp
from jax.experimental import pallas as pl
from jax.experimental.pallas import tpu as pltpu


# ----------------------------------------------------------------------------
# Fused kernel: whole BasicBlock for one batch element per grid step.
# conv = 9 shifted matmuls on the MXU accumulated in f32; BN (running stats)
# scale is pre-folded into the weights, BN shift + conv bias into the bias.
# ----------------------------------------------------------------------------
def _basic_block_kernel(x_ref, w1_ref, b1_ref, w2_ref, b2_ref,
                        o_ref, xpad_ref, ypad_ref):
    # x_ref : (1, H, W, C)    one batch element, NHWC (C on lanes)
    # w*_ref: (9, Cin, Cout)  3x3 taps (ky*3+kx), BN scale already folded in
    # b*_ref: (1, Cout)       folded BN shift (+conv bias), f32
    # o_ref : (1, Cout, H*W)  lane-dense output (NCHW element order)
    # *_pad : (H+2, W+2, C)   zero-halo VMEM scratches (input / intermediate)
    H, W, C = x_ref.shape[1], x_ref.shape[2], x_ref.shape[3]
    HW = H * W

    def conv3x3(pad_ref, w_ref):
        cin = w_ref.shape[1]
        cout = w_ref.shape[2]
        acc = jnp.zeros((HW, cout), jnp.float32)
        for dy in range(3):
            for dx in range(3):
                tap = pad_ref[pl.ds(dy, H), pl.ds(dx, W), :].reshape(HW, cin)
                acc = acc + jnp.dot(tap, w_ref[dy * 3 + dx],
                                    preferred_element_type=jnp.float32)
        return acc

    # Single VMEM read of x; reused for halo fill and the shortcut add.
    x = x_ref[0, :, :, :]                                   # (H, W, C)

    # ---- conv1 (+ folded bn1) + relu; intermediate never leaves VMEM ----
    xpad_ref[...] = jnp.zeros_like(xpad_ref)
    xpad_ref[pl.ds(1, H), pl.ds(1, W), :] = x
    y = conv3x3(xpad_ref, w1_ref) + b1_ref[...]
    y = jnp.maximum(y, 0.0)

    # ---- conv2 (+ folded bn2) + identity-shortcut add + relu ----
    cmid = w1_ref.shape[2]
    ypad_ref[...] = jnp.zeros_like(ypad_ref)
    ypad_ref[pl.ds(1, H), pl.ds(1, W), :] = (
        y.reshape(H, W, cmid).astype(ypad_ref.dtype))
    z = conv3x3(ypad_ref, w2_ref) + b2_ref[...]
    z = jnp.maximum(z + x.reshape(HW, C).astype(jnp.float32), 0.0)

    # Lane-dense store: (HW, Cout) -> (Cout, HW).  Last dim is H*W (multiple
    # of 128 here) instead of Cout=4, so the writeback uses dense vst rather
    # than masked partial stores.
    o_ref[...] = (jnp.transpose(z, (1, 0))
                  .reshape(o_ref.shape).astype(o_ref.dtype))


# ----------------------------------------------------------------------------
# Wrapper: fold BN into weights/bias, reshape weights, single pallas_call.
# ----------------------------------------------------------------------------
def basic_block_forward(x_nchw, p, eps=1e-5, compute_dtype=jnp.float32):
    N, C, H, W = x_nchw.shape
    planes = p["w1"].shape[0]
    assert p["w1"].shape[1] == C and planes == C, \
        "identity-shortcut (stride=1, in_planes==planes) path only"

    # Fold BN (running stats, eval mode): scale into conv weights, shift+bias
    # into a per-channel bias.
    s1 = p["gamma1"] / jnp.sqrt(p["var1"] + eps)
    b1 = p["beta1"] + s1 * (p["b1"] - p["mean1"])
    s2 = p["gamma2"] / jnp.sqrt(p["var2"] + eps)
    b2 = p["beta2"] + s2 * (p["b2"] - p["mean2"])

    # OIHW -> HWIO -> (9, Cin, Cout), taps ordered ky*3+kx; scale on Cout.
    w1 = jnp.transpose(p["w1"], (2, 3, 1, 0)).reshape(9, C, planes) * s1
    w2 = jnp.transpose(p["w2"], (2, 3, 1, 0)).reshape(9, planes, planes) * s2

    # Single NCHW->NHWC transpose on the way in (at real sizes activations
    # would stay NHWC between blocks and this would disappear too).
    x_nhwc = jnp.transpose(x_nchw, (0, 2, 3, 1)).astype(compute_dtype)
    w1 = w1.astype(compute_dtype)
    w2 = w2.astype(compute_dtype)

    out_flat = pl.pallas_call(
        _basic_block_kernel,
        out_shape=jax.ShapeDtypeStruct((N, planes, H * W), jnp.float32),
        grid_spec=pltpu.PrefetchScalarGridSpec(
            num_scalar_prefetch=0,
            grid=(N,),
            in_specs=[
                pl.BlockSpec((1, H, W, C), lambda n: (n, 0, 0, 0)),
                pl.BlockSpec((9, C, planes), lambda n: (0, 0, 0)),
                pl.BlockSpec((1, planes), lambda n: (0, 0)),
                pl.BlockSpec((9, planes, planes), lambda n: (0, 0, 0)),
                pl.BlockSpec((1, planes), lambda n: (0, 0)),
            ],
            out_specs=pl.BlockSpec((1, planes, H * W), lambda n: (n, 0, 0)),
            scratch_shapes=[
                pltpu.VMEM((H + 2, W + 2, C), compute_dtype),       # xpad
                pltpu.VMEM((H + 2, W + 2, planes), compute_dtype),  # ypad
            ],
        ),
        compiler_params=pltpu.CompilerParams(
            dimension_semantics=("parallel",),        # shard batch over TCs
            # Explicit scoped-VMEM cap; re-derive when row-strip tiling for
            # real ResNet sizes (leave headroom on v7x's 64 MiB physical).
            vmem_limit_bytes=32 * 1024 * 1024,
        ),
    )(x_nhwc, w1, b1.reshape(1, planes).astype(jnp.float32),
      w2, b2.reshape(1, planes).astype(jnp.float32))

    # (N, Cout, H*W) is already NCHW element order: free reshape, no transpose.
    return out_flat.reshape(N, planes, H, W)


# ----------------------------------------------------------------------------
# Plain-JAX reference (same math) for the correctness check.
# ----------------------------------------------------------------------------
def ref_forward(x_nchw, p, eps=1e-5):
    x = jnp.transpose(x_nchw, (0, 2, 3, 1))

    def conv(y, w_oihw, b):
        w = jnp.transpose(w_oihw, (2, 3, 1, 0))
        out = jax.lax.conv_general_dilated(
            y, w, (1, 1), "SAME",
            dimension_numbers=("NHWC", "HWIO", "NHWC"))
        return out + b

    def bn(y, g, be, m, v):
        return g * (y - m) / jnp.sqrt(v + eps) + be

    out = jax.nn.relu(bn(conv(x, p["w1"], p["b1"]),
                         p["gamma1"], p["beta1"], p["mean1"], p["var1"]))
    out = bn(conv(out, p["w2"], p["b2"]),
             p["gamma2"], p["beta2"], p["mean2"], p["var2"])
    out = jax.nn.relu(out + x)
    return jnp.transpose(out, (0, 3, 1, 2))


if __name__ == "__main__":
    N, C, H, W = 2, 4, 16, 16          # in_planes == planes == 4, stride = 1
    planes = C

    ks = jax.random.split(jax.random.PRNGKey(0), 14)
    x = jax.random.normal(ks[0], (N, C, H, W), jnp.float32)

    params = {
        # conv1 / conv2: OIHW weights + bias (conv3x3 has bias=True)
        "w1": 0.1 * jax.random.normal(ks[1], (planes, C, 3, 3), jnp.float32),
        "b1": 0.1 * jax.random.normal(ks[2], (planes,), jnp.float32),
        "w2": 0.1 * jax.random.normal(ks[3], (planes, planes, 3, 3), jnp.float32),
        "b2": 0.1 * jax.random.normal(ks[4], (planes,), jnp.float32),
        # bn1 / bn2 affine + running stats (eval mode)
        "gamma1": 1.0 + 0.1 * jax.random.normal(ks[5], (planes,), jnp.float32),
        "beta1": 0.1 * jax.random.normal(ks[6], (planes,), jnp.float32),
        "mean1": 0.1 * jax.random.normal(ks[7], (planes,), jnp.float32),
        "var1": 0.5 + jnp.abs(jax.random.normal(ks[8], (planes,), jnp.float32)),
        "gamma2": 1.0 + 0.1 * jax.random.normal(ks[9], (planes,), jnp.float32),
        "beta2": 0.1 * jax.random.normal(ks[10], (planes,), jnp.float32),
        "mean2": 0.1 * jax.random.normal(ks[11], (planes,), jnp.float32),
        "var2": 0.5 + jnp.abs(jax.random.normal(ks[12], (planes,), jnp.float32)),
    }

    out = jax.block_until_ready(basic_block_forward(x, params))
    ref = jax.block_until_ready(ref_forward(x, params))

    assert out.shape == (N, C, H, W)
    assert jnp.allclose(out, ref, rtol=1e-4, atol=1e-4), \
        float(jnp.max(jnp.abs(out - ref)))
    print("KERNEL_OK")
</pallas_src>

<mosaic_0001>
module attributes {stable_mosaic.version = 11 : i64} {
  func.func @_basic_block_kernel(%arg0: i32, %arg1: memref<1x16x16x4xf32, #tpu.memory_space<vmem>>, %arg2: memref<9x4x4xf32, #tpu.memory_space<vmem>>, %arg3: memref<1x4xf32, #tpu.memory_space<vmem>>, %arg4: memref<9x4x4xf32, #tpu.memory_space<vmem>>, %arg5: memref<1x4xf32, #tpu.memory_space<vmem>>, %arg6: memref<1x4x256xf32, #tpu.memory_space<vmem>>, %arg7: memref<18x18x4xf32, #tpu.memory_space<vmem>>, %arg8: memref<18x18x4xf32, #tpu.memory_space<vmem>>) attributes {dimension_semantics = [#tpu.dimension_semantics<parallel>], iteration_bounds = array<i64: 2>, scalar_prefetch = 0 : i64, scratch_operands = 2 : i64, tpu.core_type = #tpu.core_type<tc>, window_params = [{transform_indices = @transform_0, window_bounds = array<i64: 1, 16, 16, 4>}, {pipeline_mode = #tpu.pipeline_mode<synchronous>, transform_indices = @transform_1, window_bounds = array<i64: 9, 4, 4>}, {pipeline_mode = #tpu.pipeline_mode<synchronous>, transform_indices = @transform_2, window_bounds = array<i64: 1, 4>}, {pipeline_mode = #tpu.pipeline_mode<synchronous>, transform_indices = @transform_3, window_bounds = array<i64: 9, 4, 4>}, {pipeline_mode = #tpu.pipeline_mode<synchronous>, transform_indices = @transform_4, window_bounds = array<i64: 1, 4>}, {transform_indices = @transform_5, window_bounds = array<i64: 1, 4, 256>}]} {
    %c0 = arith.constant 0 : index
    %c0_0 = arith.constant 0 : index
    %c0_1 = arith.constant 0 : index
    %c0_2 = arith.constant 0 : index
    %0 = vector.load %arg1[%c0, %c0_0, %c0_1, %c0_2] : memref<1x16x16x4xf32, #tpu.memory_space<vmem>>, vector<1x16x16x4xf32>
    %1 = vector.shape_cast %0 : vector<1x16x16x4xf32> to vector<16x16x4xf32>
    %cst = arith.constant 0.000000e+00 : f32
    %2 = vector.broadcast %cst : f32 to vector<18x18x4xf32>
    %c0_3 = arith.constant 0 : index
    %c0_4 = arith.constant 0 : index
    %c0_5 = arith.constant 0 : index
    %3 = vector.load %arg7[%c0_3, %c0_4, %c0_5] : memref<18x18x4xf32, #tpu.memory_space<vmem>>, vector<18x18x4xf32>
    tpu.vector_store %arg7[%c0_3, %c0_4, %c0_5], %2 {strides = array<i32>} : memref<18x18x4xf32, #tpu.memory_space<vmem>>, vector<18x18x4xf32>,
    %c1 = arith.constant 1 : index
    %c1_6 = arith.constant 1 : index
    %c0_7 = arith.constant 0 : index
    %4 = vector.load %arg7[%c1, %c1_6, %c0_7] : memref<18x18x4xf32, #tpu.memory_space<vmem>>, vector<16x16x4xf32>
    tpu.vector_store %arg7[%c1, %c1_6, %c0_7], %1 {strides = array<i32>} : memref<18x18x4xf32, #tpu.memory_space<vmem>>, vector<16x16x4xf32>,
    %cst_8 = arith.constant 0.000000e+00 : f32
    %5 = vector.broadcast %cst_8 : f32 to vector<256x4xf32>
    %c0_9 = arith.constant 0 : index
    %c0_10 = arith.constant 0 : index
    %c0_11 = arith.constant 0 : index
    %6 = vector.load %arg7[%c0_9, %c0_10, %c0_11] : memref<18x18x4xf32, #tpu.memory_space<vmem>>, vector<16x16x4xf32>
    %7 = vector.shape_cast %6 : vector<16x16x4xf32> to vector<256x4xf32>
    %c0_12 = arith.constant 0 : index
    %c0_13 = arith.constant 0 : index
    %c0_14 = arith.constant 0 : index
    %8 = vector.load %arg2[%c0_12, %c0_13, %c0_14] : memref<9x4x4xf32, #tpu.memory_space<vmem>>, vector<1x4x4xf32>
    %9 = vector.shape_cast %8 : vector<1x4x4xf32> to vector<4x4xf32>
    %cst_15 = arith.constant dense<0.000000e+00> : vector<256x4xf32>
    %10 = tpu.matmul %7, %9, %cst_15 {dimension_numbers = #tpu.dot_dimension_numbers<[1], [0], [0], [1], [0, 0, 1, 1], [], []>} : vector<256x4xf32>, vector<4x4xf32>, vector<256x4xf32> -> vector<256x4xf32>
    %11 = arith.addf %5, %10 : vector<256x4xf32>
    %c0_16 = arith.constant 0 : index
    %c1_17 = arith.constant 1 : index
    %c0_18 = arith.constant 0 : index
    %12 = vector.load %arg7[%c0_16, %c1_17, %c0_18] : memref<18x18x4xf32, #tpu.memory_space<vmem>>, vector<16x16x4xf32>
    %13 = vector.shape_cast %12 : vector<16x16x4xf32> to vector<256x4xf32>
    %c1_19 = arith.constant 1 : index
    %c0_20 = arith.constant 0 : index
    %c0_21 = arith.constant 0 : index
    %14 = vector.load %arg2[%c1_19, %c0_20, %c0_21] : memref<9x4x4xf32, #tpu.memory_space<vmem>>, vector<1x4x4xf32>
    %15 = vector.shape_cast %14 : vector<1x4x4xf32> to vector<4x4xf32>
    %cst_22 = arith.constant dense<0.000000e+00> : vector<256x4xf32>
    %16 = tpu.matmul %13, %15, %cst_22 {dimension_numbers = #tpu.dot_dimension_numbers<[1], [0], [0], [1], [0, 0, 1, 1], [], []>} : vector<256x4xf32>, vector<4x4xf32>, vector<256x4xf32> -> vector<256x4xf32>
    %17 = arith.addf %11, %16 : vector<256x4xf32>
    %c0_23 = arith.constant 0 : index
    %c2 = arith.constant 2 : index
    %c0_24 = arith.constant 0 : index
    %18 = vector.load %arg7[%c0_23, %c2, %c0_24] : memref<18x18x4xf32, #tpu.memory_space<vmem>>, vector<16x16x4xf32>
    %19 = vector.shape_cast %18 : vector<16x16x4xf32> to vector<256x4xf32>
    %c2_25 = arith.constant 2 : index
    %c0_26 = arith.constant 0 : index
    %c0_27 = arith.constant 0 : index
    %20 = vector.load %arg2[%c2_25, %c0_26, %c0_27] : memref<9x4x4xf32, #tpu.memory_space<vmem>>, vector<1x4x4xf32>
    %21 = vector.shape_cast %20 : vector<1x4x4xf32> to vector<4x4xf32>
    %cst_28 = arith.constant dense<0.000000e+00> : vector<256x4xf32>
    %22 = tpu.matmul %19, %21, %cst_28 {dimension_numbers = #tpu.dot_dimension_numbers<[1], [0], [0], [1], [0, 0, 1, 1], [], []>} : vector<256x4xf32>, vector<4x4xf32>, vector<256x4xf32> -> vector<256x4xf32>
    %23 = arith.addf %17, %22 : vector<256x4xf32>
    %c1_29 = arith.constant 1 : index
    %c0_30 = arith.constant 0 : index
    %c0_31 = arith.constant 0 : index
    %24 = vector.load %arg7[%c1_29, %c0_30, %c0_31] : memref<18x18x4xf32, #tpu.memory_space<vmem>>, vector<16x16x4xf32>
    %25 = vector.shape_cast %24 : vector<16x16x4xf32> to vector<256x4xf32>
    %c3 = arith.constant 3 : index
    %c0_32 = arith.constant 0 : index
    %c0_33 = arith.constant 0 : index
    %26 = vector.load %arg2[%c3, %c0_32, %c0_33] : memref<9x4x4xf32, #tpu.memory_space<vmem>>, vector<1x4x4xf32>
    %27 = vector.shape_cast %26 : vector<1x4x4xf32> to vector<4x4xf32>
    %cst_34 = arith.constant dense<0.000000e+00> : vector<256x4xf32>
    %28 = tpu.matmul %25, %27, %cst_34 {dimension_numbers = #tpu.dot_dimension_numbers<[1], [0], [0], [1], [0, 0, 1, 1], [], []>} : vector<256x4xf32>, vector<4x4xf32>, vector<256x4xf32> -> vector<256x4xf32>
    %29 = arith.addf %23, %28 : vector<256x4xf32>
    %c1_35 = arith.constant 1 : index
    %c1_36 = arith.constant 1 : index
    %c0_37 = arith.constant 0 : index
    %30 = vector.load %arg7[%c1_35, %c1_36, %c0_37] : memref<18x18x4xf32, #tpu.memory_space<vmem>>, vector<16x16x4xf32>
    %31 = vector.shape_cast %30 : vector<16x16x4xf32> to vector<256x4xf32>
    %c4 = arith.constant 4 : index
    %c0_38 = arith.constant 0 : index
    %c0_39 = arith.constant 0 : index
    %32 = vector.load %arg2[%c4, %c0_38, %c0_39] : memref<9x4x4xf32, #tpu.memory_space<vmem>>, vector<1x4x4xf32>
    %33 = vector.shape_cast %32 : vector<1x4x4xf32> to vector<4x4xf32>
    %cst_40 = arith.constant dense<0.000000e+00> : vector<256x4xf32>
    %34 = tpu.matmul %31, %33, %cst_40 {dimension_numbers = #tpu.dot_dimension_numbers<[1], [0], [0], [1], [0, 0, 1, 1], [], []>} : vector<256x4xf32>, vector<4x4xf32>, vector<256x4xf32> -> vector<256x4xf32>
    %35 = arith.addf %29, %34 : vector<256x4xf32>
    %c1_41 = arith.constant 1 : index
    %c2_42 = arith.constant 2 : index
    %c0_43 = arith.constant 0 : index
    %36 = vector.load %arg7[%c1_41, %c2_42, %c0_43] : memref<18x18x4xf32, #tpu.memory_space<vmem>>, vector<16x16x4xf32>
    %37 = vector.shape_cast %36 : vector<16x16x4xf32> to vector<256x4xf32>
    %c5 = arith.constant 5 : index
    %c0_44 = arith.constant 0 : index
    %c0_45 = arith.constant 0 : index
    %38 = vector.load %arg2[%c5, %c0_44, %c0_45] : memref<9x4x4xf32, #tpu.memory_space<vmem>>, vector<1x4x4xf32>
    %39 = vector.shape_cast %38 : vector<1x4x4xf32> to vector<4x4xf32>
    %cst_46 = arith.constant dense<0.000000e+00> : vector<256x4xf32>
    %40 = tpu.matmul %37, %39, %cst_46 {dimension_numbers = #tpu.dot_dimension_numbers<[1], [0], [0], [1], [0, 0, 1, 1], [], []>} : vector<256x4xf32>, vector<4x4xf32>, vector<256x4xf32> -> vector<256x4xf32>
    %41 = arith.addf %35, %40 : vector<256x4xf32>
    %c2_47 = arith.constant 2 : index
    %c0_48 = arith.constant 0 : index
    %c0_49 = arith.constant 0 : index
    %42 = vector.load %arg7[%c2_47, %c0_48, %c0_49] : memref<18x18x4xf32, #tpu.memory_space<vmem>>, vector<16x16x4xf32>
    %43 = vector.shape_cast %42 : vector<16x16x4xf32> to vector<256x4xf32>
    %c6 = arith.constant 6 : index
    %c0_50 = arith.constant 0 : index
    %c0_51 = arith.constant 0 : index
    %44 = vector.load %arg2[%c6, %c0_50, %c0_51] : memref<9x4x4xf32, #tpu.memory_space<vmem>>, vector<1x4x4xf32>
    %45 = vector.shape_cast %44 : vector<1x4x4xf32> to vector<4x4xf32>
    %cst_52 = arith.constant dense<0.000000e+00> : vector<256x4xf32>
    %46 = tpu.matmul %43, %45, %cst_52 {dimension_numbers = #tpu.dot_dimension_numbers<[1], [0], [0], [1], [0, 0, 1, 1], [], []>} : vector<256x4xf32>, vector<4x4xf32>, vector<256x4xf32> -> vector<256x4xf32>
    %47 = arith.addf %41, %46 : vector<256x4xf32>
    %c2_53 = arith.constant 2 : index
    %c1_54 = arith.constant 1 : index
    %c0_55 = arith.constant 0 : index
    %48 = vector.load %arg7[%c2_53, %c1_54, %c0_55] : memref<18x18x4xf32, #tpu.memory_space<vmem>>, vector<16x16x4xf32>
    %49 = vector.shape_cast %48 : vector<16x16x4xf32> to vector<256x4xf32>
    %c7 = arith.constant 7 : index
    %c0_56 = arith.constant 0 : index
    %c0_57 = arith.constant 0 : index
    %50 = vector.load %arg2[%c7, %c0_56, %c0_57] : memref<9x4x4xf32, #tpu.memory_space<vmem>>, vector<1x4x4xf32>
    %51 = vector.shape_cast %50 : vector<1x4x4xf32> to vector<4x4xf32>
    %cst_58 = arith.constant dense<0.000000e+00> : vector<256x4xf32>
    %52 = tpu.matmul %49, %51, %cst_58 {dimension_numbers = #tpu.dot_dimension_numbers<[1], [0], [0], [1], [0, 0, 1, 1], [], []>} : vector<256x4xf32>, vector<4x4xf32>, vector<256x4xf32> -> vector<256x4xf32>
    %53 = arith.addf %47, %52 : vector<256x4xf32>
    %c2_59 = arith.constant 2 : index
    %c2_60 = arith.constant 2 : index
    %c0_61 = arith.constant 0 : index
    %54 = vector.load %arg7[%c2_59, %c2_60, %c0_61] : memref<18x18x4xf32, #tpu.memory_space<vmem>>, vector<16x16x4xf32>
    %55 = vector.shape_cast %54 : vector<16x16x4xf32> to vector<256x4xf32>
    %c8 = arith.constant 8 : index
    %c0_62 = arith.constant 0 : index
    %c0_63 = arith.constant 0 : index
    %56 = vector.load %arg2[%c8, %c0_62, %c0_63] : memref<9x4x4xf32, #tpu.memory_space<vmem>>, vector<1x4x4xf32>
    %57 = vector.shape_cast %56 : vector<1x4x4xf32> to vector<4x4xf32>
    %cst_64 = arith.constant dense<0.000000e+00> : vector<256x4xf32>
    %58 = tpu.matmul %55, %57, %cst_64 {dimension_numbers = #tpu.dot_dimension_numbers<[1], [0], [0], [1], [0, 0, 1, 1], [], []>} : vector<256x4xf32>, vector<4x4xf32>, vector<256x4xf32> -> vector<256x4xf32>
    %59 = arith.addf %53, %58 : vector<256x4xf32>
    %c0_65 = arith.constant 0 : index
    %c0_66 = arith.constant 0 : index
    %60 = vector.load %arg3[%c0_65, %c0_66] : memref<1x4xf32, #tpu.memory_space<vmem>>, vector<1x4xf32>
    %61 = vector.broadcast %60 : vector<1x4xf32> to vector<256x4xf32>
    %62 = arith.addf %59, %61 : vector<256x4xf32>
    %cst_67 = arith.constant 0.000000e+00 : f32
    %63 = vector.broadcast %cst_67 : f32 to vector<256x4xf32>
    %64 = arith.maximumf %62, %63 : vector<256x4xf32>
    %cst_68 = arith.constant 0.000000e+00 : f32
    %65 = vector.broadcast %cst_68 : f32 to vector<18x18x4xf32>
    %c0_69 = arith.constant 0 : index
    %c0_70 = arith.constant 0 : index
    %c0_71 = arith.constant 0 : index
    %66 = vector.load %arg8[%c0_69, %c0_70, %c0_71] : memref<18x18x4xf32, #tpu.memory_space<vmem>>, vector<18x18x4xf32>
    tpu.vector_store %arg8[%c0_69, %c0_70, %c0_71], %65 {strides = array<i32>} : memref<18x18x4xf32, #tpu.memory_space<vmem>>, vector<18x18x4xf32>,
    %67 = vector.shape_cast %64 : vector<256x4xf32> to vector<16x16x4xf32>
    %c1_72 = arith.constant 1 : index
    %c1_73 = arith.constant 1 : index
    %c0_74 = arith.constant 0 : index
    %68 = vector.load %arg8[%c1_72, %c1_73, %c0_74] : memref<18x18x4xf32, #tpu.memory_space<vmem>>, vector<16x16x4xf32>
    tpu.vector_store %arg8[%c1_72, %c1_73, %c0_74], %67 {strides = array<i32>} : memref<18x18x4xf32, #tpu.memory_space<vmem>>, vector<16x16x4xf32>,
    %cst_75 = arith.constant 0.000000e+00 : f32
    %69 = vector.broadcast %cst_75 : f32 to vector<256x4xf32>
    %c0_76 = arith.constant 0 : index
    %c0_77 = arith.constant 0 : index
    %c0_78 = arith.constant 0 : index
    %70 = vector.load %arg8[%c0_76, %c0_77, %c0_78] : memref<18x18x4xf32, #tpu.memory_space<vmem>>, vector<16x16x4xf32>
    %71 = vector.shape_cast %70 : vector<16x16x4xf32> to vector<256x4xf32>
    %c0_79 = arith.constant 0 : index
    %c0_80 = arith.constant 0 : index
    %c0_81 = arith.constant 0 : index
    %72 = vector.load %arg4[%c0_79, %c0_80, %c0_81] : memref<9x4x4xf32, #tpu.memory_space<vmem>>, vector<1x4x4xf32>
    %73 = vector.shape_cast %72 : vector<1x4x4xf32> to vector<4x4xf32>
    %cst_82 = arith.constant dense<0.000000e+00> : vector<256x4xf32>
    %74 = tpu.matmul %71, %73, %cst_82 {dimension_numbers = #tpu.dot_dimension_numbers<[1], [0], [0], [1], [0, 0, 1, 1], [], []>} : vector<256x4xf32>, vector<4x4xf32>, vector<256x4xf32> -> vector<256x4xf32>
    %75 = arith.addf %69, %74 : vector<256x4xf32>
    %c0_83 = arith.constant 0 : index
    %c1_84 = arith.constant 1 : index
    %c0_85 = arith.constant 0 : index
    %76 = vector.load %arg8[%c0_83, %c1_84, %c0_85] : memref<18x18x4xf32, #tpu.memory_space<vmem>>, vector<16x16x4xf32>
    %77 = vector.shape_cast %76 : vector<16x16x4xf32> to vector<256x4xf32>
    %c1_86 = arith.constant 1 : index
    %c0_87 = arith.constant 0 : index
    %c0_88 = arith.constant 0 : index
    %78 = vector.load %arg4[%c1_86, %c0_87, %c0_88] : memref<9x4x4xf32, #tpu.memory_space<vmem>>, vector<1x4x4xf32>
    %79 = vector.shape_cast %78 : vector<1x4x4xf32> to vector<4x4xf32>
    %cst_89 = arith.constant dense<0.000000e+00> : vector<256x4xf32>
    %80 = tpu.matmul %77, %79, %cst_89 {dimension_numbers = #tpu.dot_dimension_numbers<[1], [0], [0], [1], [0, 0, 1, 1], [], []>} : vector<256x4xf32>, vector<4x4xf32>, vector<256x4xf32> -> vector<256x4xf32>
    %81 = arith.addf %75, %80 : vector<256x4xf32>
    %c0_90 = arith.constant 0 : index
    %c2_91 = arith.constant 2 : index
    %c0_92 = arith.constant 0 : index
    %82 = vector.load %arg8[%c0_90, %c2_91, %c0_92] : memref<18x18x4xf32, #tpu.memory_space<vmem>>, vector<16x16x4xf32>
    %83 = vector.shape_cast %82 : vector<16x16x4xf32> to vector<256x4xf32>
    %c2_93 = arith.constant 2 : index
    %c0_94 = arith.constant 0 : index
    %c0_95 = arith.constant 0 : index
    %84 = vector.load %arg4[%c2_93, %c0_94, %c0_95] : memref<9x4x4xf32, #tpu.memory_space<vmem>>, vector<1x4x4xf32>
    %85 = vector.shape_cast %84 : vector<1x4x4xf32> to vector<4x4xf32>
    %cst_96 = arith.constant dense<0.000000e+00> : vector<256x4xf32>
    %86 = tpu.matmul %83, %85, %cst_96 {dimension_numbers = #tpu.dot_dimension_numbers<[1], [0], [0], [1], [0, 0, 1, 1], [], []>} : vector<256x4xf32>, vector<4x4xf32>, vector<256x4xf32> -> vector<256x4xf32>
    %87 = arith.addf %81, %86 : vector<256x4xf32>
    %c1_97 = arith.constant 1 : index
    %c0_98 = arith.constant 0 : index
    %c0_99 = arith.constant 0 : index
    %88 = vector.load %arg8[%c1_97, %c0_98, %c0_99] : memref<18x18x4xf32, #tpu.memory_space<vmem>>, vector<16x16x4xf32>
    %89 = vector.shape_cast %88 : vector<16x16x4xf32> to vector<256x4xf32>
    %c3_100 = arith.constant 3 : index
    %c0_101 = arith.constant 0 : index
    %c0_102 = arith.constant 0 : index
    %90 = vector.load %arg4[%c3_100, %c0_101, %c0_102] : memref<9x4x4xf32, #tpu.memory_space<vmem>>, vector<1x4x4xf32>
    %91 = vector.shape_cast %90 : vector<1x4x4xf32> to vector<4x4xf32>
    %cst_103 = arith.constant dense<0.000000e+00> : vector<256x4xf32>
    %92 = tpu.matmul %89, %91, %cst_103 {dimension_numbers = #tpu.dot_dimension_numbers<[1], [0], [0], [1], [0, 0, 1, 1], [], []>} : vector<256x4xf32>, vector<4x4xf32>, vector<256x4xf32> -> vector<256x4xf32>
    %93 = arith.addf %87, %92 : vector<256x4xf32>
    %c1_104 = arith.constant 1 : index
    %c1_105 = arith.constant 1 : index
    %c0_106 = arith.constant 0 : index
    %94 = vector.load %arg8[%c1_104, %c1_105, %c0_106] : memref<18x18x4xf32, #tpu.memory_space<vmem>>, vector<16x16x4xf32>
    %95 = vector.shape_cast %94 : vector<16x16x4xf32> to vector<256x4xf32>
    %c4_107 = arith.constant 4 : index
    %c0_108 = arith.constant 0 : index
    %c0_109 = arith.constant 0 : index
    %96 = vector.load %arg4[%c4_107, %c0_108, %c0_109] : memref<9x4x4xf32, #tpu.memory_space<vmem>>, vector<1x4x4xf32>
    %97 = vector.shape_cast %96 : vector<1x4x4xf32> to vector<4x4xf32>
    %cst_110 = arith.constant dense<0.000000e+00> : vector<256x4xf32>
    %98 = tpu.matmul %95, %97, %cst_110 {dimension_numbers = #tpu.dot_dimension_numbers<[1], [0], [0], [1], [0, 0, 1, 1], [], []>} : vector<256x4xf32>, vector<4x4xf32>, vector<256x4xf32> -> vector<256x4xf32>
    %99 = arith.addf %93, %98 : vector<256x4xf32>
    %c1_111 = arith.constant 1 : index
    %c2_112 = arith.constant 2 : index
    %c0_113 = arith.constant 0 : index
    %100 = vector.load %arg8[%c1_111, %c2_112, %c0_113] : memref<18x18x4xf32, #tpu.memory_space<vmem>>, vector<16x16x4xf32>
    %101 = vector.shape_cast %100 : vector<16x16x4xf32> to vector<256x4xf32>
    %c5_114 = arith.constant 5 : index
    %c0_115 = arith.constant 0 : index
    %c0_116 = arith.constant 0 : index
    %102 = vector.load %arg4[%c5_114, %c0_115, %c0_116] : memref<9x4x4xf32, #tpu.memory_space<vmem>>, vector<1x4x4xf32>
    %103 = vector.shape_cast %102 : vector<1x4x4xf32> to vector<4x4xf32>
    %cst_117 = arith.constant dense<0.000000e+00> : vector<256x4xf32>
    %104 = tpu.matmul %101, %103, %cst_117 {dimension_numbers = #tpu.dot_dimension_numbers<[1], [0], [0], [1], [0, 0, 1, 1], [], []>} : vector<256x4xf32>, vector<4x4xf32>, vector<256x4xf32> -> vector<256x4xf32>
    %105 = arith.addf %99, %104 : vector<256x4xf32>
    %c2_118 = arith.constant 2 : index
    %c0_119 = arith.constant 0 : index
    %c0_120 = arith.constant 0 : index
    %106 = vector.load %arg8[%c2_118, %c0_119, %c0_120] : memref<18x18x4xf32, #tpu.memory_space<vmem>>, vector<16x16x4xf32>
    %107 = vector.shape_cast %106 : vector<16x16x4xf32> to vector<256x4xf32>
    %c6_121 = arith.constant 6 : index
    %c0_122 = arith.constant 0 : index
    %c0_123 = arith.constant 0 : index
    %108 = vector.load %arg4[%c6_121, %c0_122, %c0_123] : memref<9x4x4xf32, #tpu.memory_space<vmem>>, vector<1x4x4xf32>
    %109 = vector.shape_cast %108 : vector<1x4x4xf32> to vector<4x4xf32>
    %cst_124 = arith.constant dense<0.000000e+00> : vector<256x4xf32>
    %110 = tpu.matmul %107, %109, %cst_124 {dimension_numbers = #tpu.dot_dimension_numbers<[1], [0], [0], [1], [0, 0, 1, 1], [], []>} : vector<256x4xf32>, vector<4x4xf32>, vector<256x4xf32> -> vector<256x4xf32>
    %111 = arith.addf %105, %110 : vector<256x4xf32>
    %c2_125 = arith.constant 2 : index
    %c1_126 = arith.constant 1 : index
    %c0_127 = arith.constant 0 : index
    %112 = vector.load %arg8[%c2_125, %c1_126, %c0_127] : memref<18x18x4xf32, #tpu.memory_space<vmem>>, vector<16x16x4xf32>
    %113 = vector.shape_cast %112 : vector<16x16x4xf32> to vector<256x4xf32>
    %c7_128 = arith.constant 7 : index
    %c0_129 = arith.constant 0 : index
    %c0_130 = arith.constant 0 : index
    %114 = vector.load %arg4[%c7_128, %c0_129, %c0_130] : memref<9x4x4xf32, #tpu.memory_space<vmem>>, vector<1x4x4xf32>
    %115 = vector.shape_cast %114 : vector<1x4x4xf32> to vector<4x4xf32>
    %cst_131 = arith.constant dense<0.000000e+00> : vector<256x4xf32>
    %116 = tpu.matmul %113, %115, %cst_131 {dimension_numbers = #tpu.dot_dimension_numbers<[1], [0], [0], [1], [0, 0, 1, 1], [], []>} : vector<256x4xf32>, vector<4x4xf32>, vector<256x4xf32> -> vector<256x4xf32>
    %117 = arith.addf %111, %116 : vector<256x4xf32>
    %c2_132 = arith.constant 2 : index
    %c2_133 = arith.constant 2 : index
    %c0_134 = arith.constant 0 : index
    %118 = vector.load %arg8[%c2_132, %c2_133, %c0_134] : memref<18x18x4xf32, #tpu.memory_space<vmem>>, vector<16x16x4xf32>
    %119 = vector.shape_cast %118 : vector<16x16x4xf32> to vector<256x4xf32>
    %c8_135 = arith.constant 8 : index
    %c0_136 = arith.constant 0 : index
    %c0_137 = arith.constant 0 : index
    %120 = vector.load %arg4[%c8_135, %c0_136, %c0_137] : memref<9x4x4xf32, #tpu.memory_space<vmem>>, vector<1x4x4xf32>
    %121 = vector.shape_cast %120 : vector<1x4x4xf32> to vector<4x4xf32>
    %cst_138 = arith.constant dense<0.000000e+00> : vector<256x4xf32>
    %122 = tpu.matmul %119, %121, %cst_138 {dimension_numbers = #tpu.dot_dimension_numbers<[1], [0], [0], [1], [0, 0, 1, 1], [], []>} : vector<256x4xf32>, vector<4x4xf32>, vector<256x4xf32> -> vector<256x4xf32>
    %123 = arith.addf %117, %122 : vector<256x4xf32>
    %c0_139 = arith.constant 0 : index
    %c0_140 = arith.constant 0 : index
    %124 = vector.load %arg5[%c0_139, %c0_140] : memref<1x4xf32, #tpu.memory_space<vmem>>, vector<1x4xf32>
    %125 = vector.broadcast %124 : vector<1x4xf32> to vector<256x4xf32>
    %126 = arith.addf %123, %125 : vector<256x4xf32>
    %127 = vector.shape_cast %1 : vector<16x16x4xf32> to vector<256x4xf32>
    %128 = arith.addf %126, %127 : vector<256x4xf32>
    %cst_141 = arith.constant 0.000000e+00 : f32
    %129 = vector.broadcast %cst_141 : f32 to vector<256x4xf32>
    %130 = arith.maximumf %128, %129 : vector<256x4xf32>
    %131 = tpu.transpose %130, [1, 0] : vector<256x4xf32> -> vector<4x256xf32>
    %132 = vector.shape_cast %131 : vector<4x256xf32> to vector<1x4x256xf32>
    %c0_142 = arith.constant 0 : index
    %c0_143 = arith.constant 0 : index
    %c0_144 = arith.constant 0 : index
    %133 = vector.load %arg6[%c0_142, %c0_143, %c0_144] : memref<1x4x256xf32, #tpu.memory_space<vmem>>, vector<1x4x256xf32>
    tpu.vector_store %arg6[%c0_142, %c0_143, %c0_144], %132 {strides = array<i32>} : memref<1x4x256xf32, #tpu.memory_space<vmem>>, vector<1x4x256xf32>,
    return
  }
  func.func @transform_0(%arg0: i32) -> (i32, i32, i32, i32) {
    %c0_i32 = arith.constant 0 : i32
    %c0_i32_0 = arith.constant 0 : i32
    %c0_i32_1 = arith.constant 0 : i32
    %c0_i32_2 = arith.constant 0 : i32
    return %arg0, %c0_i32, %c0_i32_0, %c0_i32_1 : i32, i32, i32, i32
  }
  func.func @transform_1(%arg0: i32) -> (i32, i32, i32) {
    %c0_i32 = arith.constant 0 : i32
    %c0_i32_0 = arith.constant 0 : i32
    %c0_i32_1 = arith.constant 0 : i32
    %c0_i32_2 = arith.constant 0 : i32
    return %c0_i32, %c0_i32_0, %c0_i32_1 : i32, i32, i32
  }
  func.func @transform_2(%arg0: i32) -> (i32, i32) {
    %c0_i32 = arith.constant 0 : i32
    %c0_i32_0 = arith.constant 0 : i32
    %c0_i32_1 = arith.constant 0 : i32
    return %c0_i32, %c0_i32_0 : i32, i32
  }
  func.func @transform_3(%arg0: i32) -> (i32, i32, i32) {
    %c0_i32 = arith.constant 0 : i32
    %c0_i32_0 = arith.constant 0 : i32
    %c0_i32_1 = arith.constant 0 : i32
    %c0_i32_2 = arith.constant 0 : i32
    return %c0_i32, %c0_i32_0, %c0_i32_1 : i32, i32, i32
  }
  func.func @transform_4(%arg0: i32) -> (i32, i32) {
    %c0_i32 = arith.constant 0 : i32
    %c0_i32_0 = arith.constant 0 : i32
    %c0_i32_1 = arith.constant 0 : i32
    return %c0_i32, %c0_i32_0 : i32, i32
  }
  func.func @transform_5(%arg0: i32) -> (i32, i32, i32) {
    %c0_i32 = arith.constant 0 : i32
    %c0_i32_0 = arith.constant 0 : i32
    %c0_i32_1 = arith.constant 0 : i32
    return %arg0, %c0_i32, %c0_i32_0 : i32, i32, i32
  }
}

</mosaic_0001>

<bundles_post_ra>
// kernel: tpu_custom_call.1
= control target key start
LH: loop header
LB: loop body
LE: loop exit
PB: predicated region body
PF: predicated region fallthrough
CT: control target
= control target key end

     0   :  { %10 = vsyncpa [#allocation5], 0  ;;  %s12648_s0 = inlined_call_operand.vmem [shape: f32[2,16,16,4], index: 0, kind: input, shape index: {}]   ;;  %s12649_s1 = inlined_call_operand.vmem [shape: f32[9,4,4], index: 1, kind: input, shape index: {}]   ;;  %s12650_s2 = inlined_call_operand.vmem [shape: f32[1,4], index: 2, kind: input, shape index: {}]   ;;  %s12651_s3 = inlined_call_operand.vmem [shape: f32[9,4,4], index: 3, kind: input, shape index: {}]   ;;  %s12652_s4 = inlined_call_operand.vmem [shape: f32[1,4], index: 4, kind: input, shape index: {}]   ;;  %s12653_s5 = inlined_call_operand.hbm [shape: f32[2,4,256], index: 5, kind: output, shape index: {}]  }
   0x1   :  { %12 = vsyncpa [#allocation5 + $0x1], 0  ;;  %s10409_s18 = smov 0   ;;  %s10411_s19 = smov 0  }
   0x2   :  { %s10413_s20 = smov 0   ;;  %s10415_s21 = smov 0  }
   0x3 LB: > { %s10430_s22 = sadd.s32 4294967295, %s10375_s21   ;;  %s7641_s23 = sadd.s32 4294967294, %s10375_s21   ;;  %s10375_s21 = sphi %s10415_s21, %s13027_s21   ;;  %s10371_s20 = sphi %s10413_s20, %s13026_s20   ;;  %s10367_s19 = sphi %s10411_s19, %s13025_s19   ;;  %s10363_s18 = sphi %s10409_s18, %s13024_s18  }
   0x4   : > { %s10434_s24 = sadd.s32 1, %s10375_s21   ;;  %s135_s25 = sadd.s32 1, %s10371_s20 }
   0x5   : > { %s132_s26 = ssub.s32 %s10375_s21, %s10434_s24  ;;  %p145_p0 = scmp.ne.s32.totalorder %s10371_s20, %s10367_s19 }
   0x6   : > { %p133_p1 = scmp.eq.s32.totalorder %s132_s26, 0  ;;  %p146_p2 = scmp.eq.s32.totalorder %s10430_s22, 1 }
   0x7   : > { %p151_p3 = scmp.ne.s32.totalorder %s10367_s19, %s10363_s18  ;;  %p152_p4 = scmp.eq.s32.totalorder %s7641_s23, 1 }
   0x8   : > { %s10445_s27 = scalar_select %p133_p1, %s10371_s20, %s135_s25  }
   0x9   : > { %p10447_p5 = por %p146_p2, %p145_p0  ;;  %p10451_p6 = por %p152_p4, %p151_p3 }
   0xa   : > { %p7644_p7 = scmp.ge.s32.totalorder %s10375_s21, 1  ;;  %p190_p8 = scmp.lt.s32.totalorder %s10375_s21, 3 }
   0xc   : > { %p191_p9 = pnand %p7644_p7, %p190_p8 }
   0xe   : > { %194 = sbr.rel (%p191_p9) target bundleno = 1724 (0x6bc), region = 40 }
  0x15   : > { %v10460_v0 = vld [vmem:[%s12649_s1 + $0x4] sm:$0xf]  ;;  %vm507_vm0 = vcmask 1043456   ;;  %vm255_vm1 = vcmask 31744   ;;  %vm258_vm2 = vcmask 25600   ;;  %v10377_v1 = vmov 0.0  }
  0x16   : > { %8861 = vmatprep.subr.msk.mxu0 %vm507_vm0, %v10460_v0  ;;  %256 = vst.msk [vmem:[#allocation2] sm:$0xff] %vm255_vm1, %v10377_v1  ;;  %257 = vst.msk [vmem:[#allocation2 + $0x8] sm:$0xff] %vm255_vm1, %v10377_v1  ;;  %v10611_v2 = vld [vmem:[%s12649_s1] sm:$0xf]  ;;  %p218_p10 = scmp.lt.s32.totalorder %s10430_s22, 1  ;;  %s215_s23 = sand.u32 1, %s10367_s19  }
  0x17   : > { %260 = vst.msk [vmem:[#allocation2 + $0x18] sm:$0xff] %vm255_vm1, %v10377_v1  ;;  %261 = vst.msk [vmem:[#allocation2 + $0x20] sm:$0xff] %vm255_vm1, %v10377_v1  ;;  %8862 = vmatpush3.msk.msra.mxu0 %vm507_vm0, %v10460_v0  ;;  %v10708_v6 = vld [vmem:[%s12649_s1 + $0x8] sm:$0xf]  ;;  %s7645_s25 = sshll.u32 %s215_s23, 3  ;;  %s8266_s26 = sshll.u32 %s10430_s22, 7 }
  0x18   : > { %263 = vst.msk [vmem:[#allocation2 + $0x30] sm:$0xff] %vm255_vm1, %v10377_v1  ;;  %264 = vst.msk [vmem:[#allocation2 + $0x38] sm:$0xff] %vm255_vm1, %v10377_v1  ;;  %8911 = vmatprep.subr.msk.mxu0 %vm507_vm0, %v10611_v2  ;;  %s219_s9 = scalar_select %p218_p10, %s10430_s22, 1 }
  0x19   : > { %266 = vst.msk [vmem:[#allocation2 + $0x48] sm:$0xff] %vm255_vm1, %v10377_v1  ;;  %267 = vst.msk [vmem:[#allocation2 + $0x50] sm:$0xff] %vm255_vm1, %v10377_v1  ;;  %s217_s30 = scalar_lea.vmem [#allocation4], %s7645_s25  ;;  %s10378_s22 = smov [#allocation4]  }
  0x1a   : > { %269 = vst.msk [vmem:[#allocation2 + $0x60] sm:$0xff] %vm255_vm1, %v10377_v1  ;;  %270 = vst.msk [vmem:[#allocation2 + $0x68] sm:$0xff] %vm255_vm1, %v10377_v1  ;;  %s8265_s10 = sshll.u32 %s219_s9, 8  ;;  %s7582_s6 = sshll.u32 %s217_s30, 4  ;;  %s12608_s6 = int_to_ptr.vmem [resolvable:$true] %s7582_s6 }
  0x1b   : > { %272 = vst.msk [vmem:[#allocation2 + $0x78] sm:$0xff] %vm255_vm1, %v10377_v1  ;;  %273 = vst.msk [vmem:[#allocation2 + $0x80] sm:$0xff] %vm255_vm1, %v10377_v1  ;;  %s10694_s13 = scalar_lea.vmem %s12648_s0, %s8265_s10  ;;  %s12606_s9 = scalar_lea.hbm %s12653_s5, %s8266_s26 }
  0x1c   : > { %275 = vst.msk [vmem:[#allocation2 + $0x90] sm:$0xff] %vm255_vm1, %v10377_v1  ;;  %276 = vst.msk [vmem:[#allocation2 + $0x98] sm:$0xff] %vm255_vm1, %v10377_v1  ;;  %v10697_v3 = vld [vmem:[%s10694_s13] sm:$0xff]  ;;  %v10700_v4 = vld [vmem:[%s10694_s13 + $0x8] sm:$0xff]  ;;  %s7568_s10 = scalar_lea.sflag [#allocation5], %s215_s23  ;;  %s10313_s11 = scalar_lea.vmem %s12608_s6, 128 }
  0x1d   : > { %278 = vst.msk [vmem:[#allocation2 + $0xa8] sm:$0xff] %vm255_vm1, %v10377_v1  ;;  %279 = vst.msk [vmem:[#allocation2 + $0xb0] sm:$0xff] %vm255_vm1, %v10377_v1  ;;  %v10703_v5 = vld [vmem:[%s10694_s13 + $0x10] sm:$0xff]  ;;  %v377_v7 = vld [vmem:[#allocation2 + $0x1] sm:$0xff]  ;;  %p10314_p11 = scmp.ne.s32.totalorder %s12608_s6, %s10313_s11  ;;  %s10317_s12 = sshll.u32 %s10378_s22, 4  ;;  %s10318_s12 = int_to_ptr.vmem [resolvable:$false] %s10317_s12 }
  0x1e   : > { %281 = vst.msk [vmem:[#allocation2 + $0xc0] sm:$0xff] %vm255_vm1, %v10377_v1  ;;  %282 = vst.msk [vmem:[#allocation2 + $0xc8] sm:$0xff] %vm255_vm1, %v10377_v1  ;;  %v10717_v9 = vld [vmem:[%s10694_s13 + $0x18] sm:$0xff]  ;;  %8863 = vmatprep.mubr.msk.f32.mxu0 %vm255_vm1, %v377_v7  ;;  %v10723_v10 = vld [vmem:[%s10694_s13 + $0x20] sm:$0xff]  ;;  %p10320_p0 = scmp.lt.s32.totalorder %s12608_s6, %s10318_s12 }
  0x1f   : > { %284 = vst.msk [vmem:[#allocation2 + $0xd8] sm:$0xff] %vm255_vm1, %v10377_v1  ;;  %285 = vst.msk [vmem:[#allocation2 + $0xe0] sm:$0xff] %vm255_vm1, %v10377_v1  ;;  %v10726_v11 = vld [vmem:[%s10694_s13 + $0x28] sm:$0xff]  ;;  %v10729_v12 = vld [vmem:[%s10694_s13 + $0x30] sm:$0xff]  ;;  %p10315_p12 = pnand %p10314_p11, %p10447_p5 }
  0x20   : > { %287 = vst.msk [vmem:[#allocation2 + $0xf0] sm:$0xff] %vm255_vm1, %v10377_v1  ;;  %288 = vst.msk [vmem:[#allocation2 + $0xf8] sm:$0xff] %vm255_vm1, %v10377_v1  ;;  %v10739_v13 = vld [vmem:[%s10694_s13 + $0x38] sm:$0xff]  ;;  %v10742_v14 = vld [vmem:[%s10694_s13 + $0x40] sm:$0xff] }
  0x21   : > { %290 = vst.msk [vmem:[#allocation2 + $0x108] sm:$0xff] %vm255_vm1, %v10377_v1  ;;  %291 = vst.msk [vmem:[#allocation2 + $0x110] sm:$0xff] %vm255_vm1, %v10377_v1  ;;  %v10745_v15 = vld [vmem:[%s10694_s13 + $0x48] sm:$0xff]  ;;  %v10756_v16 = vld [vmem:[%s10694_s13 + $0x50] sm:$0xff]  ;;  %p10316_p13 = pneg %p10315_p12 }
  0x22   : > { %293 = vst.msk [vmem:[#allocation2 + $0x120] sm:$0xff] %vm255_vm1, %v10377_v1  ;;  %294 = vst.msk [vmem:[#allocation2 + $0x128] sm:$0xff] %vm255_vm1, %v10377_v1  ;;  %v10759_v17 = vld [vmem:[%s10694_s13 + $0x58] sm:$0xff]  ;;  %v10762_v18 = vld [vmem:[%s10694_s13 + $0x60] sm:$0xff] }
  0x23   : > { %296 = vst.msk [vmem:[#allocation2 + $0x138] sm:$0xff] %vm255_vm1, %v10377_v1  ;;  %297 = vst.msk [vmem:[#allocation2 + $0x140] sm:$0xff] %vm255_vm1, %v10377_v1  ;;  %v10771_v19 = vld [vmem:[%s10694_s13 + $0x68] sm:$0xff]  ;;  %v10774_v20 = vld [vmem:[%s10694_s13 + $0x70] sm:$0xff] }
  0x24   : > { %299 = vst.msk [vmem:[#allocation2 + $0x150] sm:$0xff] %vm255_vm1, %v10377_v1  ;;  %300 = vst.msk [vmem:[#allocation2 + $0x158] sm:$0xff] %vm255_vm1, %v10377_v1  ;;  %v10777_v21 = vld [vmem:[%s10694_s13 + $0x78] sm:$0xff]  ;;  %v10788_v22 = vld [vmem:[%s10694_s13 + $0x80] sm:$0xff] }
  0x25   : > { %302 = vst.msk [vmem:[#allocation2 + $0x168] sm:$0xff] %vm255_vm1, %v10377_v1  ;;  %303 = vst.msk [vmem:[#allocation2 + $0x170] sm:$0xff] %vm255_vm1, %v10377_v1  ;;  %v10791_v23 = vld [vmem:[%s10694_s13 + $0x88] sm:$0xff]  ;;  %v10794_v24 = vld [vmem:[%s10694_s13 + $0x90] sm:$0xff] }
  0x26   : > { %305 = vst.msk [vmem:[#allocation2 + $0x180] sm:$0xff] %vm255_vm1, %v10377_v1  ;;  %306 = vst.msk [vmem:[#allocation2 + $0x188] sm:$0xff] %vm255_vm1, %v10377_v1  ;;  %v10803_v25 = vld [vmem:[%s10694_s13 + $0x98] sm:$0xff]  ;;  %v10806_v26 = vld [vmem:[%s10694_s13 + $0xa0] sm:$0xff] }
  0x27   : > { %308 = vst.msk [vmem:[#allocation2 + $0x198] sm:$0xff] %vm255_vm1, %v10377_v1  ;;  %309 = vst.msk [vmem:[#allocation2 + $0x1a0] sm:$0xff] %vm255_vm1, %v10377_v1  ;;  %v10809_v27 = vld [vmem:[%s10694_s13 + $0xa8] sm:$0xff]  ;;  %v10826_v31 = vld [vmem:[%s10694_s13 + $0xb0] sm:$0xff] }
  0x28   : > { %3862 = vst.msk [vmem:[#allocation3] sm:$0xff] %vm255_vm1, %v10377_v1  ;;  %3863 = vst.msk [vmem:[#allocation3 + $0x8] sm:$0xff] %vm255_vm1, %v10377_v1  ;;  %v10829_v32 = vld [vmem:[%s10694_s13 + $0xb8] sm:$0xff]  ;;  %v10852_v37 = vld [vmem:[%s10694_s13 + $0xc0] sm:$0xff] }
  0x29   : > { %3865 = vst.msk [vmem:[#allocation3 + $0x18] sm:$0xff] %vm255_vm1, %v10377_v1  ;;  %3866 = vst.msk [vmem:[#allocation3 + $0x20] sm:$0xff] %vm255_vm1, %v10377_v1  ;;  %v10855_v38 = vld [vmem:[%s10694_s13 + $0xc8] sm:$0xff]  ;;  %v10858_v39 = vld [vmem:[%s10694_s13 + $0xd0] sm:$0xff] }
  0x2a   : > { %3868 = vst.msk [vmem:[#allocation3 + $0x30] sm:$0xff] %vm255_vm1, %v10377_v1  ;;  %3869 = vst.msk [vmem:[#allocation3 + $0x38] sm:$0xff] %vm255_vm1, %v10377_v1  ;;  %v10867_v40 = vld [vmem:[%s10694_s13 + $0xd8] sm:$0xff]  ;;  %v10874_v41 = vld [vmem:[%s10694_s13 + $0xe0] sm:$0xff] }
  0x2b   : > { %3871 = vst.msk [vmem:[#allocation3 + $0x48] sm:$0xff] %vm255_vm1, %v10377_v1  ;;  %3872 = vst.msk [vmem:[#allocation3 + $0x50] sm:$0xff] %vm255_vm1, %v10377_v1  ;;  %v10877_v42 = vld [vmem:[%s10694_s13 + $0xe8] sm:$0xff] }
  0x2c   : > { %3874 = vst.msk [vmem:[#allocation3 + $0x60] sm:$0xff] %vm255_vm1, %v10377_v1  ;;  %3875 = vst.msk [vmem:[#allocation3 + $0x68] sm:$0xff] %vm255_vm1, %v10377_v1  ;;  %v345_v7 = vld [vmem:[#allocation2 + $0x8] sm:$0xff] }
  0x2d   : > { %3877 = vst.msk [vmem:[#allocation3 + $0x78] sm:$0xff] %vm255_vm1, %v10377_v1  ;;  %3878 = vst.msk [vmem:[#allocation3 + $0x80] sm:$0xff] %vm255_vm1, %v10377_v1 }
  0x2e   : > { %3880 = vst.msk [vmem:[#allocation3 + $0x90] sm:$0xff] %vm255_vm1, %v10377_v1  ;;  %3881 = vst.msk [vmem:[#allocation3 + $0x98] sm:$0xff] %vm255_vm1, %v10377_v1 }
  0x2f   : > { %3883 = vst.msk [vmem:[#allocation3 + $0xa8] sm:$0xff] %vm255_vm1, %v10377_v1  ;;  %3884 = vst.msk [vmem:[#allocation3 + $0xb0] sm:$0xff] %vm255_vm1, %v10377_v1 }
  0x30   : > { %3886 = vst.msk [vmem:[#allocation3 + $0xc0] sm:$0xff] %vm255_vm1, %v10377_v1  ;;  %3887 = vst.msk [vmem:[#allocation3 + $0xc8] sm:$0xff] %vm255_vm1, %v10377_v1 }
  0x31   : > { %3889 = vst.msk [vmem:[#allocation3 + $0xd8] sm:$0xff] %vm255_vm1, %v10377_v1  ;;  %3890 = vst.msk [vmem:[#allocation3 + $0xe0] sm:$0xff] %vm255_vm1, %v10377_v1 }
  0x32   : > { %3892 = vst.msk [vmem:[#allocation3 + $0xf0] sm:$0xff] %vm255_vm1, %v10377_v1  ;;  %3893 = vst.msk [vmem:[#allocation3 + $0xf8] sm:$0xff] %vm255_vm1, %v10377_v1 }
  0x33   : > { %3895 = vst.msk [vmem:[#allocation3 + $0x108] sm:$0xff] %vm255_vm1, %v10377_v1  ;;  %3896 = vst.msk [vmem:[#allocation3 + $0x110] sm:$0xff] %vm255_vm1, %v10377_v1 }
  0x34   : > { %3898 = vst.msk [vmem:[#allocation3 + $0x120] sm:$0xff] %vm255_vm1, %v10377_v1  ;;  %3899 = vst.msk [vmem:[#allocation3 + $0x128] sm:$0xff] %vm255_vm1, %v10377_v1 }
  0x35   : > { %3901 = vst.msk [vmem:[#allocation3 + $0x138] sm:$0xff] %vm255_vm1, %v10377_v1  ;;  %3902 = vst.msk [vmem:[#allocation3 + $0x140] sm:$0xff] %vm255_vm1, %v10377_v1 }
  0x36   : > { %3904 = vst.msk [vmem:[#allocation3 + $0x150] sm:$0xff] %vm255_vm1, %v10377_v1  ;;  %3905 = vst.msk [vmem:[#allocation3 + $0x158] sm:$0xff] %vm255_vm1, %v10377_v1 }
  0x37   : > { %3907 = vst.msk [vmem:[#allocation3 + $0x168] sm:$0xff] %vm255_vm1, %v10377_v1  ;;  %3908 = vst.msk [vmem:[#allocation3 + $0x170] sm:$0xff] %vm255_vm1, %v10377_v1 }
  0x38   : > { %3910 = vst.msk [vmem:[#allocation3 + $0x180] sm:$0xff] %vm255_vm1, %v10377_v1  ;;  %3911 = vst.msk [vmem:[#allocation3 + $0x188] sm:$0xff] %vm255_vm1, %v10377_v1 }
  0x39   : > { %3913 = vst.msk [vmem:[#allocation3 + $0x198] sm:$0xff] %vm255_vm1, %v10377_v1  ;;  %3914 = vst.msk [vmem:[#allocation3 + $0x1a0] sm:$0xff] %vm255_vm1, %v10377_v1 }
  0x3a   : > { %259 = vst.msk [vmem:[#allocation2 + $0x10] sm:$0x3] %vm258_vm2, %v10377_v1  ;;  %262 = vst.msk [vmem:[#allocation2 + $0x28] sm:$0x3] %vm258_vm2, %v10377_v1 }
  0x3b   : > { %265 = vst.msk [vmem:[#allocation2 + $0x40] sm:$0x3] %vm258_vm2, %v10377_v1  ;;  %268 = vst.msk [vmem:[#allocation2 + $0x58] sm:$0x3] %vm258_vm2, %v10377_v1 }
  0x3c   : > { %271 = vst.msk [vmem:[#allocation2 + $0x70] sm:$0x3] %vm258_vm2, %v10377_v1  ;;  %274 = vst.msk [vmem:[#allocation2 + $0x88] sm:$0x3] %vm258_vm2, %v10377_v1 }
  0x3d   : > { %277 = vst.msk [vmem:[#allocation2 + $0xa0] sm:$0x3] %vm258_vm2, %v10377_v1  ;;  %280 = vst.msk [vmem:[#allocation2 + $0xb8] sm:$0x3] %vm258_vm2, %v10377_v1 }
  0x3e   : > { %283 = vst.msk [vmem:[#allocation2 + $0xd0] sm:$0x3] %vm258_vm2, %v10377_v1  ;;  %286 = vst.msk [vmem:[#allocation2 + $0xe8] sm:$0x3] %vm258_vm2, %v10377_v1 }
  0x3f   : > { %289 = vst.msk [vmem:[#allocation2 + $0x100] sm:$0x3] %vm258_vm2, %v10377_v1  ;;  %292 = vst.msk [vmem:[#allocation2 + $0x118] sm:$0x3] %vm258_vm2, %v10377_v1 }
  0x40   : > { %295 = vst.msk [vmem:[#allocation2 + $0x130] sm:$0x3] %vm258_vm2, %v10377_v1  ;;  %298 = vst.msk [vmem:[#allocation2 + $0x148] sm:$0x3] %vm258_vm2, %v10377_v1 }
  0x41   : > { %301 = vst.msk [vmem:[#allocation2 + $0x160] sm:$0x3] %vm258_vm2, %v10377_v1  ;;  %304 = vst.msk [vmem:[#allocation2 + $0x178] sm:$0x3] %vm258_vm2, %v10377_v1  ;;  %v378_v8 = vld [vmem:[#allocation2 + $0x9] sm:$0xff] }
  0x42   : > { %307 = vst.msk [vmem:[#allocation2 + $0x190] sm:$0x3] %vm258_vm2, %v10377_v1  ;;  %310 = vst.msk [vmem:[#allocation2 + $0x1a8] sm:$0x3] %vm258_vm2, %v10377_v1  ;;  %8864 = vmatmul.mubr.msk.f32.vlgmr.msra.gmra.mrb[0].mxu0 %vm255_vm1, %v378_v8 }
  0x43   : > { %3864 = vst.msk [vmem:[#allocation3 + $0x10] sm:$0x3] %vm258_vm2, %v10377_v1  ;;  %3867 = vst.msk [vmem:[#allocation3 + $0x28] sm:$0x3] %vm258_vm2, %v10377_v1  ;;  %8912 = vmatpush3.msk.msra.mxu0 %vm507_vm0, %v10611_v2  ;;  %v344_v2 = vld [vmem:[#allocation2] sm:$0xff] }
  0x44   : > { %3870 = vst.msk [vmem:[#allocation3 + $0x40] sm:$0x3] %vm258_vm2, %v10377_v1  ;;  %3873 = vst.msk [vmem:[#allocation3 + $0x58] sm:$0x3] %vm258_vm2, %v10377_v1  ;;  %8961 = vmatprep.subr.msk.mxu0 %vm507_vm0, %v10708_v6 }
  0x45   : > { %3876 = vst.msk [vmem:[#allocation3 + $0x70] sm:$0x3] %vm258_vm2, %v10377_v1  ;;  %3879 = vst.msk [vmem:[#allocation3 + $0x88] sm:$0x3] %vm258_vm2, %v10377_v1 }
  0x46   : > { %3882 = vst.msk [vmem:[#allocation3 + $0xa0] sm:$0x3] %vm258_vm2, %v10377_v1  ;;  %3885 = vst.msk [vmem:[#allocation3 + $0xb8] sm:$0x3] %vm258_vm2, %v10377_v1 }
  0x47   : > { %3888 = vst.msk [vmem:[#allocation3 + $0xd0] sm:$0x3] %vm258_vm2, %v10377_v1  ;;  %3891 = vst.msk [vmem:[#allocation3 + $0xe8] sm:$0x3] %vm258_vm2, %v10377_v1 }
  0x48   : > { %3894 = vst.msk [vmem:[#allocation3 + $0x100] sm:$0x3] %vm258_vm2, %v10377_v1  ;;  %3897 = vst.msk [vmem:[#allocation3 + $0x118] sm:$0x3] %vm258_vm2, %v10377_v1 }
  0x49   : > { %3900 = vst.msk [vmem:[#allocation3 + $0x130] sm:$0x3] %vm258_vm2, %v10377_v1  ;;  %3903 = vst.msk [vmem:[#allocation3 + $0x148] sm:$0x3] %vm258_vm2, %v10377_v1 }
  0x4a   : > { %3906 = vst.msk [vmem:[#allocation3 + $0x160] sm:$0x3] %vm258_vm2, %v10377_v1  ;;  %3909 = vst.msk [vmem:[#allocation3 + $0x178] sm:$0x3] %vm258_vm2, %v10377_v1 }
  0x4b   : > { %3912 = vst.msk [vmem:[#allocation3 + $0x190] sm:$0x3] %vm258_vm2, %v10377_v1  ;;  %3915 = vst.msk [vmem:[#allocation3 + $0x1a8] sm:$0x3] %vm258_vm2, %v10377_v1 }
  0x4c   : > { %12801 = vst [vmem:[#allocation7_spill] sm:$0xff] %v10697_v3  ;;  %12802 = vst [vmem:[#allocation8_spill] sm:$0xff] %v10700_v4 }
  0x4d   : > { %12803 = vst [vmem:[#allocation9_spill] sm:$0xff] %v10703_v5  ;;  %312 = vst.msk [vmem:[#allocation2 + $0x19] sm:$0xff] %vm255_vm1, %v10697_v3 }
  0x4e   : > { %313 = vst.msk [vmem:[#allocation2 + $0x21] sm:$0xff] %vm255_vm1, %v10700_v4  ;;  %314 = vst.msk [vmem:[#allocation2 + $0x31] sm:$0xff] %vm255_vm1, %v10703_v5  ;;  %v1060_v4 = vld [vmem:[#allocation2 + $0x2] sm:$0xff] }
  0x4f   : > { %12804 = vst [vmem:[#allocation10_spill] sm:$0xff] %v10717_v9  ;;  %315 = vst.msk [vmem:[#allocation2 + $0x39] sm:$0xff] %vm255_vm1, %v10717_v9 }
  0x50   : > { %12805 = vst [vmem:[#allocation11_spill] sm:$0xff] %v10723_v10  ;;  %12806 = vst [vmem:[#allocation12_spill] sm:$0xff] %v10726_v11 }
  0x51   : > { %12807 = vst [vmem:[#allocation13_spill] sm:$0xff] %v10729_v12  ;;  %316 = vst.msk [vmem:[#allocation2 + $0x49] sm:$0xff] %vm255_vm1, %v10723_v10  ;;  %v11098_v10 = vld [vmem:[%s10694_s13 + $0xf8] sm:$0xff] }
  0x52   : > { %317 = vst.msk [vmem:[#allocation2 + $0x51] sm:$0xff] %vm255_vm1, %v10726_v11  ;;  %318 = vst.msk [vmem:[#allocation2 + $0x61] sm:$0xff] %vm255_vm1, %v10729_v12  ;;  %v11093_v11 = vld [vmem:[%s10694_s13 + $0xf0] sm:$0xff]  ;;  %s10319_s13 = scalar_lea.vmem %s10318_s12, 256 }
  0x53   : > { %12808 = vst [vmem:[#allocation14_spill] sm:$0xff] %v10739_v13  ;;  %12809 = vst [vmem:[#allocation15_spill] sm:$0xff] %v10742_v14  ;;  %p10321_p1 = scmp.lt.s32.totalorder %s10319_s13, %s10313_s11 }
  0x54   : > { %12810 = vst [vmem:[#allocation16_spill] sm:$0xff] %v10745_v15  ;;  %319 = vst.msk [vmem:[#allocation2 + $0x69] sm:$0xff] %vm255_vm1, %v10739_v13  ;;  %v10811_v28 = vld [vmem:[#allocation2 + $0x19] sm:$0xff] }
  0x55   : > { %320 = vst.msk [vmem:[#allocation2 + $0x79] sm:$0xff] %vm255_vm1, %v10742_v14  ;;  %321 = vst.msk [vmem:[#allocation2 + $0x81] sm:$0xff] %vm255_vm1, %v10745_v15  ;;  %v10813_v29 = vld [vmem:[#allocation2 + $0x21] sm:$0xff]  ;;  %v10815_v30 = vld [vmem:[#allocation2 + $0x31] sm:$0xff]  ;;  %8866 = vmatprep.mubr.msk.f32.mxu0 %vm255_vm1, %v10811_v28  ;;  %p10322_p2 = por %p10321_p1, %p10320_p0 }
  0x56   : > { %12811 = vst [vmem:[#allocation17_spill] sm:$0xff] %v10756_v16  ;;  %12812 = vst [vmem:[#allocation18_spill] sm:$0xff] %v10759_v17  ;;  %8867 = vmatmul.mubr.msk.f32.gmra.mrb[2].mxu0 %vm255_vm1, %v10813_v29  ;;  %v10839_v33 = vld [vmem:[#allocation2 + $0x39] sm:$0xff] }
  0x57   : > { %12813 = vst [vmem:[#allocation19_spill] sm:$0xff] %v10762_v18  ;;  %322 = vst.msk [vmem:[#allocation2 + $0x91] sm:$0xff] %vm255_vm1, %v10756_v16  ;;  %8869 = vmatprep.mubr.msk.f32.mxu0 %vm255_vm1, %v10815_v30  ;;  %v10978_v8 = vld [vmem:[#allocation2 + $0x18] sm:$0xff]  ;;  %p10323_p3 = pnand %p10322_p2, %p10316_p13 }
  0x58   : > { %323 = vst.msk [vmem:[#allocation2 + $0x99] sm:$0xff] %vm255_vm1, %v10759_v17  ;;  %324 = vst.msk [vmem:[#allocation2 + $0xa9] sm:$0xff] %vm255_vm1, %v10762_v18  ;;  %v10841_v34 = vld [vmem:[#allocation2 + $0x49] sm:$0xff]  ;;  %v11119_v3 = vld [vmem:[#allocation2 + $0x1a] sm:$0xff] }
  0x59   : > { %12814 = vst [vmem:[#allocation20_spill] sm:$0xff] %v10771_v19  ;;  %12815 = vst [vmem:[#allocation21_spill] sm:$0xff] %v10774_v20  ;;  %v10847_v35 = vld [vmem:[#allocation2 + $0x51] sm:$0xff]  ;;  %v10849_v36 = vld [vmem:[#allocation2 + $0x61] sm:$0xff] }
  0x5a   : > { %12816 = vst [vmem:[#allocation22_spill] sm:$0xff] %v10777_v21  ;;  %325 = vst.msk [vmem:[#allocation2 + $0xb1] sm:$0xff] %vm255_vm1, %v10771_v19  ;;  %8870 = vmatmul.mubr.msk.f32.gmra.mrb[4].mxu0 %vm255_vm1, %v10839_v33 }
  0x5b   : > { %326 = vst.msk [vmem:[#allocation2 + $0xc1] sm:$0xff] %vm255_vm1, %v10774_v20  ;;  %327 = vst.msk [vmem:[#allocation2 + $0xc9] sm:$0xff] %vm255_vm1, %v10777_v21  ;;  %8872 = vmatprep.mubr.msk.f32.mxu0 %vm255_vm1, %v10841_v34  ;;  %v10881_v43 = vld [vmem:[#allocation2 + $0x69] sm:$0xff] }
  0x5c   : > { %12817 = vst [vmem:[#allocation23_spill] sm:$0xff] %v10788_v22  ;;  %12818 = vst [vmem:[#allocation24_spill] sm:$0xff] %v10791_v23  ;;  %v10887_v44 = vld [vmem:[#allocation2 + $0x79] sm:$0xff]  ;;  %v10893_v45 = vld [vmem:[#allocation2 + $0x81] sm:$0xff] }
  0x5d   : > { %12819 = vst [vmem:[#allocation25_spill] sm:$0xff] %v10794_v24  ;;  %328 = vst.msk [vmem:[#allocation2 + $0xd9] sm:$0xff] %vm255_vm1, %v10788_v22 }
  0x5e   : > { %329 = vst.msk [vmem:[#allocation2 + $0xe1] sm:$0xff] %vm255_vm1, %v10791_v23  ;;  %330 = vst.msk [vmem:[#allocation2 + $0xf1] sm:$0xff] %vm255_vm1, %v10794_v24  ;;  %8873 = vmatmul.mubr.msk.f32.gmra.mrb[6].mxu0 %vm255_vm1, %v10847_v35  ;;  %v10895_v46 = vld [vmem:[#allocation2 + $0x91] sm:$0xff] }
  0x5f   : > { %12820 = vst [vmem:[#allocation26_spill] sm:$0xff] %v10803_v25  ;;  %12821 = vst [vmem:[#allocation27_spill] sm:$0xff] %v10806_v26  ;;  %8875 = vmatprep.mubr.msk.f32.mxu0 %vm255_vm1, %v10849_v36  ;;  %v10901_v47 = vld [vmem:[#allocation2 + $0x99] sm:$0xff]  ;;  %v10903_v48 = vld [vmem:[#allocation2 + $0xa9] sm:$0xff] }
  0x60   : > { %12822 = vst [vmem:[#allocation28_spill] sm:$0xff] %v10809_v27  ;;  %331 = vst.msk [vmem:[#allocation2 + $0xf9] sm:$0xff] %vm255_vm1, %v10803_v25  ;;  %v11026_v21 = vld [vmem:[#allocation2 + $0x90] sm:$0xff]  ;;  %v11034_v20 = vld [vmem:[#allocation2 + $0xa8] sm:$0xff] }
  0x61   : > { %332 = vst.msk [vmem:[#allocation2 + $0x109] sm:$0xff] %vm255_vm1, %v10806_v26  ;;  %333 = vst.msk [vmem:[#allocation2 + $0x111] sm:$0xff] %vm255_vm1, %v10809_v27  ;;  %v10909_v49 = vld [vmem:[#allocation2 + $0xb1] sm:$0xff] }
  0x62   : > { %12823 = vst [vmem:[#allocation29_spill] sm:$0xff] %v10826_v31  ;;  %12824 = vst [vmem:[#allocation30_spill] sm:$0xff] %v10829_v32  ;;  %8876 = vmatmul.mubr.msk.f32.gmra.mrb[8].mxu0 %vm255_vm1, %v10881_v43  ;;  %v10911_v50 = vld [vmem:[#allocation2 + $0xc1] sm:$0xff]  ;;  %v10917_v51 = vld [vmem:[#allocation2 + $0xc9] sm:$0xff] }
  0x63   : > { %334 = vst.msk [vmem:[#allocation2 + $0x121] sm:$0xff] %vm255_vm1, %v10826_v31  ;;  %335 = vst.msk [vmem:[#allocation2 + $0x129] sm:$0xff] %vm255_vm1, %v10829_v32  ;;  %8878 = vmatprep.mubr.msk.f32.mxu0 %vm255_vm1, %v10887_v44  ;;  %v11024_v32 = vld [vmem:[#allocation2 + $0x80] sm:$0xff]  ;;  %v11032_v31 = vld [vmem:[#allocation2 + $0x98] sm:$0xff] }
  0x64   : > { %12825 = vst [vmem:[#allocation31_spill] sm:$0xff] %v10852_v37  ;;  %12826 = vst [vmem:[#allocation32_spill] sm:$0xff] %v10855_v38  ;;  %v10919_v52 = vld [vmem:[#allocation2 + $0xd9] sm:$0xff]  ;;  %v11040_v27 = vld [vmem:[#allocation2 + $0xb0] sm:$0xff] }
  0x65   : > { %12827 = vst [vmem:[#allocation33_spill] sm:$0xff] %v10858_v39  ;;  %336 = vst.msk [vmem:[#allocation2 + $0x139] sm:$0xff] %vm255_vm1, %v10852_v37  ;;  %v10925_v53 = vld [vmem:[#allocation2 + $0xe1] sm:$0xff]  ;;  %v10927_v54 = vld [vmem:[#allocation2 + $0xf1] sm:$0xff] }
  0x66   : > { %337 = vst.msk [vmem:[#allocation2 + $0x141] sm:$0xff] %vm255_vm1, %v10855_v38  ;;  %338 = vst.msk [vmem:[#allocation2 + $0x151] sm:$0xff] %vm255_vm1, %v10858_v39  ;;  %8879 = vmatmul.mubr.msk.f32.gmra.mrb[10].mxu0 %vm255_vm1, %v10893_v45  ;;  %v11010_v39 = vld [vmem:[#allocation2 + $0x60] sm:$0xff]  ;;  %v11016_v38 = vld [vmem:[#allocation2 + $0x68] sm:$0xff] }
  0x67   : > { %12828 = vst [vmem:[#allocation34_spill] sm:$0xff] %v10867_v40  ;;  %339 = vst.msk [vmem:[#allocation2 + $0x159] sm:$0xff] %vm255_vm1, %v10867_v40  ;;  %8881 = vmatprep.mubr.msk.f32.mxu0 %vm255_vm1, %v10895_v46  ;;  %v10933_v55 = vld [vmem:[#allocation2 + $0xf9] sm:$0xff]  ;;  %v10992_v40 = vld [vmem:[#allocation2 + $0x30] sm:$0xff] }
  0x68   : > { %12829 = vst [vmem:[#allocation35_spill] sm:$0xff] %v10874_v41  ;;  %12830 = vst [vmem:[#allocation36_spill] sm:$0xff] %v10877_v42  ;;  %v10935_v56 = vld [vmem:[#allocation2 + $0x109] sm:$0xff]  ;;  %v10941_v57 = vld [vmem:[#allocation2 + $0x111] sm:$0xff] }
  0x69   : > { %340 = vst.msk [vmem:[#allocation2 + $0x169] sm:$0xff] %vm255_vm1, %v10874_v41  ;;  %341 = vst.msk [vmem:[#allocation2 + $0x171] sm:$0xff] %vm255_vm1, %v10877_v42  ;;  %v10983_v42 = vld [vmem:[%s12649_s1 + $0xc] sm:$0xf]  ;;  %v10990_v41 = vld [vmem:[#allocation2 + $0x20] sm:$0xff] }
  0x6a   : > { %8882 = vmatmul.mubr.msk.f32.gmra.mrb[12].mxu0 %vm255_vm1, %v10901_v47  ;;  %v10943_v58 = vld [vmem:[#allocation2 + $0x121] sm:$0xff]  ;;  %v10949_v59 = vld [vmem:[#allocation2 + $0x129] sm:$0xff]  ;;  %v11018_v37 = vld [vmem:[#allocation2 + $0x78] sm:$0xff]  ;;  %12835 = vst [vmem:[#allocation41_spill] sm:$0xff] %v11093_v11 }
  0x6b   : > { %8884 = vmatprep.mubr.msk.f32.mxu0 %vm255_vm1, %v10903_v48  ;;  %v11042_v19 = vld [vmem:[#allocation2 + $0xc0] sm:$0xff]  ;;  %v11048_v26 = vld [vmem:[#allocation2 + $0xc8] sm:$0xff]  ;;  %v11050_v18 = vld [vmem:[#allocation2 + $0xd8] sm:$0xff]  ;;  %342 = vst.msk [vmem:[#allocation2 + $0x181] sm:$0xff] %vm255_vm1, %v11093_v11 }
  0x6c   : > { %v10951_v60 = vld [vmem:[#allocation2 + $0x139] sm:$0xff]  ;;  %v11058_v17 = vld [vmem:[#allocation2 + $0xf0] sm:$0xff]  ;;  %v11066_v16 = vld [vmem:[#allocation2 + $0x108] sm:$0xff]  ;;  %12836 = vst [vmem:[#allocation42_spill] sm:$0xff] %v11098_v10 }
  0x6d   : > { %v10957_v61 = vld [vmem:[#allocation2 + $0x141] sm:$0xff]  ;;  %v10959_v62 = vld [vmem:[#allocation2 + $0x151] sm:$0xff]  ;;  %343 = vst.msk [vmem:[#allocation2 + $0x189] sm:$0xff] %vm255_vm1, %v11098_v10  ;;  %12837 = vst [vmem:[#allocation43_spill] sm:$0xff] %v11119_v3 }
  0x6e   : > { %8885 = vmatmul.mubr.msk.f32.gmra.mrb[14].mxu0 %vm255_vm1, %v10909_v49  ;;  %12831 = vst [vmem:[#allocation37_spill] sm:$0xff] %v10959_v62  ;;  %v10965_v63 = vld [vmem:[#allocation2 + $0x159] sm:$0xff]  ;;  %v11072_v23 = vld [vmem:[#allocation2 + $0x110] sm:$0xff]  ;;  %v11080_v22 = vld [vmem:[#allocation2 + $0x128] sm:$0xff] }
  0x6f   : > { %8887 = vmatprep.mubr.msk.f32.mxu0 %vm255_vm1, %v10911_v50  ;;  %12832 = vst [vmem:[#allocation38_spill] sm:$0xff] %v10965_v63  ;;  %v11056_v25 = vld [vmem:[#allocation2 + $0xe0] sm:$0xff]  ;;  %v11064_v24 = vld [vmem:[#allocation2 + $0xf8] sm:$0xff]  ;;  %v11090_v12 = vld [vmem:[#allocation2 + $0x150] sm:$0xff] }
  0x70   : > { %v10967_v0 = vld [vmem:[#allocation2 + $0x169] sm:$0xff]  ;;  %v10973_v1 = vld [vmem:[#allocation2 + $0x171] sm:$0xff]  ;;  %v11074_v15 = vld [vmem:[#allocation2 + $0x120] sm:$0xff] }
  0x71   : > { %12833 = vst [vmem:[#allocation39_spill] sm:$0xff] %v10967_v0  ;;  %12834 = vst [vmem:[#allocation40_spill] sm:$0xff] %v10973_v1  ;;  %v11082_v14 = vld [vmem:[#allocation2 + $0x138] sm:$0xff]  ;;  %v11088_v13 = vld [vmem:[#allocation2 + $0x140] sm:$0xff] }
  0x72   : > { %8888 = vmatmul.mubr.msk.f32.gmra.mrb[16].mxu0 %vm255_vm1, %v10917_v51  ;;  %v11106_v9 = vld [vmem:[#allocation2 + $0x158] sm:$0xff]  ;;  %v11108_v5 = vld [vmem:[#allocation2 + $0x168] sm:$0xff]  ;;  %v11114_v11 = vld [vmem:[#allocation2 + $0x170] sm:$0xff] }
  0x73   : > { %8890 = vmatprep.mubr.msk.f32.mxu0 %vm255_vm1, %v10919_v52  ;;  %v1061_v10 = vld [vmem:[#allocation2 + $0xa] sm:$0xff] }
  0x76   : > { %8891 = vmatmul.mubr.msk.f32.gmra.mrb[18].mxu0 %vm255_vm1, %v10925_v53 }
  0x77   : > { %8893 = vmatprep.mubr.msk.f32.mxu0 %vm255_vm1, %v10927_v54 }
  0x7a   : > { %8894 = vmatmul.mubr.msk.f32.gmra.mrb[20].mxu0 %vm255_vm1, %v10933_v55 }
  0x7b   : > { %8896 = vmatprep.mubr.msk.f32.mxu0 %vm255_vm1, %v10935_v56 }
  0x7e   : > { %8897 = vmatmul.mubr.msk.f32.gmra.mrb[22].mxu0 %vm255_vm1, %v10941_v57 }
  0x7f   : > { %8899 = vmatprep.mubr.msk.f32.mxu0 %vm255_vm1, %v10943_v58 }
  0x82   : > { %8900 = vmatmul.mubr.msk.f32.gmra.mrb[24].mxu0 %vm255_vm1, %v10949_v59 }
  0x83   : > { %8902 = vmatprep.mubr.msk.f32.mxu0 %vm255_vm1, %v10951_v60 }
  0x86   : > { %8903 = vmatmul.mubr.msk.f32.gmra.mrb[26].mxu0 %vm255_vm1, %v10957_v61 }
  0x87   : > { %8905 = vmatprep.mubr.msk.f32.mxu0 %vm255_vm1, %v10959_v62 }
  0x8a   : > { %8906 = vmatmul.mubr.msk.f32.gmra.mrb[28].mxu0 %vm255_vm1, %v10965_v63  ;;  %v11133_v63 = vld [vmem:[#allocation2 + $0x32] sm:$0xff] }
  0x8b   : > { %8908 = vmatprep.mubr.msk.f32.mxu0 %vm255_vm1, %v10967_v0  ;;  %v11131_v0 = vld [vmem:[#allocation2 + $0x22] sm:$0xff]  ;;  %12839 = vst [vmem:[#allocation45_spill] sm:$0xff] %v11133_v63 }
  0x8c   : > { %12838 = vst [vmem:[#allocation44_spill] sm:$0xff] %v11131_v0 }
  0x8e   : > { %8909 = vmatmul.mubr.msk.f32.gmra.mrb[30].mxu0 %vm255_vm1, %v10973_v1  ;;  %v11124_v1 = vld [vmem:[%s12649_s1 + $0x10] sm:$0xf] }
  0x8f   : > { %8913 = vmatprep.mubr.msk.f32.mxu0 %vm255_vm1, %v344_v2  ;;  %v11000_v2 = vld [vmem:[#allocation2 + $0x38] sm:$0xff] }
  0x92   : > { %8914 = vmatmul.mubr.msk.f32.vlgmr.msra.gmra.mrb[0].mxu0 %vm255_vm1, %v345_v7  ;;  %v11002_v7 = vld [vmem:[#allocation2 + $0x48] sm:$0xff] }
  0x93   : > { %8962 = vmatpush3.msk.msra.mxu0 %vm507_vm0, %v10708_v6  ;;  %8916 = vmatprep.mubr.msk.f32.mxu0 %vm255_vm1, %v10978_v8  ;;  %v11008_v6 = vld [vmem:[#allocation2 + $0x50] sm:$0xff] }
  0x94   : > { %9011 = vmatprep.subr.msk.mxu0 %vm507_vm0, %v10983_v42 }
  0x96   : > { %8917 = vmatmul.mubr.msk.f32.gmra.mrb[2].mxu0 %vm255_vm1, %v10990_v41 }
  0x97   : > { %8919 = vmatprep.mubr.msk.f32.mxu0 %vm255_vm1, %v10992_v40 }
  0x9a   : > { %8920 = vmatmul.mubr.msk.f32.gmra.mrb[4].mxu0 %vm255_vm1, %v11000_v2 }
  0x9b   : > { %8922 = vmatprep.mubr.msk.f32.mxu0 %vm255_vm1, %v11002_v7 }
  0x9e   : > { %8923 = vmatmul.mubr.msk.f32.gmra.mrb[6].mxu0 %vm255_vm1, %v11008_v6 }
  0x9f   : > { %8925 = vmatprep.mubr.msk.f32.mxu0 %vm255_vm1, %v11010_v39 }
  0xa2   : > { %8926 = vmatmul.mubr.msk.f32.gmra.mrb[8].mxu0 %vm255_vm1, %v11016_v38 }
  0xa3   : > { %8928 = vmatprep.mubr.msk.f32.mxu0 %vm255_vm1, %v11018_v37 }
  0xa6   : > { %8929 = vmatmul.mubr.msk.f32.gmra.mrb[10].mxu0 %vm255_vm1, %v11024_v32 }
  0xa7   : > { %8931 = vmatprep.mubr.msk.f32.mxu0 %vm255_vm1, %v11026_v21 }
  0xaa   : > { %8932 = vmatmul.mubr.msk.f32.gmra.mrb[12].mxu0 %vm255_vm1, %v11032_v31 }
  0xab   : > { %8934 = vmatprep.mubr.msk.f32.mxu0 %vm255_vm1, %v11034_v20 }
  0xae   : > { %8935 = vmatmul.mubr.msk.f32.gmra.mrb[14].mxu0 %vm255_vm1, %v11040_v27 }
  0xaf   : > { %8937 = vmatprep.mubr.msk.f32.mxu0 %vm255_vm1, %v11042_v19 }
  0xb2   : > { %8938 = vmatmul.mubr.msk.f32.gmra.mrb[16].mxu0 %vm255_vm1, %v11048_v26 }
  0xb3   : > { %8940 = vmatprep.mubr.msk.f32.mxu0 %vm255_vm1, %v11050_v18 }
  0xb6   : > { %8941 = vmatmul.mubr.msk.f32.gmra.mrb[18].mxu0 %vm255_vm1, %v11056_v25 }
  0xb7   : > { %8943 = vmatprep.mubr.msk.f32.mxu0 %vm255_vm1, %v11058_v17 }
  0xba   : > { %8944 = vmatmul.mubr.msk.f32.gmra.mrb[20].mxu0 %vm255_vm1, %v11064_v24 }
  0xbb   : > { %8946 = vmatprep.mubr.msk.f32.mxu0 %vm255_vm1, %v11066_v16 }
  0xbe   : > { %8947 = vmatmul.mubr.msk.f32.gmra.mrb[22].mxu0 %vm255_vm1, %v11072_v23 }
  0xbf   : > { %8949 = vmatprep.mubr.msk.f32.mxu0 %vm255_vm1, %v11074_v15 }
  0xc2   : > { %8950 = vmatmul.mubr.msk.f32.gmra.mrb[24].mxu0 %vm255_vm1, %v11080_v22 }
  0xc3   : > { %8952 = vmatprep.mubr.msk.f32.mxu0 %vm255_vm1, %v11082_v14 }
  0xc6   : > { %8953 = vmatmul.mubr.msk.f32.gmra.mrb[26].mxu0 %vm255_vm1, %v11088_v13 }
  0xc7   : > { %8955 = vmatprep.mubr.msk.f32.mxu0 %vm255_vm1, %v11090_v12 }
  0xca   : > { %8956 = vmatmul.mubr.msk.f32.gmra.mrb[28].mxu0 %vm255_vm1, %v11106_v9 }
  0xcb   : > { %8958 = vmatprep.mubr.msk.f32.mxu0 %vm255_vm1, %v11108_v5 }
  0xce   : > { %8959 = vmatmul.mubr.msk.f32.gmra.mrb[30].mxu0 %vm255_vm1, %v11114_v11 }
  0xcf   : > { %8963 = vmatprep.mubr.msk.f32.mxu0 %vm255_vm1, %v1060_v4  ;;  %v11141_v4 = vld [vmem:[#allocation2 + $0x3a] sm:$0xff] }
  0xd0   : > { %12840 = vst [vmem:[#allocation46_spill] sm:$0xff] %v11141_v4 }
  0xd2   : > { %8964 = vmatmul.mubr.msk.f32.vlgmr.msra.gmra.mrb[0].mxu0 %vm255_vm1, %v1061_v10  ;;  %v11143_v10 = vld [vmem:[#allocation2 + $0x4a] sm:$0xff] }
  0xd3   : > { %9012 = vmatpush3.msk.msra.mxu0 %vm507_vm0, %v10983_v42  ;;  %8966 = vmatprep.mubr.msk.f32.mxu0 %vm255_vm1, %v11119_v3  ;;  %12841 = vst [vmem:[#allocation47_spill] sm:$0xff] %v11143_v10  ;;  %v11149_v42 = vld [vmem:[#allocation2 + $0x52] sm:$0xff]  ;;  %v11151_v3 = vld [vmem:[#allocation2 + $0x62] sm:$0xff] }
  0xd4   : > { %9061 = vmatprep.subr.msk.mxu0 %vm507_vm0, %v11124_v1  ;;  %12842 = vst [vmem:[#allocation48_spill] sm:$0xff] %v11149_v42  ;;  %12843 = vst [vmem:[#allocation49_spill] sm:$0xff] %v11151_v3 }
  0xd6   : > { %8967 = vmatmul.mubr.msk.f32.gmra.mrb[2].mxu0 %vm255_vm1, %v11131_v0  ;;  %v11159_v0 = vld [vmem:[#allocation2 + $0x7a] sm:$0xff] }
  0xd7   : > { %8969 = vmatprep.mubr.msk.f32.mxu0 %vm255_vm1, %v11133_v63  ;;  %v11157_v63 = vld [vmem:[#allocation2 + $0x6a] sm:$0xff]  ;;  %12845 = vst [vmem:[#allocation51_spill] sm:$0xff] %v11159_v0 }
  0xd8   : > { %12844 = vst [vmem:[#allocation50_spill] sm:$0xff] %v11157_v63 }
  0xda   : > { %8970 = vmatmul.mubr.msk.f32.gmra.mrb[4].mxu0 %vm255_vm1, %v11141_v4  ;;  %v11167_v4 = vld [vmem:[#allocation2 + $0x92] sm:$0xff] }
  0xdb   : > { %8972 = vmatprep.mubr.msk.f32.mxu0 %vm255_vm1, %v11143_v10  ;;  %v11165_v10 = vld [vmem:[#allocation2 + $0x82] sm:$0xff]  ;;  %12847 = vst [vmem:[#allocation53_spill] sm:$0xff] %v11167_v4 }
  0xdc   : > { %12846 = vst [vmem:[#allocation52_spill] sm:$0xff] %v11165_v10 }
  0xde   : > { %8973 = vmatmul.mubr.msk.f32.gmra.mrb[6].mxu0 %vm255_vm1, %v11149_v42  ;;  %v11175_v42 = vld [vmem:[#allocation2 + $0xaa] sm:$0xff] }
  0xdf   : > { %8975 = vmatprep.mubr.msk.f32.mxu0 %vm255_vm1, %v11151_v3  ;;  %v11173_v3 = vld [vmem:[#allocation2 + $0x9a] sm:$0xff]  ;;  %12849 = vst [vmem:[#allocation55_spill] sm:$0xff] %v11175_v42 }
  0xe0   : > { %12848 = vst [vmem:[#allocation54_spill] sm:$0xff] %v11173_v3 }
  0xe2   : > { %8976 = vmatmul.mubr.msk.f32.gmra.mrb[8].mxu0 %vm255_vm1, %v11157_v63  ;;  %v11183_v63 = vld [vmem:[#allocation2 + $0xc2] sm:$0xff] }
  0xe3   : > { %8978 = vmatprep.mubr.msk.f32.mxu0 %vm255_vm1, %v11159_v0  ;;  %v11181_v0 = vld [vmem:[#allocation2 + $0xb2] sm:$0xff]  ;;  %12851 = vst [vmem:[#allocation57_spill] sm:$0xff] %v11183_v63 }
  0xe4   : > { %12850 = vst [vmem:[#allocation56_spill] sm:$0xff] %v11181_v0 }
  0xe6   : > { %8979 = vmatmul.mubr.msk.f32.gmra.mrb[10].mxu0 %vm255_vm1, %v11165_v10  ;;  %v11191_v10 = vld [vmem:[#allocation2 + $0xda] sm:$0xff] }
  0xe7   : > { %8981 = vmatprep.mubr.msk.f32.mxu0 %vm255_vm1, %v11167_v4  ;;  %v11189_v4 = vld [vmem:[#allocation2 + $0xca] sm:$0xff]  ;;  %12853 = vst [vmem:[#allocation59_spill] sm:$0xff] %v11191_v10 }
  0xe8   : > { %12852 = vst [vmem:[#allocation58_spill] sm:$0xff] %v11189_v4 }
  0xea   : > { %8982 = vmatmul.mubr.msk.f32.gmra.mrb[12].mxu0 %vm255_vm1, %v11173_v3  ;;  %v11199_v3 = vld [vmem:[#allocation2 + $0xf2] sm:$0xff] }
  0xeb   : > { %8984 = vmatprep.mubr.msk.f32.mxu0 %vm255_vm1, %v11175_v42  ;;  %v11197_v42 = vld [vmem:[#allocation2 + $0xe2] sm:$0xff]  ;;  %12855 = vst [vmem:[#allocation61_spill] sm:$0xff] %v11199_v3 }
  0xec   : > { %12854 = vst [vmem:[#allocation60_spill] sm:$0xff] %v11197_v42 }
  0xee   : > { %8985 = vmatmul.mubr.msk.f32.gmra.mrb[14].mxu0 %vm255_vm1, %v11181_v0  ;;  %v11207_v0 = vld [vmem:[#allocation2 + $0x10a] sm:$0xff] }
  0xef   : > { %8987 = vmatprep.mubr.msk.f32.mxu0 %vm255_vm1, %v11183_v63  ;;  %v11205_v63 = vld [vmem:[#allocation2 + $0xfa] sm:$0xff]  ;;  %12857 = vst [vmem:[#allocation63_spill] sm:$0xff] %v11207_v0 }
  0xf0   : > { %12856 = vst [vmem:[#allocation62_spill] sm:$0xff] %v11205_v63 }
  0xf2   : > { %8988 = vmatmul.mubr.msk.f32.gmra.mrb[16].mxu0 %vm255_vm1, %v11189_v4  ;;  %v11215_v4 = vld [vmem:[#allocation2 + $0x122] sm:$0xff] }
  0xf3   : > { %8990 = vmatprep.mubr.msk.f32.mxu0 %vm255_vm1, %v11191_v10  ;;  %v11213_v10 = vld [vmem:[#allocation2 + $0x112] sm:$0xff]  ;;  %12859 = vst [vmem:[#allocation65_spill] sm:$0xff] %v11215_v4 }
  0xf4   : > { %12858 = vst [vmem:[#allocation64_spill] sm:$0xff] %v11213_v10 }
  0xf6   : > { %8991 = vmatmul.mubr.msk.f32.gmra.mrb[18].mxu0 %vm255_vm1, %v11197_v42  ;;  %v11223_v42 = vld [vmem:[#allocation2 + $0x13a] sm:$0xff] }
  0xf7   : > { %8993 = vmatprep.mubr.msk.f32.mxu0 %vm255_vm1, %v11199_v3  ;;  %v11221_v3 = vld [vmem:[#allocation2 + $0x12a] sm:$0xff]  ;;  %12860 = vst [vmem:[#allocation66_spill] sm:$0xff] %v11223_v42 }
  0xfa   : > { %8994 = vmatmul.mubr.msk.f32.gmra.mrb[20].mxu0 %vm255_vm1, %v11205_v63  ;;  %v11231_v63 = vld [vmem:[#allocation2 + $0x152] sm:$0xff] }
  0xfb   : > { %8996 = vmatprep.mubr.msk.f32.mxu0 %vm255_vm1, %v11207_v0  ;;  %v11229_v0 = vld [vmem:[#allocation2 + $0x142] sm:$0xff]  ;;  %12861 = vst [vmem:[#allocation67_spill] sm:$0xff] %v11231_v63 }
  0xfe   : > { %8997 = vmatmul.mubr.msk.f32.gmra.mrb[22].mxu0 %vm255_vm1, %v11213_v10  ;;  %v11239_v10 = vld [vmem:[#allocation2 + $0x16a] sm:$0xff] }
  0xff   : > { %8999 = vmatprep.mubr.msk.f32.mxu0 %vm255_vm1, %v11215_v4  ;;  %v11237_v4 = vld [vmem:[#allocation2 + $0x15a] sm:$0xff]  ;;  %12862 = vst [vmem:[#allocation68_spill] sm:$0xff] %v11239_v10 }
 0x102   : > { %9000 = vmatmul.mubr.msk.f32.gmra.mrb[24].mxu0 %vm255_vm1, %v11221_v3 }
 0x103   : > { %9002 = vmatprep.mubr.msk.f32.mxu0 %vm255_vm1, %v11223_v42  ;;  %v11245_v42 = vld [vmem:[#allocation2 + $0x172] sm:$0xff] }
 0x106   : > { %9003 = vmatmul.mubr.msk.f32.gmra.mrb[26].mxu0 %vm255_vm1, %v11229_v0 }
 0x107   : > { %9005 = vmatprep.mubr.msk.f32.mxu0 %vm255_vm1, %v11231_v63  ;;  %v7817_v63 = vld [vmem:[%s12649_s1 + $0x14] sm:$0xf] }
 0x10a   : > { %9006 = vmatmul.mubr.msk.f32.gmra.mrb[28].mxu0 %vm255_vm1, %v11237_v4 }
 0x10b   : > { %9008 = vmatprep.mubr.msk.f32.mxu0 %vm255_vm1, %v11239_v10 }
 0x10e   : > { %9009 = vmatmul.mubr.msk.f32.gmra.mrb[30].mxu0 %vm255_vm1, %v11245_v42 }
 0x10f   : > { %9013 = vmatprep.mubr.msk.f32.mxu0 %vm255_vm1, %v10978_v8  ;;  %v7851_v8 = vld [vmem:[%s12649_s1 + $0x18] sm:$0xf] }
 0x112   : > { %9014 = vmatmul.mubr.msk.f32.vlgmr.msra.gmra.mrb[0].mxu0 %vm255_vm1, %v10990_v41  ;;  %v11313_v41 = vld [vmem:[#allocation2 + $0x180] sm:$0xff] }
 0x113   : > { %9062 = vmatpush3.msk.msra.mxu0 %vm507_vm0, %v11124_v1  ;;  %9016 = vmatprep.mubr.msk.f32.mxu0 %vm255_vm1, %v10992_v40  ;;  %v11319_v1 = vld [vmem:[#allocation2 + $0x188] sm:$0xff] }
 0x114   : > { %9111 = vmatprep.subr.msk.mxu0 %vm507_vm0, %v7817_v63 }
 0x116   : > { %9017 = vmatmul.mubr.msk.f32.gmra.mrb[2].mxu0 %vm255_vm1, %v11000_v2 }
 0x117   : > { %9019 = vmatprep.mubr.msk.f32.mxu0 %vm255_vm1, %v11002_v7 }
 0x11a   : > { %9020 = vmatmul.mubr.msk.f32.gmra.mrb[4].mxu0 %vm255_vm1, %v11008_v6 }
 0x11b   : > { %9022 = vmatprep.mubr.msk.f32.mxu0 %vm255_vm1, %v11010_v39 }
 0x11e   : > { %9023 = vmatmul.mubr.msk.f32.gmra.mrb[6].mxu0 %vm255_vm1, %v11016_v38 }
 0x11f   : > { %9025 = vmatprep.mubr.msk.f32.mxu0 %vm255_vm1, %v11018_v37 }
 0x122   : > { %9026 = vmatmul.mubr.msk.f32.gmra.mrb[8].mxu0 %vm255_vm1, %v11024_v32 }
 0x123   : > { %9028 = vmatprep.mubr.msk.f32.mxu0 %vm255_vm1, %v11026_v21 }
 0x126   : > { %9029 = vmatmul.mubr.msk.f32.gmra.mrb[10].mxu0 %vm255_vm1, %v11032_v31 }
 0x127   : > { %9031 = vmatprep.mubr.msk.f32.mxu0 %vm255_vm1, %v11034_v20 }
 0x12a   : > { %9032 = vmatmul.mubr.msk.f32.gmra.mrb[12].mxu0 %vm255_vm1, %v11040_v27 }
 0x12b   : > { %9034 = vmatprep.mubr.msk.f32.mxu0 %vm255_vm1, %v11042_v19 }
 0x12e   : > { %9035 = vmatmul.mubr.msk.f32.gmra.mrb[14].mxu0 %vm255_vm1, %v11048_v26 }
 0x12f   : > { %9037 = vmatprep.mubr.msk.f32.mxu0 %vm255_vm1, %v11050_v18 }
 0x132   : > { %9038 = vmatmul.mubr.msk.f32.gmra.mrb[16].mxu0 %vm255_vm1, %v11056_v25 }
 0x133   : > { %9040 = vmatprep.mubr.msk.f32.mxu0 %vm255_vm1, %v11058_v17 }
 0x136   : > { %9041 = vmatmul.mubr.msk.f32.gmra.mrb[18].mxu0 %vm255_vm1, %v11064_v24 }
 0x137   : > { %9043 = vmatprep.mubr.msk.f32.mxu0 %vm255_vm1, %v11066_v16 }
 0x13a   : > { %9044 = vmatmul.mubr.msk.f32.gmra.mrb[20].mxu0 %vm255_vm1, %v11072_v23 }
 0x13b   : > { %9046 = vmatprep.mubr.msk.f32.mxu0 %vm255_vm1, %v11074_v15 }
 0x13e   : > { %9047 = vmatmul.mubr.msk.f32.gmra.mrb[22].mxu0 %vm255_vm1, %v11080_v22 }
 0x13f   : > { %9049 = vmatprep.mubr.msk.f32.mxu0 %vm255_vm1, %v11082_v14 }
 0x142   : > { %9050 = vmatmul.mubr.msk.f32.gmra.mrb[24].mxu0 %vm255_vm1, %v11088_v13 }
 0x143   : > { %9052 = vmatprep.mubr.msk.f32.mxu0 %vm255_vm1, %v11090_v12 }
 0x146   : > { %9053 = vmatmul.mubr.msk.f32.gmra.mrb[26].mxu0 %vm255_vm1, %v11106_v9 }
 0x147   : > { %9055 = vmatprep.mubr.msk.f32.mxu0 %vm255_vm1, %v11108_v5 }
 0x14a   : > { %9056 = vmatmul.mubr.msk.f32.gmra.mrb[28].mxu0 %vm255_vm1, %v11114_v11 }
 0x14b   : > { %9058 = vmatprep.mubr.msk.f32.mxu0 %vm255_vm1, %v11313_v41 }
 0x14e   : > { %9059 = vmatmul.mubr.msk.f32.gmra.mrb[30].mxu0 %vm255_vm1, %v11319_v1 }
 0x14f   : > { %9063 = vmatprep.mubr.msk.f32.mxu0 %vm255_vm1, %v10811_v28  ;;  %v12863_v28 = vld [vmem:[#allocation38_spill] sm:$0xff] }
 0x152   : > { %9064 = vmatmul.mubr.msk.f32.vlgmr.msra.gmra.mrb[0].mxu0 %vm255_vm1, %v10813_v29  ;;  %v12864_v29 = vld [vmem:[#allocation39_spill] sm:$0xff] }
 0x153   : > { %9112 = vmatpush3.msk.msra.mxu0 %vm507_vm0, %v7817_v63  ;;  %9066 = vmatprep.mubr.msk.f32.mxu0 %vm255_vm1, %v10815_v30  ;;  %v11386_v30 = vld [vmem:[#allocation2 + $0x181] sm:$0xff]  ;;  %v7885_v63 = vld [vmem:[%s12649_s1 + $0x1c] sm:$0xf] }
 0x154   : > { %9161 = vmatprep.subr.msk.mxu0 %vm507_vm0, %v7851_v8  ;;  %12865 = vst [vmem:[#allocation69_spill] sm:$0xff] %v11386_v30 }
 0x156   : > { %9067 = vmatmul.mubr.msk.f32.gmra.mrb[2].mxu0 %vm255_vm1, %v10839_v33  ;;  %v12866_v33 = vld [vmem:[#allocation40_spill] sm:$0xff] }
 0x157   : > { %9069 = vmatprep.mubr.msk.f32.mxu0 %vm255_vm1, %v10841_v34  ;;  %v11392_v34 = vld [vmem:[#allocation2 + $0x189] sm:$0xff] }
 0x158   : > { %12867 = vst [vmem:[#allocation70_spill] sm:$0xff] %v11392_v34 }
 0x15a   : > { %9070 = vmatmul.mubr.msk.f32.gmra.mrb[4].mxu0 %vm255_vm1, %v10847_v35  ;;  %v12868_v35 = vld [vmem:[#allocation43_spill] sm:$0xff] }
 0x15b   : > { %9072 = vmatprep.mubr.msk.f32.mxu0 %vm255_vm1, %v10849_v36 }
 0x15e   : > { %9073 = vmatmul.mubr.msk.f32.gmra.mrb[6].mxu0 %vm255_vm1, %v10881_v43 }
 0x15f   : > { %9075 = vmatprep.mubr.msk.f32.mxu0 %vm255_vm1, %v10887_v44 }
 0x162   : > { %9076 = vmatmul.mubr.msk.f32.gmra.mrb[8].mxu0 %vm255_vm1, %v10893_v45 }
 0x163   : > { %9078 = vmatprep.mubr.msk.f32.mxu0 %vm255_vm1, %v10895_v46 }
 0x166   : > { %9079 = vmatmul.mubr.msk.f32.gmra.mrb[10].mxu0 %vm255_vm1, %v10901_v47 }
 0x167   : > { %9081 = vmatprep.mubr.msk.f32.mxu0 %vm255_vm1, %v10903_v48 }
 0x16a   : > { %9082 = vmatmul.mubr.msk.f32.gmra.mrb[12].mxu0 %vm255_vm1, %v10909_v49 }
 0x16b   : > { %9084 = vmatprep.mubr.msk.f32.mxu0 %vm255_vm1, %v10911_v50 }
 0x16e   : > { %9085 = vmatmul.mubr.msk.f32.gmra.mrb[14].mxu0 %vm255_vm1, %v10917_v51 }
 0x16f   : > { %9087 = vmatprep.mubr.msk.f32.mxu0 %vm255_vm1, %v10919_v52 }
 0x172   : > { %9088 = vmatmul.mubr.msk.f32.gmra.mrb[16].mxu0 %vm255_vm1, %v10925_v53 }
 0x173   : > { %9090 = vmatprep.mubr.msk.f32.mxu0 %vm255_vm1, %v10927_v54 }
 0x176   : > { %9091 = vmatmul.mubr.msk.f32.gmra.mrb[18].mxu0 %vm255_vm1, %v10933_v55 }
 0x177   : > { %9093 = vmatprep.mubr.msk.f32.mxu0 %vm255_vm1, %v10935_v56 }
 0x17a   : > { %9094 = vmatmul.mubr.msk.f32.gmra.mrb[20].mxu0 %vm255_vm1, %v10941_v57 }
 0x17b   : > { %9096 = vmatprep.mubr.msk.f32.mxu0 %vm255_vm1, %v10943_v58 }
 0x17e   : > { %9097 = vmatmul.mubr.msk.f32.gmra.mrb[22].mxu0 %vm255_vm1, %v10949_v59 }
 0x17f   : > { %9099 = vmatprep.mubr.msk.f32.mxu0 %vm255_vm1, %v10951_v60 }
 0x182   : > { %9100 = vmatmul.mubr.msk.f32.gmra.mrb[24].mxu0 %vm255_vm1, %v10957_v61 }
 0x183   : > { %9102 = vmatprep.mubr.msk.f32.mxu0 %vm255_vm1, %v10959_v62  ;;  %v12878_v62 = vld [vmem:[#allocation53_spill] sm:$0xff] }
 0x186   : > { %9103 = vmatmul.mubr.msk.f32.gmra.mrb[26].mxu0 %vm255_vm1, %v12863_v28  ;;  %v12874_v28 = vld [vmem:[#allocation49_spill] sm:$0xff] }
 0x187   : > { %9105 = vmatprep.mubr.msk.f32.mxu0 %vm255_vm1, %v12864_v29  ;;  %v12869_v29 = vld [vmem:[#allocation44_spill] sm:$0xff] }
 0x18a   : > { %9106 = vmatmul.mubr.msk.f32.gmra.mrb[28].mxu0 %vm255_vm1, %v12866_v33  ;;  %v12870_v33 = vld [vmem:[#allocation45_spill] sm:$0xff] }
 0x18b   : > { %9108 = vmatprep.mubr.msk.f32.mxu0 %vm255_vm1, %v11386_v30  ;;  %v12871_v30 = vld [vmem:[#allocation46_spill] sm:$0xff] }
 0x18e   : > { %9109 = vmatmul.mubr.msk.f32.gmra.mrb[30].mxu0 %vm255_vm1, %v11392_v34  ;;  %v12872_v34 = vld [vmem:[#allocation47_spill] sm:$0xff] }
 0x18f   : > { %9113 = vmatprep.mubr.msk.f32.mxu0 %vm255_vm1, %v12868_v35  ;;  %v12873_v35 = vld [vmem:[#allocation48_spill] sm:$0xff] }
 0x192   : > { %9114 = vmatmul.mubr.msk.f32.vlgmr.msra.gmra.mrb[0].mxu0 %vm255_vm1, %v12869_v29  ;;  %v12875_v29 = vld [vmem:[#allocation50_spill] sm:$0xff] }
 0x193   : > { %9162 = vmatpush3.msk.msra.mxu0 %vm507_vm0, %v7851_v8  ;;  %9116 = vmatprep.mubr.msk.f32.mxu0 %vm255_vm1, %v12870_v33  ;;  %v12876_v8 = vld [vmem:[#allocation51_spill] sm:$0xff]  ;;  %v12877_v33 = vld [vmem:[#allocation52_spill] sm:$0xff] }
 0x194   : > { %9211 = vmatprep.subr.msk.mxu0 %vm507_vm0, %v7885_v63 }
 0x196   : > { %9117 = vmatmul.mubr.msk.f32.gmra.mrb[2].mxu0 %vm255_vm1, %v12871_v30  ;;  %v12879_v30 = vld [vmem:[#allocation54_spill] sm:$0xff] }
 0x197   : > { %9119 = vmatprep.mubr.msk.f32.mxu0 %vm255_vm1, %v12872_v34  ;;  %v12880_v34 = vld [vmem:[#allocation55_spill] sm:$0xff] }
 0x19a   : > { %9120 = vmatmul.mubr.msk.f32.gmra.mrb[4].mxu0 %vm255_vm1, %v12873_v35  ;;  %v12881_v35 = vld [vmem:[#allocation56_spill] sm:$0xff] }
 0x19b   : > { %9122 = vmatprep.mubr.msk.f32.mxu0 %vm255_vm1, %v12874_v28  ;;  %v12882_v28 = vld [vmem:[#allocation57_spill] sm:$0xff] }
 0x19e   : > { %9123 = vmatmul.mubr.msk.f32.gmra.mrb[6].mxu0 %vm255_vm1, %v12875_v29  ;;  %v12883_v29 = vld [vmem:[#allocation58_spill] sm:$0xff] }
 0x19f   : > { %9125 = vmatprep.mubr.msk.f32.mxu0 %vm255_vm1, %v12876_v8  ;;  %v12884_v8 = vld [vmem:[#allocation59_spill] sm:$0xff] }
 0x1a2   : > { %9126 = vmatmul.mubr.msk.f32.gmra.mrb[8].mxu0 %vm255_vm1, %v12877_v33  ;;  %v12885_v33 = vld [vmem:[#allocation60_spill] sm:$0xff] }
 0x1a3   : > { %9128 = vmatprep.mubr.msk.f32.mxu0 %vm255_vm1, %v12878_v62  ;;  %v12886_v62 = vld [vmem:[#allocation61_spill] sm:$0xff] }
 0x1a6   : > { %9129 = vmatmul.mubr.msk.f32.gmra.mrb[10].mxu0 %vm255_vm1, %v12879_v30  ;;  %v12887_v30 = vld [vmem:[#allocation62_spill] sm:$0xff] }
 0x1a7   : > { %9131 = vmatprep.mubr.msk.f32.mxu0 %vm255_vm1, %v12880_v34  ;;  %v12888_v34 = vld [vmem:[#allocation63_spill] sm:$0xff] }
 0x1aa   : > { %9132 = vmatmul.mubr.msk.f32.gmra.mrb[12].mxu0 %vm255_vm1, %v12881_v35  ;;  %v12889_v35 = vld [vmem:[#allocation64_spill] sm:$0xff] }
 0x1ab   : > { %9134 = vmatprep.mubr.msk.f32.mxu0 %vm255_vm1, %v12882_v28  ;;  %v12890_v28 = vld [vmem:[#allocation65_spill] sm:$0xff] }
 0x1ae   : > { %9135 = vmatmul.mubr.msk.f32.gmra.mrb[14].mxu0 %vm255_vm1, %v12883_v29 }
 0x1af   : > { %9137 = vmatprep.mubr.msk.f32.mxu0 %vm255_vm1, %v12884_v8  ;;  %v12891_v8 = vld [vmem:[#allocation66_spill] sm:$0xff] }
 0x1b2   : > { %9138 = vmatmul.mubr.msk.f32.gmra.mrb[16].mxu0 %vm255_vm1, %v12885_v33 }
 0x1b3   : > { %9140 = vmatprep.mubr.msk.f32.mxu0 %vm255_vm1, %v12886_v62  ;;  %v12892_v62 = vld [vmem:[#allocation67_spill] sm:$0xff] }
 0x1b6   : > { %9141 = vmatmul.mubr.msk.f32.gmra.mrb[18].mxu0 %vm255_vm1, %v12887_v30 }
 0x1b7   : > { %9143 = vmatprep.mubr.msk.f32.mxu0 %vm255_vm1, %v12888_v34 }
 0x1ba   : > { %9144 = vmatmul.mubr.msk.f32.gmra.mrb[20].mxu0 %vm255_vm1, %v12889_v35  ;;  %v11459_v35 = vld [vmem:[#allocation2 + $0x182] sm:$0xff] }
 0x1bb   : > { %9146 = vmatprep.mubr.msk.f32.mxu0 %vm255_vm1, %v12890_v28 }
 0x1be   : > { %9147 = vmatmul.mubr.msk.f32.gmra.mrb[22].mxu0 %vm255_vm1, %v11221_v3 }
 0x1bf   : > { %9149 = vmatprep.mubr.msk.f32.mxu0 %vm255_vm1, %v12891_v8  ;;  %v11465_v8 = vld [vmem:[#allocation2 + $0x18a] sm:$0xff] }
 0x1c2   : > { %9150 = vmatmul.mubr.msk.f32.gmra.mrb[24].mxu0 %vm255_vm1, %v11229_v0 }
 0x1c3   : > { %9152 = vmatprep.mubr.msk.f32.mxu0 %vm255_vm1, %v12892_v62 }
 0x1c6   : > { %9153 = vmatmul.mubr.msk.f32.gmra.mrb[26].mxu0 %vm255_vm1, %v11237_v4 }
 0x1c7   : > { %9155 = vmatprep.mubr.msk.f32.mxu0 %vm255_vm1, %v11239_v10  ;;  %v7919_v10 = vld [vmem:[%s12649_s1 + $0x20] sm:$0xf] }
 0x1ca   : > { %9156 = vmatmul.mubr.msk.f32.gmra.mrb[28].mxu0 %vm255_vm1, %v11245_v42 }
 0x1cb   : > { %9158 = vmatprep.mubr.msk.f32.mxu0 %vm255_vm1, %v11459_v35 }
 0x1ce   : > { %9159 = vmatmul.mubr.msk.f32.gmra.mrb[30].mxu0 %vm255_vm1, %v11465_v8 }
 0x1cf   : > { %9163 = vmatprep.mubr.msk.f32.mxu0 %vm255_vm1, %v10992_v40  ;;  %v12910_v40 = vld [vmem:[#allocation56_spill] sm:$0xff] }
 0x1d2   : > { %9164 = vmatmul.mubr.msk.f32.vlgmr.msra.gmra.mrb[0].mxu0 %vm255_vm1, %v11000_v2 }
 0x1d3   : > { %9212 = vmatpush3.msk.msra.mxu0 %vm507_vm0, %v7885_v63  ;;  %9166 = vmatprep.mubr.msk.f32.mxu0 %vm255_vm1, %v11002_v7 }
 0x1d4   : > { %9261 = vmatprep.subr.msk.mxu0 %vm507_vm0, %v7919_v10 }
 0x1d6   : > { %9167 = vmatmul.mubr.msk.f32.gmra.mrb[2].mxu0 %vm255_vm1, %v11008_v6 }
 0x1d7   : > { %9169 = vmatprep.mubr.msk.f32.mxu0 %vm255_vm1, %v11010_v39  ;;  %v12909_v39 = vld [vmem:[#allocation55_spill] sm:$0xff] }
 0x1da   : > { %9170 = vmatmul.mubr.msk.f32.gmra.mrb[4].mxu0 %vm255_vm1, %v11016_v38  ;;  %v12908_v38 = vld [vmem:[#allocation54_spill] sm:$0xff] }
 0x1db   : > { %9172 = vmatprep.mubr.msk.f32.mxu0 %vm255_vm1, %v11018_v37  ;;  %v12907_v37 = vld [vmem:[#allocation53_spill] sm:$0xff] }
 0x1de   : > { %9173 = vmatmul.mubr.msk.f32.gmra.mrb[6].mxu0 %vm255_vm1, %v11024_v32  ;;  %v12905_v32 = vld [vmem:[#allocation51_spill] sm:$0xff] }
 0x1df   : > { %9175 = vmatprep.mubr.msk.f32.mxu0 %vm255_vm1, %v11026_v21  ;;  %v12898_v21 = vld [vmem:[#allocation70_spill] sm:$0xff] }
 0x1e2   : > { %9176 = vmatmul.mubr.msk.f32.gmra.mrb[8].mxu0 %vm255_vm1, %v11032_v31  ;;  %v12904_v31 = vld [vmem:[#allocation50_spill] sm:$0xff] }
 0x1e3   : > { %9178 = vmatprep.mubr.msk.f32.mxu0 %vm255_vm1, %v11034_v20  ;;  %v3041_v20 = vld [vmem:[#allocation2 + $0x199] sm:$0xff] }
 0x1e6   : > { %9179 = vmatmul.mubr.msk.f32.gmra.mrb[10].mxu0 %vm255_vm1, %v11040_v27  ;;  %v12903_v27 = vld [vmem:[#allocation49_spill] sm:$0xff] }
 0x1e7   : > { %9181 = vmatprep.mubr.msk.f32.mxu0 %vm255_vm1, %v11042_v19  ;;  %v12897_v19 = vld [vmem:[#allocation69_spill] sm:$0xff] }
 0x1ea   : > { %9182 = vmatmul.mubr.msk.f32.gmra.mrb[12].mxu0 %vm255_vm1, %v11048_v26  ;;  %v12902_v26 = vld [vmem:[#allocation48_spill] sm:$0xff] }
 0x1eb   : > { %9184 = vmatprep.mubr.msk.f32.mxu0 %vm255_vm1, %v11050_v18  ;;  %v12896_v18 = vld [vmem:[#allocation40_spill] sm:$0xff] }
 0x1ee   : > { %9185 = vmatmul.mubr.msk.f32.gmra.mrb[14].mxu0 %vm255_vm1, %v11056_v25  ;;  %v12901_v25 = vld [vmem:[#allocation47_spill] sm:$0xff] }
 0x1ef   : > { %9187 = vmatprep.mubr.msk.f32.mxu0 %vm255_vm1, %v11058_v17  ;;  %v12895_v17 = vld [vmem:[#allocation39_spill] sm:$0xff] }
 0x1f2   : > { %9188 = vmatmul.mubr.msk.f32.gmra.mrb[16].mxu0 %vm255_vm1, %v11064_v24  ;;  %v12900_v24 = vld [vmem:[#allocation46_spill] sm:$0xff] }
 0x1f3   : > { %9190 = vmatprep.mubr.msk.f32.mxu0 %vm255_vm1, %v11066_v16  ;;  %v12894_v16 = vld [vmem:[#allocation38_spill] sm:$0xff] }
 0x1f6   : > { %9191 = vmatmul.mubr.msk.f32.gmra.mrb[18].mxu0 %vm255_vm1, %v11072_v23  ;;  %v12899_v23 = vld [vmem:[#allocation45_spill] sm:$0xff] }
 0x1f7   : > { %9193 = vmatprep.mubr.msk.f32.mxu0 %vm255_vm1, %v11074_v15  ;;  %v2651_v15 = vld [vmem:[#allocation2 + $0x198] sm:$0xff] }
 0x1fa   : > { %9194 = vmatmul.mubr.msk.f32.gmra.mrb[20].mxu0 %vm255_vm1, %v11080_v22  ;;  %v3042_v22 = vld [vmem:[#allocation2 + $0x1a1] sm:$0xff] }
 0x1fb   : > { %9196 = vmatprep.mubr.msk.f32.mxu0 %vm255_vm1, %v11082_v14  ;;  %v12893_v14 = vld [vmem:[#allocation37_spill] sm:$0xff] }
 0x1fe   : > { %9197 = vmatmul.mubr.msk.f32.gmra.mrb[22].mxu0 %vm255_vm1, %v11088_v13  ;;  %v2652_v13 = vld [vmem:[#allocation2 + $0x1a0] sm:$0xff] }
 0x1ff   : > { %9199 = vmatprep.mubr.msk.f32.mxu0 %vm255_vm1, %v11090_v12  ;;  %v3011_v12 = vld [vmem:[#allocation2 + $0x31] sm:$0xff] }
 0x202   : > { %9200 = vmatmul.mubr.msk.f32.gmra.mrb[24].mxu0 %vm255_vm1, %v11106_v9  ;;  %v3012_v9 = vld [vmem:[#allocation2 + $0x39] sm:$0xff] }
 0x203   : > { %9202 = vmatprep.mubr.msk.f32.mxu0 %vm255_vm1, %v11108_v5  ;;  %v3013_v5 = vld [vmem:[#allocation2 + $0x49] sm:$0xff] }
 0x206   : > { %9203 = vmatmul.mubr.msk.f32.gmra.mrb[26].mxu0 %vm255_vm1, %v11114_v11  ;;  %v3014_v11 = vld [vmem:[#allocation2 + $0x51] sm:$0xff] }
 0x207   : > { %9205 = vmatprep.mubr.msk.f32.mxu0 %vm255_vm1, %v11313_v41 }
 0x20a   : > { %9206 = vmatmul.mubr.msk.f32.gmra.mrb[28].mxu0 %vm255_vm1, %v11319_v1 }
 0x20b   : > { %9208 = vmatprep.mubr.msk.f32.mxu0 %vm255_vm1, %v2651_v15 }
 0x20e   : > { %9209 = vmatmul.mubr.msk.f32.gmra.mrb[30].mxu0 %vm255_vm1, %v2652_v13 }
 0x20f   : > { %9213 = vmatprep.mubr.msk.f32.mxu0 %vm255_vm1, %v3011_v12 }
 0x212   : > { %9214 = vmatmul.mubr.msk.f32.vlgmr.msra.gmra.mrb[0].mxu0 %vm255_vm1, %v3012_v9 }
 0x213   : > { %9262 = vmatpush3.msk.msra.mxu0 %vm507_vm0, %v7919_v10  ;;  %9216 = vmatprep.mubr.msk.f32.mxu0 %vm255_vm1, %v3013_v5 }
 0x216   : > { %9217 = vmatmul.mubr.msk.f32.gmra.mrb[2].mxu0 %vm255_vm1, %v3014_v11 }
 0x217   : > { %9219 = vmatprep.mubr.msk.f32.mxu0 %vm255_vm1, %v10849_v36  ;;  %v12906_v36 = vld [vmem:[#allocation52_spill] sm:$0xff] }
 0x21a   : > { %9220 = vmatmul.mubr.msk.f32.gmra.mrb[4].mxu0 %vm255_vm1, %v10881_v43  ;;  %v12911_v43 = vld [vmem:[#allocation57_spill] sm:$0xff] }
 0x21b   : > { %9222 = vmatprep.mubr.msk.f32.mxu0 %vm255_vm1, %v10887_v44  ;;  %v12912_v44 = vld [vmem:[#allocation59_spill] sm:$0xff] }
 0x21e   : > { %9223 = vmatmul.mubr.msk.f32.gmra.mrb[6].mxu0 %vm255_vm1, %v10893_v45  ;;  %v12913_v45 = vld [vmem:[#allocation61_spill] sm:$0xff] }
 0x21f   : > { %9225 = vmatprep.mubr.msk.f32.mxu0 %vm255_vm1, %v10895_v46  ;;  %v12914_v46 = vld [vmem:[#allocation64_spill] sm:$0xff] }
 0x222   : > { %9226 = vmatmul.mubr.msk.f32.gmra.mrb[8].mxu0 %vm255_vm1, %v10901_v47  ;;  %v12915_v47 = vld [vmem:[#allocation66_spill] sm:$0xff] }
 0x223   : > { %9228 = vmatprep.mubr.msk.f32.mxu0 %vm255_vm1, %v10903_v48  ;;  %v12916_v48 = vld [vmem:[#allocation68_spill] sm:$0xff] }
 0x226   : > { %9229 = vmatmul.mubr.msk.f32.gmra.mrb[10].mxu0 %vm255_vm1, %v10909_v49  ;;  %v3432_v49 = vld [vmem:[#allocation2 + $0x1a2] sm:$0xff] }
 0x227   : > { %9231 = vmatprep.mubr.msk.f32.mxu0 %vm255_vm1, %v10911_v50  ;;  %v7954_v50 = vld [vmem:[%s12651_s3 + $0x4] sm:$0xf] }
 0x228   : > { %9311 = vmatprep.subr.msk.mxu1 %vm507_vm0, %v7954_v50 }
 0x229   : > { %9312 = vmatpush3.msk.msra.mxu1 %vm507_vm0, %v7954_v50 }
 0x22a   : > { %9232 = vmatmul.mubr.msk.f32.gmra.mrb[12].mxu0 %vm255_vm1, %v10917_v51  ;;  %v3982_v51 = vld [vmem:[#allocation3 + $0x1] sm:$0xff] }
 0x22b   : > { %9234 = vmatprep.mubr.msk.f32.mxu0 %vm255_vm1, %v10919_v52  ;;  %9313 = vmatprep.mubr.msk.f32.mxu1 %vm255_vm1, %v3982_v51  ;;  %v3983_v52 = vld [vmem:[#allocation3 + $0x9] sm:$0xff] }
 0x22c   : > { %9314 = vmatmul.mubr.msk.f32.vlgmr.msra.gmra.mrb[0].mxu1 %vm255_vm1, %v3983_v52 }
 0x22e   : > { %9235 = vmatmul.mubr.msk.f32.gmra.mrb[14].mxu0 %vm255_vm1, %v10925_v53  ;;  %v3981_v53 = vld [vmem:[%s12651_s3] sm:$0xf] }
 0x22f   : > { %9237 = vmatprep.mubr.msk.f32.mxu0 %vm255_vm1, %v10927_v54  ;;  %9361 = vmatprep.subr.msk.mxu1 %vm507_vm0, %v3981_v53  ;;  %v11672_v54 = vld [vmem:[%s12651_s3 + $0x8] sm:$0xf] }
 0x230   : > { %9362 = vmatpush3.msk.msra.mxu1 %vm507_vm0, %v3981_v53 }
 0x231   : > { %9411 = vmatprep.subr.msk.mxu1 %vm507_vm0, %v11672_v54 }
 0x232   : > { %9238 = vmatmul.mubr.msk.f32.gmra.mrb[16].mxu0 %vm255_vm1, %v10933_v55  ;;  %v11679_v55 = vld [vmem:[%s12650_s2] ss:$0 sm:$0xff] }
 0x233   : > { %9240 = vmatprep.mubr.msk.f32.mxu0 %vm255_vm1, %v10935_v56 }
 0x236   : > { %9241 = vmatmul.mubr.msk.f32.gmra.mrb[18].mxu0 %vm255_vm1, %v10941_v57 }
 0x237   : > { %9243 = vmatprep.mubr.msk.f32.mxu0 %vm255_vm1, %v10943_v58 }
 0x23a   : > { %9244 = vmatmul.mubr.msk.f32.gmra.mrb[20].mxu0 %vm255_vm1, %v10949_v59 }
 0x23b   : > { %9246 = vmatprep.mubr.msk.f32.mxu0 %vm255_vm1, %v10951_v60 }
 0x23e   : > { %9247 = vmatmul.mubr.msk.f32.gmra.mrb[22].mxu0 %vm255_vm1, %v10957_v61 }
 0x23f   : > { %9249 = vmatprep.mubr.msk.f32.mxu0 %vm255_vm1, %v12893_v14 }
 0x242   : > { %9250 = vmatmul.mubr.msk.f32.gmra.mrb[24].mxu0 %vm255_vm1, %v12894_v16 }
 0x243   : > { %9252 = vmatprep.mubr.msk.f32.mxu0 %vm255_vm1, %v12895_v17 }
 0x246   : > { %9253 = vmatmul.mubr.msk.f32.gmra.mrb[26].mxu0 %vm255_vm1, %v12896_v18 }
 0x247   : > { %9255 = vmatprep.mubr.msk.f32.mxu0 %vm255_vm1, %v12897_v19 }
 0x24a   : > { %9256 = vmatmul.mubr.msk.f32.gmra.mrb[28].mxu0 %vm255_vm1, %v12898_v21 }
 0x24b   : > { %9258 = vmatprep.mubr.msk.f32.mxu0 %vm255_vm1, %v3041_v20 }
 0x24e   : > { %9259 = vmatmul.mubr.msk.f32.gmra.mrb[30].mxu0 %vm255_vm1, %v3042_v22 }
 0x24f   : > { %9263 = vmatprep.mubr.msk.f32.mxu0 %vm255_vm1, %v12899_v23 }
 0x252   : > { %9264 = vmatmul.mubr.msk.f32.vlgmr.msra.gmra.mrb[0].mxu0 %vm255_vm1, %v12900_v24 }
 0x253   : > { %9266 = vmatprep.mubr.msk.f32.mxu0 %vm255_vm1, %v12901_v25 }
 0x256   : > { %9267 = vmatmul.mubr.msk.f32.gmra.mrb[2].mxu0 %vm255_vm1, %v12902_v26 }
 0x257   : > { %9269 = vmatprep.mubr.msk.f32.mxu0 %vm255_vm1, %v12903_v27 }
 0x25a   : > { %9270 = vmatmul.mubr.msk.f32.gmra.mrb[4].mxu0 %vm255_vm1, %v12904_v31 }
 0x25b   : > { %9272 = vmatprep.mubr.msk.f32.mxu0 %vm255_vm1, %v12905_v32 }
 0x25e   : > { %9273 = vmatmul.mubr.msk.f32.gmra.mrb[6].mxu0 %vm255_vm1, %v12906_v36 }
 0x25f   : > { %9275 = vmatprep.mubr.msk.f32.mxu0 %vm255_vm1, %v12907_v37 }
 0x262   : > { %9276 = vmatmul.mubr.msk.f32.gmra.mrb[8].mxu0 %vm255_vm1, %v12908_v38 }
 0x263   : > { %9278 = vmatprep.mubr.msk.f32.mxu0 %vm255_vm1, %v12909_v39 }
 0x266   : > { %9279 = vmatmul.mubr.msk.f32.gmra.mrb[10].mxu0 %vm255_vm1, %v12910_v40 }
 0x267   : > { %9281 = vmatprep.mubr.msk.f32.mxu0 %vm255_vm1, %v12911_v43 }
 0x26a   : > { %9282 = vmatmul.mubr.msk.f32.gmra.mrb[12].mxu0 %vm255_vm1, %v12883_v29 }
 0x26b   : > { %9284 = vmatprep.mubr.msk.f32.mxu0 %vm255_vm1, %v12912_v44 }
 0x26e   : > { %9285 = vmatmul.mubr.msk.f32.gmra.mrb[14].mxu0 %vm255_vm1, %v12885_v33 }
 0x26f   : > { %9287 = vmatprep.mubr.msk.f32.mxu0 %vm255_vm1, %v12913_v45 }
 0x272   : > { %9288 = vmatmul.mubr.msk.f32.gmra.mrb[16].mxu0 %vm255_vm1, %v12887_v30 }
 0x273   : > { %9290 = vmatprep.mubr.msk.f32.mxu0 %vm255_vm1, %v12888_v34 }
 0x276   : > { %9291 = vmatmul.mubr.msk.f32.gmra.mrb[18].mxu0 %vm255_vm1, %v12914_v46 }
 0x277   : > { %9293 = vmatprep.mubr.msk.f32.mxu0 %vm255_vm1, %v12890_v28 }
 0x27a   : > { %9294 = vmatmul.mubr.msk.f32.gmra.mrb[20].mxu0 %vm255_vm1, %v11221_v3  ;;  %v3431_v3 = vld [vmem:[#allocation2 + $0x19a] sm:$0xff] }
 0x27b   : > { %9296 = vmatprep.mubr.msk.f32.mxu0 %vm255_vm1, %v12915_v47 }
 0x27e   : > { %9297 = vmatmul.mubr.msk.f32.gmra.mrb[22].mxu0 %vm255_vm1, %v11229_v0 }
 0x27f   : > { %9299 = vmatprep.mubr.msk.f32.mxu0 %vm255_vm1, %v12892_v62 }
 0x282   : > { %9300 = vmatmul.mubr.msk.f32.gmra.mrb[24].mxu0 %vm255_vm1, %v11237_v4 }
 0x283   : > { %9302 = vmatprep.mubr.msk.f32.mxu0 %vm255_vm1, %v12916_v48 }
 0x286   : > { %9303 = vmatmul.mubr.msk.f32.gmra.mrb[26].mxu0 %vm255_vm1, %v11245_v42 }
 0x287   : > { %9305 = vmatprep.mubr.msk.f32.mxu0 %vm255_vm1, %v11459_v35 }
 0x28a   : > { %9306 = vmatmul.mubr.msk.f32.gmra.mrb[28].mxu0 %vm255_vm1, %v11465_v8 }
 0x28b   : > { %9308 = vmatprep.mubr.msk.f32.mxu0 %vm255_vm1, %v3431_v3 }
 0x28e   : > { %9309 = vmatmul.mubr.msk.f32.gmra.mrb[30].mxu0 %vm255_vm1, %v3432_v49 }
 0x325   : > { %v9265_v56 = vpop.f32.mrb[0].mxu0 }
 0x326   : > { %v3799_v57 = vadd.f32 %v9265_v56, %v11679_v55  ;;  %v3600_v58 = vpop.f32.mrb[1].mxu0 }
 0x327   : > { %v3798_v59 = vadd.f32 %v11679_v55, %v3600_v58 }
 0x328   : > { %v3831_v60 = vmax.f32 %v3799_v57, 0.0 }
 0x329   : > { %v3830_v61 = vmax.f32 %v3798_v59, 0.0  ;;  %v9268_v62 = vpop.f32.mrb[2].mxu0 }
 0x32a   : > { %3918 = vst.msk [vmem:[#allocation3 + $0x21] sm:$0xff] %vm255_vm1, %v3831_v60  ;;  %v3801_v0 = vadd.f32 %v9268_v62, %v11679_v55  ;;  %v3610_v2 = vpop.f32.mrb[3].mxu0 }
 0x32b   : > { %3917 = vst.msk [vmem:[#allocation3 + $0x19] sm:$0xff] %vm255_vm1, %v3830_v61  ;;  %v3800_v7 = vadd.f32 %v11679_v55, %v3610_v2 }
 0x32c   : > { %v3833_v6 = vmax.f32 %v3801_v0, 0.0 }
 0x32d   : > { %v3832_v4 = vmax.f32 %v3800_v7, 0.0  ;;  %v9271_v10 = vpop.f32.mrb[4].mxu0 }
 0x32e   : > { %3920 = vst.msk [vmem:[#allocation3 + $0x39] sm:$0xff] %vm255_vm1, %v3833_v6  ;;  %v3803_v42 = vadd.f32 %v9271_v10, %v11679_v55  ;;  %v3620_v41 = vpop.f32.mrb[5].mxu0 }
 0x32f   : > { %3919 = vst.msk [vmem:[#allocation3 + $0x31] sm:$0xff] %vm255_vm1, %v3832_v4  ;;  %v3802_v1 = vadd.f32 %v11679_v55, %v3620_v41 }
 0x330   : > { %v3835_v28 = vmax.f32 %v3803_v42, 0.0 }
 0x331   : > { %v3834_v30 = vmax.f32 %v3802_v1, 0.0  ;;  %v9274_v33 = vpop.f32.mrb[6].mxu0  ;;  %v11699_v8 = vld [vmem:[#allocation3 + $0x21] sm:$0xff] }
 0x332   : > { %3922 = vst.msk [vmem:[#allocation3 + $0x51] sm:$0xff] %vm255_vm1, %v3835_v28  ;;  %v3805_v34 = vadd.f32 %v9274_v33, %v11679_v55  ;;  %v3630_v63 = vpop.f32.mrb[7].mxu0  ;;  %v11693_v35 = vld [vmem:[#allocation3 + $0x19] sm:$0xff] }
 0x333   : > { %3921 = vst.msk [vmem:[#allocation3 + $0x49] sm:$0xff] %vm255_vm1, %v3834_v30  ;;  %v3804_v29 = vadd.f32 %v11679_v55, %v3630_v63  ;;  %9316 = vmatprep.mubr.msk.f32.mxu1 %vm255_vm1, %v11693_v35 }
 0x334   : > { %v3837_v15 = vmax.f32 %v3805_v34, 0.0  ;;  %9317 = vmatmul.mubr.msk.f32.gmra.mrb[2].mxu1 %vm255_vm1, %v11699_v8 }
 0x335   : > { %v3836_v13 = vmax.f32 %v3804_v29, 0.0  ;;  %v9277_v12 = vpop.f32.mrb[8].mxu0  ;;  %v11711_v16 = vld [vmem:[#allocation3 + $0x39] sm:$0xff] }
 0x336   : > { %3924 = vst.msk [vmem:[#allocation3 + $0x69] sm:$0xff] %vm255_vm1, %v3837_v15  ;;  %v3807_v9 = vadd.f32 %v9277_v12, %v11679_v55  ;;  %v3640_v5 = vpop.f32.mrb[9].mxu0  ;;  %v11705_v11 = vld [vmem:[#allocation3 + $0x31] sm:$0xff] }
 0x337   : > { %3923 = vst.msk [vmem:[#allocation3 + $0x61] sm:$0xff] %vm255_vm1, %v3836_v13  ;;  %v3806_v14 = vadd.f32 %v11679_v55, %v3640_v5  ;;  %9319 = vmatprep.mubr.msk.f32.mxu1 %vm255_vm1, %v11705_v11 }
 0x338   : > { %v3839_v17 = vmax.f32 %v3807_v9, 0.0  ;;  %9320 = vmatmul.mubr.msk.f32.gmra.mrb[4].mxu1 %vm255_vm1, %v11711_v16 }
 0x339   : > { %v3838_v18 = vmax.f32 %v3806_v14, 0.0  ;;  %v9280_v19 = vpop.f32.mrb[10].mxu0  ;;  %v11723_v24 = vld [vmem:[#allocation3 + $0x51] sm:$0xff] }
 0x33a   : > { %3926 = vst.msk [vmem:[#allocation3 + $0x81] sm:$0xff] %vm255_vm1, %v3839_v17  ;;  %v3809_v20 = vadd.f32 %v9280_v19, %v11679_v55  ;;  %v3650_v21 = vpop.f32.mrb[11].mxu0  ;;  %v11717_v22 = vld [vmem:[#allocation3 + $0x49] sm:$0xff] }
 0x33b   : > { %3925 = vst.msk [vmem:[#allocation3 + $0x79] sm:$0xff] %vm255_vm1, %v3838_v18  ;;  %v3808_v23 = vadd.f32 %v11679_v55, %v3650_v21  ;;  %9322 = vmatprep.mubr.msk.f32.mxu1 %vm255_vm1, %v11717_v22 }
 0x33c   : > { %v3841_v25 = vmax.f32 %v3809_v20, 0.0  ;;  %9323 = vmatmul.mubr.msk.f32.gmra.mrb[6].mxu1 %vm255_vm1, %v11723_v24 }
 0x33d   : > { %v3840_v26 = vmax.f32 %v3808_v23, 0.0  ;;  %v9283_v27 = vpop.f32.mrb[12].mxu0  ;;  %v11735_v38 = vld [vmem:[#allocation3 + $0x69] sm:$0xff] }
 0x33e   : > { %3928 = vst.msk [vmem:[#allocation3 + $0x99] sm:$0xff] %vm255_vm1, %v3841_v25  ;;  %v3811_v31 = vadd.f32 %v9283_v27, %v11679_v55  ;;  %v3660_v32 = vpop.f32.mrb[13].mxu0  ;;  %v11729_v36 = vld [vmem:[#allocation3 + $0x61] sm:$0xff] }
 0x33f   : > { %3927 = vst.msk [vmem:[#allocation3 + $0x91] sm:$0xff] %vm255_vm1, %v3840_v26  ;;  %v3810_v37 = vadd.f32 %v11679_v55, %v3660_v32  ;;  %9325 = vmatprep.mubr.msk.f32.mxu1 %vm255_vm1, %v11729_v36 }
 0x340   : > { %v3843_v39 = vmax.f32 %v3811_v31, 0.0  ;;  %9326 = vmatmul.mubr.msk.f32.gmra.mrb[8].mxu1 %vm255_vm1, %v11735_v38 }
 0x341   : > { %v3842_v40 = vmax.f32 %v3810_v37, 0.0  ;;  %v9286_v43 = vpop.f32.mrb[14].mxu0  ;;  %v11747_v48 = vld [vmem:[#allocation3 + $0x81] sm:$0xff] }
 0x342   : > { %3930 = vst.msk [vmem:[#allocation3 + $0xb1] sm:$0xff] %vm255_vm1, %v3843_v39  ;;  %v3813_v44 = vadd.f32 %v9286_v43, %v11679_v55  ;;  %v3670_v45 = vpop.f32.mrb[15].mxu0  ;;  %v11741_v46 = vld [vmem:[#allocation3 + $0x79] sm:$0xff] }
 0x343   : > { %3929 = vst.msk [vmem:[#allocation3 + $0xa9] sm:$0xff] %vm255_vm1, %v3842_v40  ;;  %v3812_v47 = vadd.f32 %v11679_v55, %v3670_v45  ;;  %9328 = vmatprep.mubr.msk.f32.mxu1 %vm255_vm1, %v11741_v46 }
 0x344   : > { %v3845_v3 = vmax.f32 %v3813_v44, 0.0  ;;  %9329 = vmatmul.mubr.msk.f32.gmra.mrb[10].mxu1 %vm255_vm1, %v11747_v48 }
 0x345   : > { %v3844_v49 = vmax.f32 %v3812_v47, 0.0  ;;  %v9289_v50 = vpop.f32.mrb[16].mxu0  ;;  %v11759_v57 = vld [vmem:[#allocation3 + $0x99] sm:$0xff] }
 0x346   : > { %3932 = vst.msk [vmem:[#allocation3 + $0xc9] sm:$0xff] %vm255_vm1, %v3845_v3  ;;  %v3815_v51 = vadd.f32 %v9289_v50, %v11679_v55  ;;  %v3680_v52 = vpop.f32.mrb[17].mxu0  ;;  %v11753_v53 = vld [vmem:[#allocation3 + $0x91] sm:$0xff] }
 0x347   : > { %3931 = vst.msk [vmem:[#allocation3 + $0xc1] sm:$0xff] %vm255_vm1, %v3844_v49  ;;  %v3814_v56 = vadd.f32 %v11679_v55, %v3680_v52  ;;  %9331 = vmatprep.mubr.msk.f32.mxu1 %vm255_vm1, %v11753_v53 }
 0x348   : > { %v3847_v58 = vmax.f32 %v3815_v51, 0.0  ;;  %9332 = vmatmul.mubr.msk.f32.gmra.mrb[12].mxu1 %vm255_vm1, %v11759_v57 }
 0x349   : > { %v3846_v59 = vmax.f32 %v3814_v56, 0.0  ;;  %v9292_v60 = vpop.f32.mrb[18].mxu0  ;;  %v11771_v7 = vld [vmem:[#allocation3 + $0xb1] sm:$0xff] }
 0x34a   : > { %3934 = vst.msk [vmem:[#allocation3 + $0xe1] sm:$0xff] %vm255_vm1, %v3847_v58  ;;  %v3817_v61 = vadd.f32 %v9292_v60, %v11679_v55  ;;  %v3690_v62 = vpop.f32.mrb[19].mxu0  ;;  %v11765_v0 = vld [vmem:[#allocation3 + $0xa9] sm:$0xff] }
 0x34b   : > { %3933 = vst.msk [vmem:[#allocation3 + $0xd9] sm:$0xff] %vm255_vm1, %v3846_v59  ;;  %v3816_v2 = vadd.f32 %v11679_v55, %v3690_v62  ;;  %9334 = vmatprep.mubr.msk.f32.mxu1 %vm255_vm1, %v11765_v0 }
 0x34c   : > { %v3849_v6 = vmax.f32 %v3817_v61, 0.0  ;;  %9335 = vmatmul.mubr.msk.f32.gmra.mrb[14].mxu1 %vm255_vm1, %v11771_v7 }
 0x34d   : > { %v3848_v4 = vmax.f32 %v3816_v2, 0.0  ;;  %v9295_v10 = vpop.f32.mrb[20].mxu0  ;;  %v11783_v30 = vld [vmem:[#allocation3 + $0xc9] sm:$0xff] }
 0x34e   : > { %3936 = vst.msk [vmem:[#allocation3 + $0xf9] sm:$0xff] %vm255_vm1, %v3849_v6  ;;  %v3819_v42 = vadd.f32 %v9295_v10, %v11679_v55  ;;  %v3700_v41 = vpop.f32.mrb[21].mxu0  ;;  %v11777_v1 = vld [vmem:[#allocation3 + $0xc1] sm:$0xff] }
 0x34f   : > { %3935 = vst.msk [vmem:[#allocation3 + $0xf1] sm:$0xff] %vm255_vm1, %v3848_v4  ;;  %v3818_v28 = vadd.f32 %v11679_v55, %v3700_v41  ;;  %9337 = vmatprep.mubr.msk.f32.mxu1 %vm255_vm1, %v11777_v1  ;;  %v3949_v41 = vld [vmem:[#allocation3] sm:$0xff] }
 0x350   : > { %v3851_v33 = vmax.f32 %v3819_v42, 0.0  ;;  %9338 = vmatmul.mubr.msk.f32.gmra.mrb[16].mxu1 %vm255_vm1, %v11783_v30 }
 0x351   : > { %v3850_v34 = vmax.f32 %v3818_v28, 0.0  ;;  %v9298_v63 = vpop.f32.mrb[22].mxu0  ;;  %v11795_v9 = vld [vmem:[#allocation3 + $0xe1] sm:$0xff] }
 0x352   : > { %3938 = vst.msk [vmem:[#allocation3 + $0x111] sm:$0xff] %vm255_vm1, %v3851_v33  ;;  %v3821_v29 = vadd.f32 %v9298_v63, %v11679_v55  ;;  %v3710_v15 = vpop.f32.mrb[23].mxu0  ;;  %v11789_v13 = vld [vmem:[#allocation3 + $0xd9] sm:$0xff]  ;;  %v3950_v33 = vld [vmem:[#allocation3 + $0x8] sm:$0xff] }
 0x353   : > { %3937 = vst.msk [vmem:[#allocation3 + $0x109] sm:$0xff] %vm255_vm1, %v3850_v34  ;;  %v3820_v12 = vadd.f32 %v11679_v55, %v3710_v15  ;;  %9340 = vmatprep.mubr.msk.f32.mxu1 %vm255_vm1, %v11789_v13  ;;  %v11869_v34 = vld [vmem:[%s12651_s3 + $0xc] sm:$0xf]  ;;  %v11884_v15 = vld [vmem:[#allocation3 + $0x30] sm:$0xff] }
 0x354   : > { %v3853_v5 = vmax.f32 %v3821_v29, 0.0  ;;  %9341 = vmatmul.mubr.msk.f32.gmra.mrb[18].mxu1 %vm255_vm1, %v11795_v9  ;;  %v11872_v63 = vld [vmem:[#allocation3 + $0x18] sm:$0xff]  ;;  %v11880_v29 = vld [vmem:[#allocation3 + $0x20] sm:$0xff] }
 0x355   : > { %v3852_v14 = vmax.f32 %v3820_v12, 0.0  ;;  %v9301_v17 = vpop.f32.mrb[24].mxu0  ;;  %v11807_v23 = vld [vmem:[#allocation3 + $0xf9] sm:$0xff] }
 0x356   : > { %3940 = vst.msk [vmem:[#allocation3 + $0x129] sm:$0xff] %vm255_vm1, %v3853_v5  ;;  %v3823_v18 = vadd.f32 %v9301_v17, %v11679_v55  ;;  %v3720_v19 = vpop.f32.mrb[25].mxu0  ;;  %v11801_v20 = vld [vmem:[#allocation3 + $0xf1] sm:$0xff]  ;;  %v11904_v17 = vld [vmem:[#allocation3 + $0x68] sm:$0xff] }
 0x357   : > { %3939 = vst.msk [vmem:[#allocation3 + $0x121] sm:$0xff] %vm255_vm1, %v3852_v14  ;;  %v3822_v21 = vadd.f32 %v11679_v55, %v3720_v19  ;;  %9343 = vmatprep.mubr.msk.f32.mxu1 %vm255_vm1, %v11801_v20  ;;  %v11888_v12 = vld [vmem:[#allocation3 + $0x38] sm:$0xff]  ;;  %v11896_v5 = vld [vmem:[#allocation3 + $0x50] sm:$0xff]  ;;  %v11900_v14 = vld [vmem:[#allocation3 + $0x60] sm:$0xff] }
 0x358   : > { %v3855_v25 = vmax.f32 %v3823_v18, 0.0  ;;  %9344 = vmatmul.mubr.msk.f32.gmra.mrb[20].mxu1 %vm255_vm1, %v11807_v23  ;;  %v11908_v18 = vld [vmem:[#allocation3 + $0x78] sm:$0xff]  ;;  %v11912_v19 = vld [vmem:[#allocation3 + $0x80] sm:$0xff] }
 0x359   : > { %v3854_v26 = vmax.f32 %v3822_v21, 0.0  ;;  %v9304_v27 = vpop.f32.mrb[26].mxu0  ;;  %v11819_v40 = vld [vmem:[#allocation3 + $0x111] sm:$0xff] }
 0x35a   : > { %3942 = vst.msk [vmem:[#allocation3 + $0x141] sm:$0xff] %vm255_vm1, %v3855_v25  ;;  %v3825_v31 = vadd.f32 %v9304_v27, %v11679_v55  ;;  %v3730_v32 = vpop.f32.mrb[27].mxu0  ;;  %v11813_v37 = vld [vmem:[#allocation3 + $0x109] sm:$0xff]  ;;  %v11920_v25 = vld [vmem:[#allocation3 + $0x98] sm:$0xff] }
 0x35b   : > { %3941 = vst.msk [vmem:[#allocation3 + $0x139] sm:$0xff] %vm255_vm1, %v3854_v26  ;;  %v3824_v39 = vadd.f32 %v11679_v55, %v3730_v32  ;;  %9346 = vmatprep.mubr.msk.f32.mxu1 %vm255_vm1, %v11813_v37  ;;  %v11916_v21 = vld [vmem:[#allocation3 + $0x90] sm:$0xff]  ;;  %v11924_v26 = vld [vmem:[#allocation3 + $0xa8] sm:$0xff] }
 0x35c   : > { %v3857_v43 = vmax.f32 %v3825_v31, 0.0  ;;  %9347 = vmatmul.mubr.msk.f32.gmra.mrb[22].mxu1 %vm255_vm1, %v11819_v40  ;;  %v11928_v27 = vld [vmem:[#allocation3 + $0xb0] sm:$0xff]  ;;  %v11932_v31 = vld [vmem:[#allocation3 + $0xc0] sm:$0xff]  ;;  %v11936_v32 = vld [vmem:[#allocation3 + $0xc8] sm:$0xff] }
 0x35d   : > { %v3856_v44 = vmax.f32 %v3824_v39, 0.0  ;;  %v9307_v45 = vpop.f32.mrb[28].mxu0  ;;  %v11831_v51 = vld [vmem:[#allocation3 + $0x129] sm:$0xff]  ;;  %v11940_v39 = vld [vmem:[#allocation3 + $0xd8] sm:$0xff] }
 0x35e   : > { %3944 = vst.msk [vmem:[#allocation3 + $0x159] sm:$0xff] %vm255_vm1, %v3857_v43  ;;  %v3827_v47 = vadd.f32 %v9307_v45, %v11679_v55  ;;  %v3740_v3 = vpop.f32.mrb[29].mxu0  ;;  %v11825_v49 = vld [vmem:[#allocation3 + $0x121] sm:$0xff]  ;;  %v11952_v45 = vld [vmem:[#allocation3 + $0xf8] sm:$0xff] }
 0x35f   : > { %3943 = vst.msk [vmem:[#allocation3 + $0x151] sm:$0xff] %vm255_vm1, %v3856_v44  ;;  %v3826_v50 = vadd.f32 %v11679_v55, %v3740_v3  ;;  %9349 = vmatprep.mubr.msk.f32.mxu1 %vm255_vm1, %v11825_v49  ;;  %v11944_v43 = vld [vmem:[#allocation3 + $0xe0] sm:$0xff]  ;;  %v11948_v44 = vld [vmem:[#allocation3 + $0xf0] sm:$0xff] }
 0x360   : > { %v3859_v52 = vmax.f32 %v3827_v47, 0.0  ;;  %9350 = vmatmul.mubr.msk.f32.gmra.mrb[24].mxu1 %vm255_vm1, %v11831_v51  ;;  %v11956_v47 = vld [vmem:[#allocation3 + $0x108] sm:$0xff]  ;;  %v11960_v3 = vld [vmem:[#allocation3 + $0x110] sm:$0xff] }
 0x361   : > { %v3858_v56 = vmax.f32 %v3826_v50, 0.0  ;;  %v9310_v58 = vpop.f32.mrb[30].mxu0  ;;  %v11843_v2 = vld [vmem:[#allocation3 + $0x141] sm:$0xff] }
 0x362   : > { %3946 = vst.msk [vmem:[#allocation3 + $0x171] sm:$0xff] %vm255_vm1, %v3859_v52  ;;  %v3829_v59 = vadd.f32 %v9310_v58, %v11679_v55  ;;  %v3750_v60 = vpop.f32.mrb[31].mxu0  ;;  %v11837_v61 = vld [vmem:[#allocation3 + $0x139] sm:$0xff]  ;;  %v11968_v52 = vld [vmem:[#allocation3 + $0x128] sm:$0xff] }
 0x363   : > { %3945 = vst.msk [vmem:[#allocation3 + $0x169] sm:$0xff] %vm255_vm1, %v3858_v56  ;;  %v3828_v62 = vadd.f32 %v11679_v55, %v3750_v60  ;;  %9352 = vmatprep.mubr.msk.f32.mxu1 %vm255_vm1, %v11837_v61  ;;  %v11964_v50 = vld [vmem:[#allocation3 + $0x120] sm:$0xff]  ;;  %v11972_v56 = vld [vmem:[#allocation3 + $0x138] sm:$0xff] }
 0x364   : > { %v3861_v6 = vmax.f32 %v3829_v59, 0.0  ;;  %9353 = vmatmul.mubr.msk.f32.gmra.mrb[26].mxu1 %vm255_vm1, %v11843_v2  ;;  %v11976_v58 = vld [vmem:[#allocation3 + $0x140] sm:$0xff] }
 0x365   : > { %v3860_v4 = vmax.f32 %v3828_v62, 0.0  ;;  %v11853_v55 = vld [vmem:[#allocation3 + $0x159] sm:$0xff] }
 0x366   : > { %3948 = vst.msk [vmem:[#allocation3 + $0x189] sm:$0xff] %vm255_vm1, %v3861_v6  ;;  %v11848_v10 = vld [vmem:[#allocation3 + $0x151] sm:$0xff]  ;;  %v4664_v6 = vld [vmem:[#allocation3 + $0x2] sm:$0xff] }
 0x367   : > { %3947 = vst.msk [vmem:[#allocation3 + $0x181] sm:$0xff] %vm255_vm1, %v3860_v4  ;;  %9355 = vmatprep.mubr.msk.f32.mxu1 %vm255_vm1, %v11848_v10  ;;  %v11980_v59 = vld [vmem:[#allocation3 + $0x150] sm:$0xff]  ;;  %v11984_v60 = vld [vmem:[#allocation3 + $0x158] sm:$0xff] }
 0x368   : > { %9356 = vmatmul.mubr.msk.f32.gmra.mrb[28].mxu1 %vm255_vm1, %v11853_v55 }
 0x369   : > { %v11861_v28 = vld [vmem:[#allocation3 + $0x171] sm:$0xff] }
 0x36a   : > { %v11857_v42 = vld [vmem:[#allocation3 + $0x169] sm:$0xff]  ;;  %12918 = vst [vmem:[#allocation44_spill] sm:$0xff] %v11861_v28 }
 0x36b   : > { %12917 = vst [vmem:[#allocation43_spill] sm:$0xff] %v11857_v42  ;;  %9358 = vmatprep.mubr.msk.f32.mxu1 %vm255_vm1, %v11857_v42  ;;  %v11988_v62 = vld [vmem:[#allocation3 + $0x168] sm:$0xff]  ;;  %v11992_v4 = vld [vmem:[#allocation3 + $0x170] sm:$0xff] }
 0x36c   : > { %9359 = vmatmul.mubr.msk.f32.gmra.mrb[30].mxu1 %vm255_vm1, %v11861_v28  ;;  %v12003_v28 = vld [vmem:[#allocation3 + $0x1a] sm:$0xff]  ;;  %v12015_v42 = vld [vmem:[#allocation3 + $0x32] sm:$0xff] }
 0x36d   : > { %9363 = vmatprep.mubr.msk.f32.mxu1 %vm255_vm1, %v3949_v41  ;;  %v4665_v41 = vld [vmem:[#allocation3 + $0xa] sm:$0xff]  ;;  %12919 = vst [vmem:[#allocation58_spill] sm:$0xff] %v12003_v28  ;;  %12921 = vst [vmem:[#allocation62_spill] sm:$0xff] %v12015_v42 }
 0x370   : > { %9364 = vmatmul.mubr.msk.f32.vlgmr.msra.gmra.mrb[0].mxu1 %vm255_vm1, %v3950_v33  ;;  %v12000_v33 = vld [vmem:[%s12651_s3 + $0x10] sm:$0xf] }
 0x371   : > { %9412 = vmatpush3.msk.msra.mxu1 %vm507_vm0, %v11672_v54  ;;  %9366 = vmatprep.mubr.msk.f32.mxu1 %vm255_vm1, %v11872_v63  ;;  %v11892_v54 = vld [vmem:[#allocation3 + $0x48] sm:$0xff] }
 0x372   : > { %9461 = vmatprep.subr.msk.mxu1 %vm507_vm0, %v11869_v34 }
 0x374   : > { %9367 = vmatmul.mubr.msk.f32.gmra.mrb[2].mxu1 %vm255_vm1, %v11880_v29 }
 0x375   : > { %9369 = vmatprep.mubr.msk.f32.mxu1 %vm255_vm1, %v11884_v15 }
 0x378   : > { %9370 = vmatmul.mubr.msk.f32.gmra.mrb[4].mxu1 %vm255_vm1, %v11888_v12 }
 0x379   : > { %9372 = vmatprep.mubr.msk.f32.mxu1 %vm255_vm1, %v11892_v54 }
 0x37c   : > { %9373 = vmatmul.mubr.msk.f32.gmra.mrb[6].mxu1 %vm255_vm1, %v11896_v5 }
 0x37d   : > { %9375 = vmatprep.mubr.msk.f32.mxu1 %vm255_vm1, %v11900_v14 }
 0x380   : > { %9376 = vmatmul.mubr.msk.f32.gmra.mrb[8].mxu1 %vm255_vm1, %v11904_v17 }
 0x381   : > { %9378 = vmatprep.mubr.msk.f32.mxu1 %vm255_vm1, %v11908_v18 }
 0x384   : > { %9379 = vmatmul.mubr.msk.f32.gmra.mrb[10].mxu1 %vm255_vm1, %v11912_v19 }
 0x385   : > { %9381 = vmatprep.mubr.msk.f32.mxu1 %vm255_vm1, %v11916_v21 }
 0x388   : > { %9382 = vmatmul.mubr.msk.f32.gmra.mrb[12].mxu1 %vm255_vm1, %v11920_v25 }
 0x389   : > { %9384 = vmatprep.mubr.msk.f32.mxu1 %vm255_vm1, %v11924_v26 }
 0x38c   : > { %9385 = vmatmul.mubr.msk.f32.gmra.mrb[14].mxu1 %vm255_vm1, %v11928_v27 }
 0x38d   : > { %9387 = vmatprep.mubr.msk.f32.mxu1 %vm255_vm1, %v11932_v31 }
 0x390   : > { %9388 = vmatmul.mubr.msk.f32.gmra.mrb[16].mxu1 %vm255_vm1, %v11936_v32 }
 0x391   : > { %9390 = vmatprep.mubr.msk.f32.mxu1 %vm255_vm1, %v11940_v39 }
 0x394   : > { %9391 = vmatmul.mubr.msk.f32.gmra.mrb[18].mxu1 %vm255_vm1, %v11944_v43 }
 0x395   : > { %9393 = vmatprep.mubr.msk.f32.mxu1 %vm255_vm1, %v11948_v44 }
 0x398   : > { %9394 = vmatmul.mubr.msk.f32.gmra.mrb[20].mxu1 %vm255_vm1, %v11952_v45 }
 0x399   : > { %9396 = vmatprep.mubr.msk.f32.mxu1 %vm255_vm1, %v11956_v47 }
 0x39c   : > { %9397 = vmatmul.mubr.msk.f32.gmra.mrb[22].mxu1 %vm255_vm1, %v11960_v3 }
 0x39d   : > { %9399 = vmatprep.mubr.msk.f32.mxu1 %vm255_vm1, %v11964_v50 }
 0x3a0   : > { %9400 = vmatmul.mubr.msk.f32.gmra.mrb[24].mxu1 %vm255_vm1, %v11968_v52 }
 0x3a1   : > { %9402 = vmatprep.mubr.msk.f32.mxu1 %vm255_vm1, %v11972_v56 }
 0x3a4   : > { %9403 = vmatmul.mubr.msk.f32.gmra.mrb[26].mxu1 %vm255_vm1, %v11976_v58 }
 0x3a5   : > { %9405 = vmatprep.mubr.msk.f32.mxu1 %vm255_vm1, %v11980_v59 }
 0x3a8   : > { %9406 = vmatmul.mubr.msk.f32.gmra.mrb[28].mxu1 %vm255_vm1, %v11984_v60 }
 0x3a9   : > { %9408 = vmatprep.mubr.msk.f32.mxu1 %vm255_vm1, %v11988_v62 }
 0x3ac   : > { %9409 = vmatmul.mubr.msk.f32.gmra.mrb[30].mxu1 %vm255_vm1, %v11992_v4 }
 0x3ad   : > { %9413 = vmatprep.mubr.msk.f32.mxu1 %vm255_vm1, %v4664_v6  ;;  %v12011_v6 = vld [vmem:[#allocation3 + $0x22] sm:$0xff] }
 0x3ae   : > { %12920 = vst [vmem:[#allocation60_spill] sm:$0xff] %v12011_v6 }
 0x3b0   : > { %9414 = vmatmul.mubr.msk.f32.vlgmr.msra.gmra.mrb[0].mxu1 %vm255_vm1, %v4665_v41  ;;  %v12019_v41 = vld [vmem:[#allocation3 + $0x3a] sm:$0xff] }
 0x3b1   : > { %9462 = vmatpush3.msk.msra.mxu1 %vm507_vm0, %v11869_v34  ;;  %9416 = vmatprep.mubr.msk.f32.mxu1 %vm255_vm1, %v12003_v28  ;;  %12922 = vst [vmem:[#allocation63_spill] sm:$0xff] %v12019_v41  ;;  %v12023_v34 = vld [vmem:[#allocation3 + $0x4a] sm:$0xff]  ;;  %v12027_v28 = vld [vmem:[#allocation3 + $0x52] sm:$0xff] }
 0x3b2   : > { %9511 = vmatprep.subr.msk.mxu1 %vm507_vm0, %v12000_v33  ;;  %12923 = vst [vmem:[#allocation65_spill] sm:$0xff] %v12023_v34  ;;  %12924 = vst [vmem:[#allocation67_spill] sm:$0xff] %v12027_v28 }
 0x3b4   : > { %9417 = vmatmul.mubr.msk.f32.gmra.mrb[2].mxu1 %vm255_vm1, %v12011_v6  ;;  %v12031_v6 = vld [vmem:[#allocation3 + $0x62] sm:$0xff] }
 0x3b5   : > { %9419 = vmatprep.mubr.msk.f32.mxu1 %vm255_vm1, %v12015_v42  ;;  %12925 = vst [vmem:[#allocation37_spill] sm:$0xff] %v12031_v6  ;;  %v12035_v42 = vld [vmem:[#allocation3 + $0x6a] sm:$0xff] }
 0x3b6   : > { %12926 = vst [vmem:[#allocation38_spill] sm:$0xff] %v12035_v42 }
 0x3b8   : > { %9420 = vmatmul.mubr.msk.f32.gmra.mrb[4].mxu1 %vm255_vm1, %v12019_v41  ;;  %v12039_v41 = vld [vmem:[#allocation3 + $0x7a] sm:$0xff] }
 0x3b9   : > { %9422 = vmatprep.mubr.msk.f32.mxu1 %vm255_vm1, %v12023_v34  ;;  %12927 = vst [vmem:[#allocation39_spill] sm:$0xff] %v12039_v41  ;;  %v12043_v34 = vld [vmem:[#allocation3 + $0x82] sm:$0xff] }
 0x3ba   : > { %12928 = vst [vmem:[#allocation40_spill] sm:$0xff] %v12043_v34 }
 0x3bc   : > { %9423 = vmatmul.mubr.msk.f32.gmra.mrb[6].mxu1 %vm255_vm1, %v12027_v28  ;;  %v12047_v28 = vld [vmem:[#allocation3 + $0x92] sm:$0xff] }
 0x3bd   : > { %9425 = vmatprep.mubr.msk.f32.mxu1 %vm255_vm1, %v12031_v6  ;;  %12929 = vst [vmem:[#allocation69_spill] sm:$0xff] %v12047_v28  ;;  %v12051_v6 = vld [vmem:[#allocation3 + $0x9a] sm:$0xff] }
 0x3be   : > { %12930 = vst [vmem:[#allocation70_spill] sm:$0xff] %v12051_v6 }
 0x3c0   : > { %9426 = vmatmul.mubr.msk.f32.gmra.mrb[8].mxu1 %vm255_vm1, %v12035_v42  ;;  %v12055_v42 = vld [vmem:[#allocation3 + $0xaa] sm:$0xff] }
 0x3c1   : > { %9428 = vmatprep.mubr.msk.f32.mxu1 %vm255_vm1, %v12039_v41  ;;  %12931 = vst [vmem:[#allocation45_spill] sm:$0xff] %v12055_v42  ;;  %v12059_v41 = vld [vmem:[#allocation3 + $0xb2] sm:$0xff] }
 0x3c2   : > { %12932 = vst [vmem:[#allocation46_spill] sm:$0xff] %v12059_v41 }
 0x3c4   : > { %9429 = vmatmul.mubr.msk.f32.gmra.mrb[10].mxu1 %vm255_vm1, %v12043_v34  ;;  %v12063_v34 = vld [vmem:[#allocation3 + $0xc2] sm:$0xff] }
 0x3c5   : > { %9431 = vmatprep.mubr.msk.f32.mxu1 %vm255_vm1, %v12047_v28  ;;  %12933 = vst [vmem:[#allocation47_spill] sm:$0xff] %v12063_v34  ;;  %v12067_v28 = vld [vmem:[#allocation3 + $0xca] sm:$0xff] }
 0x3c6   : > { %12934 = vst [vmem:[#allocation48_spill] sm:$0xff] %v12067_v28 }
 0x3c8   : > { %9432 = vmatmul.mubr.msk.f32.gmra.mrb[12].mxu1 %vm255_vm1, %v12051_v6  ;;  %v12071_v6 = vld [vmem:[#allocation3 + $0xda] sm:$0xff] }
 0x3c9   : > { %9434 = vmatprep.mubr.msk.f32.mxu1 %vm255_vm1, %v12055_v42  ;;  %12935 = vst [vmem:[#allocation49_spill] sm:$0xff] %v12071_v6  ;;  %v12075_v42 = vld [vmem:[#allocation3 + $0xe2] sm:$0xff] }
 0x3ca   : > { %12936 = vst [vmem:[#allocation50_spill] sm:$0xff] %v12075_v42 }
 0x3cc   : > { %9435 = vmatmul.mubr.msk.f32.gmra.mrb[14].mxu1 %vm255_vm1, %v12059_v41  ;;  %v12079_v41 = vld [vmem:[#allocation3 + $0xf2] sm:$0xff] }
 0x3cd   : > { %9437 = vmatprep.mubr.msk.f32.mxu1 %vm255_vm1, %v12063_v34  ;;  %12937 = vst [vmem:[#allocation51_spill] sm:$0xff] %v12079_v41  ;;  %v12083_v34 = vld [vmem:[#allocation3 + $0xfa] sm:$0xff] }
 0x3ce   : > { %12938 = vst [vmem:[#allocation52_spill] sm:$0xff] %v12083_v34 }
 0x3d0   : > { %9438 = vmatmul.mubr.msk.f32.gmra.mrb[16].mxu1 %vm255_vm1, %v12067_v28  ;;  %v12087_v28 = vld [vmem:[#allocation3 + $0x10a] sm:$0xff] }
 0x3d1   : > { %9440 = vmatprep.mubr.msk.f32.mxu1 %vm255_vm1, %v12071_v6  ;;  %12939 = vst [vmem:[#allocation53_spill] sm:$0xff] %v12087_v28  ;;  %v12091_v6 = vld [vmem:[#allocation3 + $0x112] sm:$0xff] }
 0x3d2   : > { %12940 = vst [vmem:[#allocation54_spill] sm:$0xff] %v12091_v6 }
 0x3d4   : > { %9441 = vmatmul.mubr.msk.f32.gmra.mrb[18].mxu1 %vm255_vm1, %v12075_v42  ;;  %v12095_v42 = vld [vmem:[#allocation3 + $0x122] sm:$0xff] }
 0x3d5   : > { %9443 = vmatprep.mubr.msk.f32.mxu1 %vm255_vm1, %v12079_v41  ;;  %12941 = vst [vmem:[#allocation55_spill] sm:$0xff] %v12095_v42  ;;  %v12099_v41 = vld [vmem:[#allocation3 + $0x12a] sm:$0xff] }
 0x3d6   : > { %12942 = vst [vmem:[#allocation56_spill] sm:$0xff] %v12099_v41 }
 0x3d8   : > { %9444 = vmatmul.mubr.msk.f32.gmra.mrb[20].mxu1 %vm255_vm1, %v12083_v34  ;;  %v12103_v34 = vld [vmem:[#allocation3 + $0x13a] sm:$0xff] }
 0x3d9   : > { %9446 = vmatprep.mubr.msk.f32.mxu1 %vm255_vm1, %v12087_v28  ;;  %12943 = vst [vmem:[#allocation57_spill] sm:$0xff] %v12103_v34  ;;  %v12107_v28 = vld [vmem:[#allocation3 + $0x142] sm:$0xff] }
 0x3dc   : > { %9447 = vmatmul.mubr.msk.f32.gmra.mrb[22].mxu1 %vm255_vm1, %v12091_v6  ;;  %v12111_v6 = vld [vmem:[#allocation3 + $0x152] sm:$0xff] }
 0x3dd   : > { %9449 = vmatprep.mubr.msk.f32.mxu1 %vm255_vm1, %v12095_v42  ;;  %12944 = vst [vmem:[#allocation59_spill] sm:$0xff] %v12111_v6  ;;  %v12115_v42 = vld [vmem:[#allocation3 + $0x15a] sm:$0xff] }
 0x3e0   : > { %9450 = vmatmul.mubr.msk.f32.gmra.mrb[24].mxu1 %vm255_vm1, %v12099_v41  ;;  %v12119_v41 = vld [vmem:[#allocation3 + $0x16a] sm:$0xff] }
 0x3e1   : > { %9452 = vmatprep.mubr.msk.f32.mxu1 %vm255_vm1, %v12103_v34  ;;  %12945 = vst [vmem:[#allocation61_spill] sm:$0xff] %v12119_v41  ;;  %v12123_v34 = vld [vmem:[#allocation3 + $0x172] sm:$0xff] }
 0x3e4   : > { %9453 = vmatmul.mubr.msk.f32.gmra.mrb[26].mxu1 %vm255_vm1, %v12107_v28 }
 0x3e5   : > { %9455 = vmatprep.mubr.msk.f32.mxu1 %vm255_vm1, %v12111_v6  ;;  %v8123_v6 = vld [vmem:[%s12651_s3 + $0x14] sm:$0xf] }
 0x3e8   : > { %9456 = vmatmul.mubr.msk.f32.gmra.mrb[28].mxu1 %vm255_vm1, %v12115_v42 }
 0x3e9   : > { %9458 = vmatprep.mubr.msk.f32.mxu1 %vm255_vm1, %v12119_v41 }
 0x3ec   : > { %9459 = vmatmul.mubr.msk.f32.gmra.mrb[30].mxu1 %vm255_vm1, %v12123_v34 }
 0x3ed   : > { %9463 = vmatprep.mubr.msk.f32.mxu1 %vm255_vm1, %v11872_v63  ;;  %v12193_v63 = vld [vmem:[#allocation3 + $0x180] sm:$0xff] }
 0x3f0   : > { %9464 = vmatmul.mubr.msk.f32.vlgmr.msra.gmra.mrb[0].mxu1 %vm255_vm1, %v11880_v29  ;;  %v12197_v29 = vld [vmem:[#allocation3 + $0x188] sm:$0xff] }
 0x3f1   : > { %9512 = vmatpush3.msk.msra.mxu1 %vm507_vm0, %v12000_v33  ;;  %9466 = vmatprep.mubr.msk.f32.mxu1 %vm255_vm1, %v11884_v15  ;;  %v8157_v33 = vld [vmem:[%s12651_s3 + $0x18] sm:$0xf] }
 0x3f2   : > { %9561 = vmatprep.subr.msk.mxu1 %vm507_vm0, %v8123_v6 }
 0x3f4   : > { %9467 = vmatmul.mubr.msk.f32.gmra.mrb[2].mxu1 %vm255_vm1, %v11888_v12 }
 0x3f5   : > { %9469 = vmatprep.mubr.msk.f32.mxu1 %vm255_vm1, %v11892_v54 }
 0x3f8   : > { %9470 = vmatmul.mubr.msk.f32.gmra.mrb[4].mxu1 %vm255_vm1, %v11896_v5 }
 0x3f9   : > { %9472 = vmatprep.mubr.msk.f32.mxu1 %vm255_vm1, %v11900_v14 }
 0x3fc   : > { %9473 = vmatmul.mubr.msk.f32.gmra.mrb[6].mxu1 %vm255_vm1, %v11904_v17 }
 0x3fd   : > { %9475 = vmatprep.mubr.msk.f32.mxu1 %vm255_vm1, %v11908_v18 }
 0x400   : > { %9476 = vmatmul.mubr.msk.f32.gmra.mrb[8].mxu1 %vm255_vm1, %v11912_v19 }
 0x401   : > { %9478 = vmatprep.mubr.msk.f32.mxu1 %vm255_vm1, %v11916_v21 }
 0x404   : > { %9479 = vmatmul.mubr.msk.f32.gmra.mrb[10].mxu1 %vm255_vm1, %v11920_v25 }
 0x405   : > { %9481 = vmatprep.mubr.msk.f32.mxu1 %vm255_vm1, %v11924_v26 }
 0x408   : > { %9482 = vmatmul.mubr.msk.f32.gmra.mrb[12].mxu1 %vm255_vm1, %v11928_v27 }
 0x409   : > { %9484 = vmatprep.mubr.msk.f32.mxu1 %vm255_vm1, %v11932_v31 }
 0x40c   : > { %9485 = vmatmul.mubr.msk.f32.gmra.mrb[14].mxu1 %vm255_vm1, %v11936_v32 }
 0x40d   : > { %9487 = vmatprep.mubr.msk.f32.mxu1 %vm255_vm1, %v11940_v39 }
 0x410   : > { %9488 = vmatmul.mubr.msk.f32.gmra.mrb[16].mxu1 %vm255_vm1, %v11944_v43 }
 0x411   : > { %9490 = vmatprep.mubr.msk.f32.mxu1 %vm255_vm1, %v11948_v44 }
 0x414   : > { %9491 = vmatmul.mubr.msk.f32.gmra.mrb[18].mxu1 %vm255_vm1, %v11952_v45 }
 0x415   : > { %9493 = vmatprep.mubr.msk.f32.mxu1 %vm255_vm1, %v11956_v47 }
 0x418   : > { %9494 = vmatmul.mubr.msk.f32.gmra.mrb[20].mxu1 %vm255_vm1, %v11960_v3 }
 0x419   : > { %9496 = vmatprep.mubr.msk.f32.mxu1 %vm255_vm1, %v11964_v50 }
 0x41c   : > { %9497 = vmatmul.mubr.msk.f32.gmra.mrb[22].mxu1 %vm255_vm1, %v11968_v52 }
 0x41d   : > { %9499 = vmatprep.mubr.msk.f32.mxu1 %vm255_vm1, %v11972_v56 }
 0x420   : > { %9500 = vmatmul.mubr.msk.f32.gmra.mrb[24].mxu1 %vm255_vm1, %v11976_v58 }
 0x421   : > { %9502 = vmatprep.mubr.msk.f32.mxu1 %vm255_vm1, %v11980_v59 }
 0x424   : > { %9503 = vmatmul.mubr.msk.f32.gmra.mrb[26].mxu1 %vm255_vm1, %v11984_v60 }
 0x425   : > { %9505 = vmatprep.mubr.msk.f32.mxu1 %vm255_vm1, %v11988_v62 }
 0x428   : > { %9506 = vmatmul.mubr.msk.f32.gmra.mrb[28].mxu1 %vm255_vm1, %v11992_v4 }
 0x429   : > { %9508 = vmatprep.mubr.msk.f32.mxu1 %vm255_vm1, %v12193_v63 }
 0x42c   : > { %9509 = vmatmul.mubr.msk.f32.gmra.mrb[30].mxu1 %vm255_vm1, %v12197_v29 }
 0x42d   : > { %9513 = vmatprep.mubr.msk.f32.mxu1 %vm255_vm1, %v11693_v35  ;;  %v12946_v35 = vld [vmem:[#allocation43_spill] sm:$0xff] }
 0x430   : > { %9514 = vmatmul.mubr.msk.f32.vlgmr.msra.gmra.mrb[0].mxu1 %vm255_vm1, %v11699_v8  ;;  %v12947_v8 = vld [vmem:[#allocation44_spill] sm:$0xff] }
 0x431   : > { %9562 = vmatpush3.msk.msra.mxu1 %vm507_vm0, %v8123_v6  ;;  %9516 = vmatprep.mubr.msk.f32.mxu1 %vm255_vm1, %v11705_v11  ;;  %v12266_v11 = vld [vmem:[#allocation3 + $0x181] sm:$0xff]  ;;  %v12955_v6 = vld [vmem:[#allocation38_spill] sm:$0xff] }
 0x432   : > { %9611 = vmatprep.subr.msk.mxu1 %vm507_vm0, %v8157_v33 }
 0x434   : > { %9517 = vmatmul.mubr.msk.f32.gmra.mrb[2].mxu1 %vm255_vm1, %v11711_v16  ;;  %v12270_v16 = vld [vmem:[#allocation3 + $0x189] sm:$0xff] }
 0x435   : > { %9519 = vmatprep.mubr.msk.f32.mxu1 %vm255_vm1, %v11717_v22  ;;  %v12948_v22 = vld [vmem:[#allocation58_spill] sm:$0xff] }
 0x438   : > { %9520 = vmatmul.mubr.msk.f32.gmra.mrb[4].mxu1 %vm255_vm1, %v11723_v24  ;;  %v8191_v24 = vld [vmem:[%s12651_s3 + $0x1c] sm:$0xf] }
 0x439   : > { %9522 = vmatprep.mubr.msk.f32.mxu1 %vm255_vm1, %v11729_v36  ;;  %v12949_v36 = vld [vmem:[#allocation60_spill] sm:$0xff] }
 0x43c   : > { %9523 = vmatmul.mubr.msk.f32.gmra.mrb[6].mxu1 %vm255_vm1, %v11735_v38  ;;  %v12950_v38 = vld [vmem:[#allocation62_spill] sm:$0xff] }
 0x43d   : > { %9525 = vmatprep.mubr.msk.f32.mxu1 %vm255_vm1, %v11741_v46  ;;  %v12951_v46 = vld [vmem:[#allocation63_spill] sm:$0xff] }
 0x440   : > { %9526 = vmatmul.mubr.msk.f32.gmra.mrb[8].mxu1 %vm255_vm1, %v11747_v48  ;;  %v12952_v48 = vld [vmem:[#allocation65_spill] sm:$0xff] }
 0x441   : > { %9528 = vmatprep.mubr.msk.f32.mxu1 %vm255_vm1, %v11753_v53  ;;  %v12953_v53 = vld [vmem:[#allocation67_spill] sm:$0xff] }
 0x444   : > { %9529 = vmatmul.mubr.msk.f32.gmra.mrb[10].mxu1 %vm255_vm1, %v11759_v57  ;;  %v12954_v57 = vld [vmem:[#allocation37_spill] sm:$0xff] }
 0x445   : > { %9531 = vmatprep.mubr.msk.f32.mxu1 %vm255_vm1, %v11765_v0 }
 0x448   : > { %9532 = vmatmul.mubr.msk.f32.gmra.mrb[12].mxu1 %vm255_vm1, %v11771_v7 }
 0x449   : > { %9534 = vmatprep.mubr.msk.f32.mxu1 %vm255_vm1, %v11777_v1 }
 0x44c   : > { %9535 = vmatmul.mubr.msk.f32.gmra.mrb[14].mxu1 %vm255_vm1, %v11783_v30 }
 0x44d   : > { %9537 = vmatprep.mubr.msk.f32.mxu1 %vm255_vm1, %v11789_v13 }
 0x450   : > { %9538 = vmatmul.mubr.msk.f32.gmra.mrb[16].mxu1 %vm255_vm1, %v11795_v9 }
 0x451   : > { %9540 = vmatprep.mubr.msk.f32.mxu1 %vm255_vm1, %v11801_v20 }
 0x454   : > { %9541 = vmatmul.mubr.msk.f32.gmra.mrb[18].mxu1 %vm255_vm1, %v11807_v23 }
 0x455   : > { %9543 = vmatprep.mubr.msk.f32.mxu1 %vm255_vm1, %v11813_v37 }
 0x458   : > { %9544 = vmatmul.mubr.msk.f32.gmra.mrb[20].mxu1 %vm255_vm1, %v11819_v40 }
 0x459   : > { %9546 = vmatprep.mubr.msk.f32.mxu1 %vm255_vm1, %v11825_v49 }
 0x45c   : > { %9547 = vmatmul.mubr.msk.f32.gmra.mrb[22].mxu1 %vm255_vm1, %v11831_v51 }
 0x45d   : > { %9549 = vmatprep.mubr.msk.f32.mxu1 %vm255_vm1, %v11837_v61 }
 0x460   : > { %9550 = vmatmul.mubr.msk.f32.gmra.mrb[24].mxu1 %vm255_vm1, %v11843_v2 }
 0x461   : > { %9552 = vmatprep.mubr.msk.f32.mxu1 %vm255_vm1, %v11848_v10 }
 0x464   : > { %9553 = vmatmul.mubr.msk.f32.gmra.mrb[26].mxu1 %vm255_vm1, %v11853_v55 }
 0x465   : > { %9555 = vmatprep.mubr.msk.f32.mxu1 %vm255_vm1, %v12946_v35 }
 0x468   : > { %9556 = vmatmul.mubr.msk.f32.gmra.mrb[28].mxu1 %vm255_vm1, %v12947_v8 }
 0x469   : > { %9558 = vmatprep.mubr.msk.f32.mxu1 %vm255_vm1, %v12266_v11 }
 0x46c   : > { %9559 = vmatmul.mubr.msk.f32.gmra.mrb[30].mxu1 %vm255_vm1, %v12270_v16 }
 0x46d   : > { %9563 = vmatprep.mubr.msk.f32.mxu1 %vm255_vm1, %v12948_v22  ;;  %v12957_v22 = vld [vmem:[#allocation40_spill] sm:$0xff] }
 0x470   : > { %9564 = vmatmul.mubr.msk.f32.vlgmr.msra.gmra.mrb[0].mxu1 %vm255_vm1, %v12949_v36  ;;  %v12958_v36 = vld [vmem:[#allocation69_spill] sm:$0xff] }
 0x471   : > { %9612 = vmatpush3.msk.msra.mxu1 %vm507_vm0, %v8157_v33  ;;  %9566 = vmatprep.mubr.msk.f32.mxu1 %vm255_vm1, %v12950_v38  ;;  %v12956_v33 = vld [vmem:[#allocation39_spill] sm:$0xff] }
 0x472   : > { %9661 = vmatprep.subr.msk.mxu1 %vm507_vm0, %v8191_v24 }
 0x474   : > { %9567 = vmatmul.mubr.msk.f32.gmra.mrb[2].mxu1 %vm255_vm1, %v12951_v46  ;;  %v12959_v46 = vld [vmem:[#allocation70_spill] sm:$0xff] }
 0x475   : > { %9569 = vmatprep.mubr.msk.f32.mxu1 %vm255_vm1, %v12952_v48  ;;  %v12960_v48 = vld [vmem:[#allocation45_spill] sm:$0xff] }
 0x478   : > { %9570 = vmatmul.mubr.msk.f32.gmra.mrb[4].mxu1 %vm255_vm1, %v12953_v53  ;;  %v12961_v53 = vld [vmem:[#allocation46_spill] sm:$0xff] }
 0x479   : > { %9572 = vmatprep.mubr.msk.f32.mxu1 %vm255_vm1, %v12954_v57  ;;  %v12962_v57 = vld [vmem:[#allocation47_spill] sm:$0xff] }
 0x47c   : > { %9573 = vmatmul.mubr.msk.f32.gmra.mrb[6].mxu1 %vm255_vm1, %v12955_v6  ;;  %v12963_v6 = vld [vmem:[#allocation48_spill] sm:$0xff] }
 0x47d   : > { %9575 = vmatprep.mubr.msk.f32.mxu1 %vm255_vm1, %v12956_v33  ;;  %v12964_v33 = vld [vmem:[#allocation49_spill] sm:$0xff] }
 0x480   : > { %9576 = vmatmul.mubr.msk.f32.gmra.mrb[8].mxu1 %vm255_vm1, %v12957_v22  ;;  %v12965_v22 = vld [vmem:[#allocation50_spill] sm:$0xff] }
 0x481   : > { %9578 = vmatprep.mubr.msk.f32.mxu1 %vm255_vm1, %v12958_v36  ;;  %v12966_v36 = vld [vmem:[#allocation51_spill] sm:$0xff] }
 0x484   : > { %9579 = vmatmul.mubr.msk.f32.gmra.mrb[10].mxu1 %vm255_vm1, %v12959_v46  ;;  %v12967_v46 = vld [vmem:[#allocation52_spill] sm:$0xff] }
 0x485   : > { %9581 = vmatprep.mubr.msk.f32.mxu1 %vm255_vm1, %v12960_v48  ;;  %v12968_v48 = vld [vmem:[#allocation53_spill] sm:$0xff] }
 0x488   : > { %9582 = vmatmul.mubr.msk.f32.gmra.mrb[12].mxu1 %vm255_vm1, %v12961_v53  ;;  %v12969_v53 = vld [vmem:[#allocation54_spill] sm:$0xff] }
 0x489   : > { %9584 = vmatprep.mubr.msk.f32.mxu1 %vm255_vm1, %v12962_v57  ;;  %v12970_v57 = vld [vmem:[#allocation55_spill] sm:$0xff] }
 0x48c   : > { %9585 = vmatmul.mubr.msk.f32.gmra.mrb[14].mxu1 %vm255_vm1, %v12963_v6  ;;  %v12971_v6 = vld [vmem:[#allocation56_spill] sm:$0xff] }
 0x48d   : > { %9587 = vmatprep.mubr.msk.f32.mxu1 %vm255_vm1, %v12964_v33  ;;  %v12972_v33 = vld [vmem:[#allocation57_spill] sm:$0xff] }
 0x490   : > { %9588 = vmatmul.mubr.msk.f32.gmra.mrb[16].mxu1 %vm255_vm1, %v12965_v22 }
 0x491   : > { %9590 = vmatprep.mubr.msk.f32.mxu1 %vm255_vm1, %v12966_v36  ;;  %v12973_v36 = vld [vmem:[#allocation59_spill] sm:$0xff] }
 0x494   : > { %9591 = vmatmul.mubr.msk.f32.gmra.mrb[18].mxu1 %vm255_vm1, %v12967_v46 }
 0x495   : > { %9593 = vmatprep.mubr.msk.f32.mxu1 %vm255_vm1, %v12968_v48 }
 0x498   : > { %9594 = vmatmul.mubr.msk.f32.gmra.mrb[20].mxu1 %vm255_vm1, %v12969_v53 }
 0x499   : > { %9596 = vmatprep.mubr.msk.f32.mxu1 %vm255_vm1, %v12970_v57  ;;  %v12339_v57 = vld [vmem:[#allocation3 + $0x182] sm:$0xff] }
 0x49c   : > { %9597 = vmatmul.mubr.msk.f32.gmra.mrb[22].mxu1 %vm255_vm1, %v12971_v6 }
 0x49d   : > { %9599 = vmatprep.mubr.msk.f32.mxu1 %vm255_vm1, %v12972_v33  ;;  %v12343_v33 = vld [vmem:[#allocation3 + $0x18a] sm:$0xff] }
 0x4a0   : > { %9600 = vmatmul.mubr.msk.f32.gmra.mrb[24].mxu1 %vm255_vm1, %v12107_v28 }
 0x4a1   : > { %9602 = vmatprep.mubr.msk.f32.mxu1 %vm255_vm1, %v12973_v36 }
 0x4a4   : > { %9603 = vmatmul.mubr.msk.f32.gmra.mrb[26].mxu1 %vm255_vm1, %v12115_v42 }
 0x4a5   : > { %9605 = vmatprep.mubr.msk.f32.mxu1 %vm255_vm1, %v12119_v41  ;;  %v8225_v41 = vld [vmem:[%s12651_s3 + $0x20] sm:$0xf] }
 0x4a8   : > { %9606 = vmatmul.mubr.msk.f32.gmra.mrb[28].mxu1 %vm255_vm1, %v12123_v34 }
 0x4a9   : > { %9608 = vmatprep.mubr.msk.f32.mxu1 %vm255_vm1, %v12339_v57 }
 0x4ac   : > { %9609 = vmatmul.mubr.msk.f32.gmra.mrb[30].mxu1 %vm255_vm1, %v12343_v33 }
 0x4ad   : > { %9613 = vmatprep.mubr.msk.f32.mxu1 %vm255_vm1, %v11884_v15  ;;  %v6255_v15 = vld [vmem:[#allocation3 + $0x198] sm:$0xff] }
 0x4b0   : > { %9614 = vmatmul.mubr.msk.f32.vlgmr.msra.gmra.mrb[0].mxu1 %vm255_vm1, %v11888_v12  ;;  %v6256_v12 = vld [vmem:[#allocation3 + $0x1a0] sm:$0xff] }
 0x4b1   : > { %9662 = vmatpush3.msk.msra.mxu1 %vm507_vm0, %v8191_v24  ;;  %9616 = vmatprep.mubr.msk.f32.mxu1 %vm255_vm1, %v11892_v54  ;;  %v6615_v54 = vld [vmem:[#allocation3 + $0x31] sm:$0xff] }
 0x4b2   : > { %9711 = vmatprep.subr.msk.mxu1 %vm507_vm0, %v8225_v41 }
 0x4b4   : > { %9617 = vmatmul.mubr.msk.f32.gmra.mrb[2].mxu1 %vm255_vm1, %v11896_v5  ;;  %v6616_v5 = vld [vmem:[#allocation3 + $0x39] sm:$0xff] }
 0x4b5   : > { %9619 = vmatprep.mubr.msk.f32.mxu1 %vm255_vm1, %v11900_v14  ;;  %v6617_v14 = vld [vmem:[#allocation3 + $0x49] sm:$0xff] }
 0x4b8   : > { %9620 = vmatmul.mubr.msk.f32.gmra.mrb[4].mxu1 %vm255_vm1, %v11904_v17  ;;  %v6618_v17 = vld [vmem:[#allocation3 + $0x51] sm:$0xff] }
 0x4b9   : > { %9622 = vmatprep.mubr.msk.f32.mxu1 %vm255_vm1, %v11908_v18  ;;  %v6619_v18 = vld [vmem:[#allocation3 + $0x61] sm:$0xff] }
 0x4bc   : > { %9623 = vmatmul.mubr.msk.f32.gmra.mrb[6].mxu1 %vm255_vm1, %v11912_v19  ;;  %v6620_v19 = vld [vmem:[#allocation3 + $0x69] sm:$0xff] }
 0x4bd   : > { %9625 = vmatprep.mubr.msk.f32.mxu1 %vm255_vm1, %v11916_v21  ;;  %v6621_v21 = vld [vmem:[#allocation3 + $0x79] sm:$0xff] }
 0x4c0   : > { %9626 = vmatmul.mubr.msk.f32.gmra.mrb[8].mxu1 %vm255_vm1, %v11920_v25  ;;  %v6622_v25 = vld [vmem:[#allocation3 + $0x81] sm:$0xff] }
 0x4c1   : > { %9628 = vmatprep.mubr.msk.f32.mxu1 %vm255_vm1, %v11924_v26  ;;  %v6623_v26 = vld [vmem:[#allocation3 + $0x91] sm:$0xff] }
 0x4c4   : > { %9629 = vmatmul.mubr.msk.f32.gmra.mrb[10].mxu1 %vm255_vm1, %v11928_v27  ;;  %v6624_v27 = vld [vmem:[#allocation3 + $0x99] sm:$0xff] }
 0x4c5   : > { %9631 = vmatprep.mubr.msk.f32.mxu1 %vm255_vm1, %v11932_v31  ;;  %v12988_v31 = vld [vmem:[#allocation51_spill] sm:$0xff] }
 0x4c8   : > { %9632 = vmatmul.mubr.msk.f32.gmra.mrb[12].mxu1 %vm255_vm1, %v11936_v32  ;;  %v12989_v32 = vld [vmem:[#allocation55_spill] sm:$0xff] }
 0x4c9   : > { %9634 = vmatprep.mubr.msk.f32.mxu1 %vm255_vm1, %v11940_v39  ;;  %v12990_v39 = vld [vmem:[#allocation57_spill] sm:$0xff] }
 0x4cc   : > { %9635 = vmatmul.mubr.msk.f32.gmra.mrb[14].mxu1 %vm255_vm1, %v11944_v43  ;;  %v12991_v43 = vld [vmem:[#allocation61_spill] sm:$0xff] }
 0x4cd   : > { %9637 = vmatprep.mubr.msk.f32.mxu1 %vm255_vm1, %v11948_v44  ;;  %v7035_v44 = vld [vmem:[#allocation3 + $0x19a] sm:$0xff] }
 0x4d0   : > { %9638 = vmatmul.mubr.msk.f32.gmra.mrb[16].mxu1 %vm255_vm1, %v11952_v45 }
 0x4d1   : > { %9640 = vmatprep.mubr.msk.f32.mxu1 %vm255_vm1, %v11956_v47 }
 0x4d4   : > { %9641 = vmatmul.mubr.msk.f32.gmra.mrb[18].mxu1 %vm255_vm1, %v11960_v3 }
 0x4d5   : > { %9643 = vmatprep.mubr.msk.f32.mxu1 %vm255_vm1, %v11964_v50 }
 0x4d8   : > { %9644 = vmatmul.mubr.msk.f32.gmra.mrb[20].mxu1 %vm255_vm1, %v11968_v52 }
 0x4d9   : > { %9646 = vmatprep.mubr.msk.f32.mxu1 %vm255_vm1, %v11972_v56  ;;  %v12992_v56 = vld [vmem:[#allocation7_spill] sm:$0xff] }
 0x4dc   : > { %9647 = vmatmul.mubr.msk.f32.gmra.mrb[22].mxu1 %vm255_vm1, %v11976_v58 }
 0x4dd   : > { %9649 = vmatprep.mubr.msk.f32.mxu1 %vm255_vm1, %v11980_v59 }
 0x4e0   : > { %9650 = vmatmul.mubr.msk.f32.gmra.mrb[24].mxu1 %vm255_vm1, %v11984_v60 }
 0x4e1   : > { %9652 = vmatprep.mubr.msk.f32.mxu1 %vm255_vm1, %v11988_v62 }
 0x4e4   : > { %9653 = vmatmul.mubr.msk.f32.gmra.mrb[26].mxu1 %vm255_vm1, %v11992_v4  ;;  %v12993_v4 = vld [vmem:[#allocation8_spill] sm:$0xff] }
 0x4e5   : > { %9655 = vmatprep.mubr.msk.f32.mxu1 %vm255_vm1, %v12193_v63 }
 0x4e8   : > { %9656 = vmatmul.mubr.msk.f32.gmra.mrb[28].mxu1 %vm255_vm1, %v12197_v29 }
 0x4e9   : > { %9658 = vmatprep.mubr.msk.f32.mxu1 %vm255_vm1, %v6255_v15 }
 0x4ec   : > { %9659 = vmatmul.mubr.msk.f32.gmra.mrb[30].mxu1 %vm255_vm1, %v6256_v12 }
 0x4ed   : > { %9663 = vmatprep.mubr.msk.f32.mxu1 %vm255_vm1, %v6615_v54 }
 0x4f0   : > { %9664 = vmatmul.mubr.msk.f32.vlgmr.msra.gmra.mrb[0].mxu1 %vm255_vm1, %v6616_v5 }
 0x4f1   : > { %9712 = vmatpush3.msk.msra.mxu1 %vm507_vm0, %v8225_v41  ;;  %9666 = vmatprep.mubr.msk.f32.mxu1 %vm255_vm1, %v6617_v14 }
 0x4f4   : > { %9667 = vmatmul.mubr.msk.f32.gmra.mrb[2].mxu1 %vm255_vm1, %v6618_v17  ;;  %v12997_v17 = vld [vmem:[#allocation12_spill] sm:$0xff] }
 0x4f5   : > { %9669 = vmatprep.mubr.msk.f32.mxu1 %vm255_vm1, %v6619_v18 }
 0x4f8   : > { %9670 = vmatmul.mubr.msk.f32.gmra.mrb[4].mxu1 %vm255_vm1, %v6620_v19 }
 0x4f9   : > { %9672 = vmatprep.mubr.msk.f32.mxu1 %vm255_vm1, %v6621_v21 }
 0x4fc   : > { %9673 = vmatmul.mubr.msk.f32.gmra.mrb[6].mxu1 %vm255_vm1, %v6622_v25 }
 0x4fd   : > { %9675 = vmatprep.mubr.msk.f32.mxu1 %vm255_vm1, %v6623_v26 }
 0x500   : > { %9676 = vmatmul.mubr.msk.f32.gmra.mrb[8].mxu1 %vm255_vm1, %v6624_v27  ;;  %v12998_v27 = vld [vmem:[#allocation13_spill] sm:$0xff] }
 0x501   : > { %9678 = vmatprep.mubr.msk.f32.mxu1 %vm255_vm1, %v11765_v0  ;;  %v6645_v0 = vld [vmem:[#allocation3 + $0x199] sm:$0xff] }
 0x504   : > { %9679 = vmatmul.mubr.msk.f32.gmra.mrb[10].mxu1 %vm255_vm1, %v11771_v7  ;;  %v6646_v7 = vld [vmem:[#allocation3 + $0x1a1] sm:$0xff] }
 0x505   : > { %9681 = vmatprep.mubr.msk.f32.mxu1 %vm255_vm1, %v11777_v1  ;;  %v12974_v1 = vld [vmem:[#allocation63_spill] sm:$0xff] }
 0x508   : > { %9682 = vmatmul.mubr.msk.f32.gmra.mrb[12].mxu1 %vm255_vm1, %v11783_v30  ;;  %v12975_v30 = vld [vmem:[#allocation65_spill] sm:$0xff] }
 0x509   : > { %9684 = vmatprep.mubr.msk.f32.mxu1 %vm255_vm1, %v11789_v13  ;;  %v12976_v13 = vld [vmem:[#allocation67_spill] sm:$0xff] }
 0x50c   : > { %9685 = vmatmul.mubr.msk.f32.gmra.mrb[14].mxu1 %vm255_vm1, %v11795_v9  ;;  %v12977_v9 = vld [vmem:[#allocation37_spill] sm:$0xff] }
 0x50d   : > { %9687 = vmatprep.mubr.msk.f32.mxu1 %vm255_vm1, %v11801_v20  ;;  %v12978_v20 = vld [vmem:[#allocation38_spill] sm:$0xff] }
 0x510   : > { %9688 = vmatmul.mubr.msk.f32.gmra.mrb[16].mxu1 %vm255_vm1, %v11807_v23  ;;  %v12979_v23 = vld [vmem:[#allocation39_spill] sm:$0xff] }
 0x511   : > { %9690 = vmatprep.mubr.msk.f32.mxu1 %vm255_vm1, %v11813_v37  ;;  %v12980_v37 = vld [vmem:[#allocation40_spill] sm:$0xff] }
 0x514   : > { %9691 = vmatmul.mubr.msk.f32.gmra.mrb[18].mxu1 %vm255_vm1, %v11819_v40  ;;  %v12981_v40 = vld [vmem:[#allocation69_spill] sm:$0xff] }
 0x515   : > { %9693 = vmatprep.mubr.msk.f32.mxu1 %vm255_vm1, %v11825_v49  ;;  %v12982_v49 = vld [vmem:[#allocation70_spill] sm:$0xff] }
 0x518   : > { %9694 = vmatmul.mubr.msk.f32.gmra.mrb[20].mxu1 %vm255_vm1, %v11831_v51  ;;  %v12983_v51 = vld [vmem:[#allocation45_spill] sm:$0xff] }
 0x519   : > { %9696 = vmatprep.mubr.msk.f32.mxu1 %vm255_vm1, %v11837_v61  ;;  %v12984_v61 = vld [vmem:[#allocation46_spill] sm:$0xff] }
 0x51c   : > { %9697 = vmatmul.mubr.msk.f32.gmra.mrb[22].mxu1 %vm255_vm1, %v11843_v2  ;;  %v12985_v2 = vld [vmem:[#allocation47_spill] sm:$0xff] }
 0x51d   : > { %9699 = vmatprep.mubr.msk.f32.mxu1 %vm255_vm1, %v11848_v10  ;;  %v12986_v10 = vld [vmem:[#allocation48_spill] sm:$0xff] }
 0x520   : > { %9700 = vmatmul.mubr.msk.f32.gmra.mrb[24].mxu1 %vm255_vm1, %v11853_v55  ;;  %v12987_v55 = vld [vmem:[#allocation49_spill] sm:$0xff] }
 0x521   : > { %9702 = vmatprep.mubr.msk.f32.mxu1 %vm255_vm1, %v12946_v35 }
 0x524   : > { %9703 = vmatmul.mubr.msk.f32.gmra.mrb[26].mxu1 %vm255_vm1, %v12947_v8  ;;  %v12994_v8 = vld [vmem:[#allocation9_spill] sm:$0xff] }
 0x525   : > { %9705 = vmatprep.mubr.msk.f32.mxu1 %vm255_vm1, %v12266_v11 }
 0x528   : > { %9706 = vmatmul.mubr.msk.f32.gmra.mrb[28].mxu1 %vm255_vm1, %v12270_v16 }
 0x529   : > { %9708 = vmatprep.mubr.msk.f32.mxu1 %vm255_vm1, %v6645_v0 }
 0x52c   : > { %9709 = vmatmul.mubr.msk.f32.gmra.mrb[30].mxu1 %vm255_vm1, %v6646_v7 }
 0x52d   : > { %9713 = vmatprep.mubr.msk.f32.mxu1 %vm255_vm1, %v12950_v38 }
 0x530   : > { %9714 = vmatmul.mubr.msk.f32.vlgmr.msra.gmra.mrb[0].mxu1 %vm255_vm1, %v12974_v1 }
 0x531   : > { %9716 = vmatprep.mubr.msk.f32.mxu1 %vm255_vm1, %v12975_v30 }
 0x534   : > { %9717 = vmatmul.mubr.msk.f32.gmra.mrb[2].mxu1 %vm255_vm1, %v12976_v13 }
 0x535   : > { %9719 = vmatprep.mubr.msk.f32.mxu1 %vm255_vm1, %v12977_v9  ;;  %v12999_v9 = vld [vmem:[#allocation14_spill] sm:$0xff] }
 0x538   : > { %9720 = vmatmul.mubr.msk.f32.gmra.mrb[4].mxu1 %vm255_vm1, %v12978_v20 }
 0x539   : > { %9722 = vmatprep.mubr.msk.f32.mxu1 %vm255_vm1, %v12979_v23 }
 0x53c   : > { %9723 = vmatmul.mubr.msk.f32.gmra.mrb[6].mxu1 %vm255_vm1, %v12980_v37 }
 0x53d   : > { %9725 = vmatprep.mubr.msk.f32.mxu1 %vm255_vm1, %v12981_v40 }
 0x540   : > { %9726 = vmatmul.mubr.msk.f32.gmra.mrb[8].mxu1 %vm255_vm1, %v12982_v49 }
 0x541   : > { %9728 = vmatprep.mubr.msk.f32.mxu1 %vm255_vm1, %v12983_v51 }
 0x544   : > { %9729 = vmatmul.mubr.msk.f32.gmra.mrb[10].mxu1 %vm255_vm1, %v12984_v61 }
 0x545   : > { %9731 = vmatprep.mubr.msk.f32.mxu1 %vm255_vm1, %v12985_v2  ;;  %v13000_v2 = vld [vmem:[#allocation15_spill] sm:$0xff] }
 0x548   : > { %9732 = vmatmul.mubr.msk.f32.gmra.mrb[12].mxu1 %vm255_vm1, %v12986_v10 }
 0x549   : > { %9734 = vmatprep.mubr.msk.f32.mxu1 %vm255_vm1, %v12987_v55 }
 0x54c   : > { %9735 = vmatmul.mubr.msk.f32.gmra.mrb[14].mxu1 %vm255_vm1, %v12965_v22 }
 0x54d   : > { %9737 = vmatprep.mubr.msk.f32.mxu1 %vm255_vm1, %v12988_v31  ;;  %v13001_v31 = vld [vmem:[#allocation23_spill] sm:$0xff] }
 0x550   : > { %9738 = vmatmul.mubr.msk.f32.gmra.mrb[16].mxu1 %vm255_vm1, %v12967_v46 }
 0x551   : > { %9740 = vmatprep.mubr.msk.f32.mxu1 %vm255_vm1, %v12968_v48  ;;  %v12995_v48 = vld [vmem:[#allocation10_spill] sm:$0xff] }
 0x554   : > { %9741 = vmatmul.mubr.msk.f32.gmra.mrb[18].mxu1 %vm255_vm1, %v12969_v53 }
 0x555   : > { %9743 = vmatprep.mubr.msk.f32.mxu1 %vm255_vm1, %v12989_v32 }
 0x558   : > { %9744 = vmatmul.mubr.msk.f32.gmra.mrb[20].mxu1 %vm255_vm1, %v12971_v6 }
 0x559   : > { %9746 = vmatprep.mubr.msk.f32.mxu1 %vm255_vm1, %v12990_v39 }
 0x55c   : > { %9747 = vmatmul.mubr.msk.f32.gmra.mrb[22].mxu1 %vm255_vm1, %v12107_v28  ;;  %v7036_v28 = vld [vmem:[#allocation3 + $0x1a2] sm:$0xff] }
 0x55d   : > { %9749 = vmatprep.mubr.msk.f32.mxu1 %vm255_vm1, %v12973_v36  ;;  %v12996_v36 = vld [vmem:[#allocation11_spill] sm:$0xff] }
 0x560   : > { %9750 = vmatmul.mubr.msk.f32.gmra.mrb[24].mxu1 %vm255_vm1, %v12115_v42  ;;  %v12532_v42 = vld [vmem:[%s12652_s4] ss:$0 sm:$0xff] }
 0x561   : > { %9752 = vmatprep.mubr.msk.f32.mxu1 %vm255_vm1, %v12991_v43 }
 0x564   : > { %9753 = vmatmul.mubr.msk.f32.gmra.mrb[26].mxu1 %vm255_vm1, %v12123_v34 }
 0x565   : > { %9755 = vmatprep.mubr.msk.f32.mxu1 %vm255_vm1, %v12339_v57 }
 0x568   : > { %9756 = vmatmul.mubr.msk.f32.gmra.mrb[28].mxu1 %vm255_vm1, %v12343_v33 }
 0x569   : > { %9758 = vmatprep.mubr.msk.f32.mxu1 %vm255_vm1, %v7035_v44  ;;  %v13002_v44 = vld [vmem:[#allocation16_spill] sm:$0xff] }
 0x56c   : > { %9759 = vmatmul.mubr.msk.f32.gmra.mrb[30].mxu1 %vm255_vm1, %v7036_v28 }
 0x603   : > { %v9715_v45 = vpop.f32.mrb[0].mxu1 }
 0x604   : > { %v7204_v47 = vpop.f32.mrb[1].mxu1  ;;  %v7403_v3 = vadd.f32 %v9715_v45, %v12532_v42 }
 0x605   : > { %v7402_v50 = vadd.f32 %v12532_v42, %v7204_v47 }
 0x606   : > { %v7435_v41 = vadd.f32 %v7403_v3, %v12993_v4 }
 0x607   : > { %v9718_v52 = vpop.f32.mrb[2].mxu1  ;;  %v7434_v58 = vadd.f32 %v7402_v50, %v12992_v56  ;;  %v13003_v50 = vld [vmem:[#allocation24_spill] sm:$0xff] }
 0x608   : > { %v7214_v59 = vpop.f32.mrb[3].mxu1  ;;  %v7405_v29 = vadd.f32 %v9718_v52, %v12532_v42  ;;  %v7467_v35 = vmax.f32 %v7435_v41, 0.0  ;;  %v13004_v41 = vld [vmem:[#allocation17_spill] sm:$0xff] }
 0x609   : > { %v7404_v60 = vadd.f32 %v12532_v42, %v7214_v59  ;;  %v7466_v62 = vmax.f32 %v7434_v58, 0.0 }
 0x60a   : > { %v7437_v53 = vadd.f32 %v7405_v29, %v12995_v48 }
 0x60b   : > { %7498 = vxpose.xlu0.b32.start [1/16] (narrow) %v7466_v62, 8  ;;  %v9721_v34 = vpop.f32.mrb[4].mxu1  ;;  %v7436_v11 = vadd.f32 %v7404_v60, %v12994_v8 }
 0x60c   : > { %v7224_v63 = vpop.f32.mrb[5].mxu1  ;;  %v7407_v33 = vadd.f32 %v9721_v34, %v12532_v42  ;;  %v7469_v22 = vmax.f32 %v7437_v53, 0.0  ;;  %v13007_v53 = vld [vmem:[#allocation26_spill] sm:$0xff] }
 0x60d   : > { %v7406_v38 = vadd.f32 %v12532_v42, %v7224_v63  ;;  %v7468_v46 = vmax.f32 %v7436_v11, 0.0  ;;  %v13005_v63 = vld [vmem:[#allocation25_spill] sm:$0xff] }
 0x60e   : > { %v7439_v18 = vadd.f32 %v7407_v33, %v12997_v17 }
 0x60f   : > { %7499 = vxpose.xlu0.b32.cont [2/16] (narrow) %v7467_v35, 8  ;;  %v9724_v16 = vpop.f32.mrb[6].mxu1  ;;  %v7438_v15 = vadd.f32 %v7406_v38, %v12996_v36 }
 0x610   : > { %v7234_v24 = vpop.f32.mrb[7].mxu1  ;;  %v7409_v25 = vadd.f32 %v9724_v16, %v12532_v42  ;;  %v7471_v26 = vmax.f32 %v7439_v18, 0.0  ;;  %v13006_v16 = vld [vmem:[#allocation18_spill] sm:$0xff]  ;;  %v13009_v18 = vld [vmem:[#allocation27_spill] sm:$0xff] }
 0x611   : > { %v7408_v5 = vadd.f32 %v12532_v42, %v7234_v24  ;;  %v7470_v14 = vmax.f32 %v7438_v15, 0.0 }
 0x612   : > { %v7441_v20 = vadd.f32 %v7409_v25, %v12999_v9 }
 0x613   : > { %7500 = vxpose.xlu0.b32.cont [3/16] (narrow) %v7468_v46, 8  ;;  %v9727_v57 = vpop.f32.mrb[8].mxu1  ;;  %v7440_v0 = vadd.f32 %v7408_v5, %v12998_v27 }
 0x614   : > { %v7244_v6 = vpop.f32.mrb[9].mxu1  ;;  %v7411_v37 = vadd.f32 %v9727_v57, %v12532_v42  ;;  %v7473_v61 = vmax.f32 %v7441_v20, 0.0 }
 0x615   : > { %v7410_v30 = vadd.f32 %v12532_v42, %v7244_v6  ;;  %v7472_v13 = vmax.f32 %v7440_v0, 0.0 }
 0x616   : > { %v7443_v28 = vadd.f32 %v7411_v37, %v13002_v44  ;;  %v13011_v37 = vld [vmem:[#allocation28_spill] sm:$0xff] }
 0x617   : > { %7501 = vxpose.xlu0.b32.cont [4/16] (narrow) %v7469_v22, 8  ;;  %v9730_v12 = vpop.f32.mrb[10].mxu1  ;;  %v7442_v10 = vadd.f32 %v7410_v30, %v13000_v2  ;;  %v13010_v30 = vld [vmem:[#allocation20_spill] sm:$0xff] }
 0x618   : > { %v7254_v54 = vpop.f32.mrb[11].mxu1  ;;  %v7413_v58 = vadd.f32 %v9730_v12, %v12532_v42  ;;  %v7475_v60 = vmax.f32 %v7443_v28, 0.0  ;;  %v13008_v12 = vld [vmem:[#allocation19_spill] sm:$0xff] }
 0x619   : > { %v7412_v39 = vadd.f32 %v12532_v42, %v7254_v54  ;;  %v7474_v47 = vmax.f32 %v7442_v10, 0.0  ;;  %v13012_v10 = vld [vmem:[#allocation21_spill] sm:$0xff] }
 0x61a   : > { %v7445_v24 = vadd.f32 %v7413_v58, %v13006_v16  ;;  %v13015_v58 = vld [vmem:[#allocation30_spill] sm:$0xff] }
 0x61b   : > { %7502 = vxpose.xlu0.b32.cont [5/16] (narrow) %v7470_v14, 8  ;;  %v9733_v19 = vpop.f32.mrb[12].mxu1  ;;  %v7444_v34 = vadd.f32 %v7412_v39, %v13004_v41  ;;  %v13019_v16 = vld [vmem:[#allocation34_spill] sm:$0xff] }
 0x61c   : > { %v7264_v21 = vpop.f32.mrb[13].mxu1  ;;  %v7415_v33 = vadd.f32 %v9733_v19, %v12532_v42  ;;  %v7477_v15 = vmax.f32 %v7445_v24, 0.0 }
 0x61d   : > { %v7414_v8 = vadd.f32 %v12532_v42, %v7264_v21  ;;  %v7476_v46 = vmax.f32 %v7444_v34, 0.0 }
 0x61f   : > { %7503 = vxpose.xlu0.b32.cont [6/16] (narrow) %v7471_v26, 8  ;;  %v12549_v7 = vpop.f32.mrb[14].mxu1  ;;  %v7446_v54 = vadd.f32 %v7414_v8, %v13008_v12  ;;  %v13018_v8 = vld [vmem:[#allocation33_spill] sm:$0xff]  ;;  %v13023_v12 = vld [vmem:[#allocation42_spill] sm:$0xff] }
 0x620   : > { %v7274_v1 = vpop.f32.mrb[15].mxu1 }
 0x621   : > { %v7416_v26 = vadd.f32 %v12532_v42, %v7274_v1  ;;  %v7478_v0 = vmax.f32 %v7446_v54, 0.0 }
 0x623   : > { %7504 = vxpose.xlu0.b32.cont [7/16] (narrow) %v7472_v13, 8  ;;  %v9739_v23 = vpop.f32.mrb[16].mxu1  ;;  %v7447_v13 = vadd.f32 %v7415_v33, %v13010_v30 }
 0x624   : > { %v7284_v40 = vpop.f32.mrb[17].mxu1  ;;  %v7419_v49 = vadd.f32 %v9739_v23, %v12532_v42 }
 0x625   : > { %v7418_v51 = vadd.f32 %v12532_v42, %v7284_v40  ;;  %v7479_v2 = vmax.f32 %v7447_v13, 0.0 }
 0x626   : > { %v7451_v52 = vadd.f32 %v7419_v49, %v13003_v50 }
 0x627   : > { %7505 = vxpose.xlu0.b32.cont [8/16] (narrow) %v7473_v61, 8  ;;  %v9742_v55 = vpop.f32.mrb[18].mxu1  ;;  %v7450_v32 = vadd.f32 %v7418_v51, %v13001_v31  ;;  %v7417_v51 = vadd.f32 %v12549_v7, %v12532_v42  ;;  %v13014_v7 = vld [vmem:[#allocation22_spill] sm:$0xff] }
 0x628   : > { %v7294_v43 = vpop.f32.mrb[19].mxu1  ;;  %v7421_v62 = vadd.f32 %v9742_v55, %v12532_v42  ;;  %v7483_v4 = vmax.f32 %v7451_v52, 0.0  ;;  %v7448_v55 = vadd.f32 %v7416_v26, %v13012_v10 }
 0x629   : > { %v7420_v45 = vadd.f32 %v12532_v42, %v7294_v43  ;;  %v7482_v3 = vmax.f32 %v7450_v32, 0.0  ;;  %v13013_v43 = vld [vmem:[#allocation29_spill] sm:$0xff] }
 0x62a   : > { %v7453_v57 = vadd.f32 %v7421_v62, %v13007_v53  ;;  %v7480_v52 = vmax.f32 %v7448_v55, 0.0 }
 0x62b   : > { %7506 = vxpose.xlu0.b32.cont [9/16] (narrow) %v7474_v47, 8  ;;  %7530 = vxpose.xlu1.b32.start [1/16] (narrow) %v7482_v3, 8  ;;  %v9745_v56 = vpop.f32.mrb[20].mxu1  ;;  %v7452_v29 = vadd.f32 %v7420_v45, %v13005_v63  ;;  %v7449_v3 = vadd.f32 %v7417_v51, %v13014_v7  ;;  %v13017_v63 = vld [vmem:[#allocation32_spill] sm:$0xff] }
 0x62c   : > { %v7304_v59 = vpop.f32.mrb[21].mxu1  ;;  %v7423_v5 = vadd.f32 %v9745_v56, %v12532_v42  ;;  %v7485_v17 = vmax.f32 %v7453_v57, 0.0  ;;  %v13021_v57 = vld [vmem:[#allocation36_spill] sm:$0xff] }
 0x62d   : > { %v7422_v38 = vadd.f32 %v12532_v42, %v7304_v59  ;;  %v7484_v48 = vmax.f32 %v7452_v29, 0.0 }
 0x62e   : > { %v7455_v40 = vadd.f32 %v7423_v5, %v13011_v37 }
 0x62f   : > { %7507 = vxpose.xlu0.b32.cont [10/16] (narrow) %v7475_v60, 8  ;;  %7531 = vxpose.xlu1.b32.cont [2/16] (narrow) %v7483_v4, 8  ;;  %v9748_v35 = vpop.f32.mrb[22].mxu1  ;;  %v7454_v21 = vadd.f32 %v7422_v38, %v13009_v18  ;;  %v7481_v60 = vmax.f32 %v7449_v3, 0.0  ;;  %v13016_v4 = vld [vmem:[#allocation31_spill] sm:$0xff] }
 0x630   : > { %v7314_v11 = vpop.f32.mrb[23].mxu1  ;;  %v7425_v31 = vadd.f32 %v9748_v35, %v12532_v42  ;;  %v7487_v39 = vmax.f32 %v7455_v40, 0.0 }
 0x631   : > { %v7424_v9 = vadd.f32 %v12532_v42, %v7314_v11  ;;  %v7486_v23 = vmax.f32 %v7454_v21, 0.0 }
 0x632   : > { %v7457_v59 = vadd.f32 %v7425_v31, %v13015_v58 }
 0x633   : > { %7508 = vxpose.xlu0.b32.cont [11/16] (narrow) %v7476_v46, 8  ;;  %7532 = vxpose.xlu1.b32.cont [3/16] (narrow) %v7484_v48, 8  ;;  %v9751_v6 = vpop.f32.mrb[24].mxu1  ;;  %v7456_v44 = vadd.f32 %v7424_v9, %v13013_v43  ;;  %v13020_v46 = vld [vmem:[#allocation35_spill] sm:$0xff] }
 0x634   : > { %v7427_v22 = vadd.f32 %v9751_v6, %v12532_v42  ;;  %v7324_v36 = vpop.f32.mrb[25].mxu1  ;;  %v7489_v62 = vmax.f32 %v7457_v59, 0.0 }
 0x635   : > { %v7426_v14 = vadd.f32 %v12532_v42, %v7324_v36  ;;  %v7488_v56 = vmax.f32 %v7456_v44, 0.0 }
 0x636   : > { %v7459_v29 = vadd.f32 %v7427_v22, %v13017_v63  ;;  %v13022_v22 = vld [vmem:[#allocation41_spill] sm:$0xff] }
 0x637   : > { %7509 = vxpose.xlu0.b32.cont [12/16] (narrow) %v7477_v15, 8  ;;  %7533 = vxpose.xlu1.b32.cont [4/16] (narrow) %v7485_v17, 8  ;;  %v9754_v25 = vpop.f32.mrb[26].mxu1  ;;  %v7458_v41 = vadd.f32 %v7426_v14, %v13016_v4 }
 0x638   : > { %v7429_v19 = vadd.f32 %v9754_v25, %v12532_v42  ;;  %v7334_v27 = vpop.f32.mrb[27].mxu1  ;;  %v7491_v35 = vmax.f32 %v7459_v29, 0.0 }
 0x639   : > { %v7428_v20 = vadd.f32 %v12532_v42, %v7334_v27  ;;  %v7490_v34 = vmax.f32 %v7458_v41, 0.0 }
 0x63a   : > { %v7461_v24 = vadd.f32 %v7429_v19, %v13019_v16 }
 0x63b   : > { %7510 = vxpose.xlu0.b32.cont [13/16] (narrow) %v7478_v0, 8  ;;  %7534 = vxpose.xlu1.b32.cont [5/16] (narrow) %v7486_v23, 8  ;;  %v9757_v49 = vpop.f32.mrb[28].mxu1  ;;  %v7460_v11 = vadd.f32 %v7428_v20, %v13018_v8 }
 0x63c   : > { %v7431_v1 = vadd.f32 %v9757_v49, %v12532_v42  ;;  %v7344_v61 = vpop.f32.mrb[29].mxu1  ;;  %v7493_v38 = vmax.f32 %v7461_v24, 0.0 }
 0x63d   : > { %v7430_v32 = vadd.f32 %v12532_v42, %v7344_v61 }
 0x63e   : > { %v7463_v6 = vadd.f32 %v7431_v1, %v13021_v57 }
 0x63f   : > { %7511 = vxpose.xlu0.b32.cont [14/16] (narrow) %v7479_v2, 8  ;;  %7535 = vxpose.xlu1.b32.cont [6/16] (narrow) %v7487_v39, 8  ;;  %v9760_v28 = vpop.f32.mrb[30].mxu1  ;;  %v7462_v48 = vadd.f32 %v7430_v32, %v13020_v46 }
 0x640   : > { %v7433_v45 = vadd.f32 %v9760_v28, %v12532_v42  ;;  %v7354_v47 = vpop.f32.mrb[31].mxu1  ;;  %v7495_v33 = vmax.f32 %v7463_v6, 0.0 }
 0x641   : > { %v7432_v50 = vadd.f32 %v12532_v42, %v7354_v47  ;;  %v7492_v42 = vmax.f32 %v7460_v11, 0.0  ;;  %v7494_v53 = vmax.f32 %v7462_v48, 0.0 }
 0x642   : > { %v7465_v54 = vadd.f32 %v7433_v45, %v13023_v12 }
 0x643   : > { %7512 = vxpose.xlu0.b32.cont [15/16] (narrow) %v7480_v52, 8  ;;  %7536 = vxpose.xlu1.b32.cont [7/16] (narrow) %v7488_v56, 8  ;;  %v7464_v36 = vadd.f32 %v7432_v50, %v13022_v22 }
 0x644   : > { %v7497_v5 = vmax.f32 %v7465_v54, 0.0 }
 0x645   : > { %v7496_v15 = vmax.f32 %v7464_v36, 0.0 }
 0x647   : > { %7513 = vxpose.xlu0.b32.end [16/16] (narrow) %v7481_v60, 8  ;;  %7537 = vxpose.xlu1.b32.cont [8/16] (narrow) %v7489_v62, 8 }
 0x64b   : > { %7538 = vxpose.xlu1.b32.cont [9/16] (narrow) %v7490_v34, 8 }
 0x64f   : > { %7539 = vxpose.xlu1.b32.cont [10/16] (narrow) %v7491_v35, 8 }
 0x653   : > { %7540 = vxpose.xlu1.b32.cont [11/16] (narrow) %v7492_v42, 8 }
 0x657   : > { %7541 = vxpose.xlu1.b32.cont [12/16] (narrow) %v7493_v38, 8 }
 0x65b   : > { %7542 = vxpose.xlu1.b32.cont [13/16] (narrow) %v7494_v53, 8 }
 0x65f   : > { %7543 = vxpose.xlu1.b32.cont [14/16] (narrow) %v7495_v33, 8 }
 0x663   : > { %7544 = vxpose.xlu1.b32.cont [15/16] (narrow) %v7496_v15, 8 }
 0x667   : > { %7545 = vxpose.xlu1.b32.end [16/16] (narrow) %v7497_v5, 8 }
 0x68b   : > { %v7514_v14 = vpop.trf.xlu0 }
 0x6ab   : > { %v7546_v17 = vpop.trf.xlu1 }
 0x6ac   : > { %v7564_v18 = vcombine.low %v7514_v14, %v7546_v17 }
 0x6ae   : > { %7566 = vst [vmem:[%s217_s30] sm:$0xff] %v7564_v18 }
 0x6af   : > { %10326 = shalt.err (!%p10323_p3)
}
 0x6b0   : > { %s10327_s14 = scalar_lea.hbm %s12606_s9, 128  ;;  %s10331_s17 = scalar_lea.hbm %s12653_s5, 256 }
 0x6b1   : > { %p10328_p4 = scmp.ne.s32.totalorder %s12606_s9, %s10327_s14  ;;  %p10332_p9 = scmp.lt.u32.totalorder %s12606_s9, %s12653_s5 }
 0x6b2   : > { %p10333_p10 = scmp.lt.u32.totalorder %s10331_s17, %s10327_s14  ;;  %p10335_p12 = scmp.lt.u32.totalorder %s10327_s14, %s12606_s9 }
 0x6b3   : > { %p10329_p7 = pnand %p10328_p4, %p10447_p5 }
 0x6b4   : > { %p10334_p11 = por %p10333_p10, %p10332_p9 }
 0x6b5   : > { %p10330_p8 = pneg %p10329_p7 }
 0x6b6   : > { %p10336_p13 = por %p10335_p12, %p10334_p11 }
 0x6b8   : > { %p10337_p0 = pnand %p10336_p13, %p10330_p8 }
 0x6ba   : > { %10340 = shalt.err (!%p10337_p0)
}
 0x6bb   : > { %10273 = dma.vmem_to_hbm [thread:$0]  (%p10447_p5), %s12608_s6, 128, %s12606_s9, %s7568_s10  }
 0x6bc PF: > { %p10279_p1 = scmp.ge.s32.totalorder %s10375_s21, 2  ;;  %s7594_s26 = sand.u32 1, %s10363_s18  }
 0x6bd   : > { %s7595_s30 = scalar_lea.sflag [#allocation5], %s7594_s26 }
 0x6be   : > { %p10276_p2 = pnand %p10279_p1, %p10451_p6 }
 0x6c0   : > { %10358 = dma.done.wait (!%p10276_p2), %s7595_s30, 128  }
 0x6c1   : > { %10360 = vsyncadd (!%p10276_p2), %s7595_s30, 4294967168  ;;  %p15_p3 = scmp.ge.s32.totalorder %s10434_s24, 4   ;;  %s13024_s18 = smov %s10367_s19 }
 0x6c2   : > { %s13025_s19 = smov %s10371_s20  ;;  %s13026_s20 = smov %s10445_s27 }
 0x6c3   : > { %s13027_s21 = smov %s10434_s24  ;;  %17 = sbr.rel (!%p15_p3) target bundleno = 3 (0x3), region = 95 }
 0x6ca   :  { %7600 = vsyncpa [#allocation5], 1 }
 0x6cb   :  { %7602 = vsyncpa [#allocation5 + $0x1], 1 }

</bundles_post_ra>
